<compile_context>
chip_gen: v7x
topology: tpu7x:2x2x1
jax: 0.10.0
libtpu: 0.0.40
codegen_flags: <defaults>
</compile_context>

<pallas_src>
import functools

import jax
import jax.numpy as jnp
from jax.experimental import pallas as pl
from jax.experimental.pallas import tpu as pltpu

LEAKY = 0.2
PN_EPS = 1e-8
# Conservative per-grid-step VMEM budget (bytes): fits the default scoped
# VMEM limit on every TPU generation (v5e/v6e and v7x's 64 MiB physical).
_VMEM_BUDGET = 20 * 1024 * 1024


# ------------------------------- Pallas kernel -------------------------------
def _conv_block_kernel(x_ref, w1_ref, b1_ref, w2_ref, b2_ref, o_ref, *,
                       use_pn, leaky, eps):
    """Fused ConvBlock for one image: two 3x3 WSConvs with fused epilogues.

    x_ref : (1, H, W, Cin)  bf16   input image (real, unpadded channels)
    w1_ref: (9*Cin, C1)     bf16   tap-folded conv1 weight (ws pre-folded)
    b1_ref: (1, C1)         f32
    w2_ref: (9*C1, C2)      bf16   tap-folded conv2 weight (ws pre-folded)
    b2_ref: (1, C2)         f32
    o_ref : (1, H, W, C2)   f32
    """

    def pad_hw1(t):
        # Zero 1-px halo ring, built in VMEM (no HBM-materialized pad).
        hh, ww, cc = t.shape
        zr = jnp.zeros((1, ww, cc), t.dtype)
        t = jnp.concatenate([zr, t, zr], axis=0)
        zc = jnp.zeros((hh + 2, 1, cc), t.dtype)
        return jnp.concatenate([zc, t, zc], axis=1)

    def wsconv3x3(t, w_ref, b_ref):
        # Tap folding: one (M, 9*C) x (9*C, Cout) MXU dot; the reduction over
        # the nine taps happens inside the MXU (no chained VALU adds).
        hh, ww, cc = t.shape
        tp = pad_hw1(t)
        taps = [tp[kh:kh + hh, kw:kw + ww, :]
                for kh in range(3) for kw in range(3)]
        slab = jnp.concatenate(taps, axis=-1).reshape(hh * ww, 9 * cc)
        y = jnp.dot(slab.astype(jnp.bfloat16), w_ref[...],
                    preferred_element_type=jnp.float32)
        y = y + b_ref[...]                                  # bias
        y = jnp.where(y >= 0, y, leaky * y)                 # LeakyReLU
        if use_pn:                                          # PixelNorm (real C)
            msq = jnp.mean(y * y, axis=-1, keepdims=True)
            y = y * jax.lax.rsqrt(msq + eps)
        return y.reshape(hh, ww, y.shape[-1])

    x = x_ref[0].astype(jnp.float32)            # (H, W, Cin)
    h1 = wsconv3x3(x, w1_ref, b1_ref)           # (H, W, C1) -- stays in VMEM
    h2 = wsconv3x3(h1, w2_ref, b2_ref)          # (H, W, C2)
    o_ref[0] = h2.astype(o_ref.dtype)


# ------------------------------ VMEM accounting -------------------------------
def _vmem_estimate_bytes(h, w, cin, c1, c2):
    """Rough per-grid-step VMEM footprint (pipeline buffers + live values)."""
    m = h * w
    est = 0
    est += 2 * m * cin * 2                                   # input tile x2 (bf16)
    est += 2 * 9 * (cin * c1 + c1 * c2) * 2                  # weights x2 (bf16)
    est += 2 * (c1 + c2) * 4                                 # biases x2 (f32)
    est += 2 * m * c2 * 4                                    # output tile x2 (f32)
    est += (h + 2) * (w + 2) * (cin + c1) * 4                # padded halo values
    est += m * 9 * (cin + c1) * (4 + 2)                      # im2col slabs f32+bf16
    est += m * (cin + 2 * c1 + c2) * 4                       # x, h1, h2 live values
    return est


# ------------------------------ kernel wrapper --------------------------------
def conv_block_fused(x_nhwc, w1, b1, w2, b2, *, use_pn, leaky=LEAKY, eps=PN_EPS):
    """x_nhwc: (N,H,W,Cin) bf16.  Returns (N,H,W,C2) f32."""
    n, h, w, cin = x_nhwc.shape
    c1 = w1.shape[-1]
    c2 = w2.shape[-1]

    if _vmem_estimate_bytes(h, w, cin, c1, c2) > _VMEM_BUDGET:
        # TODO(synk): row-tiled fused variant for large resolutions/channels.
        raise NotImplementedError(
            "whole-image tile exceeds the per-step VMEM budget")

    kern = functools.partial(_conv_block_kernel, use_pn=use_pn,
                             leaky=leaky, eps=eps)

    flops = 2 * n * h * w * 9 * (cin * c1 + c1 * c2)
    bytes_accessed = (x_nhwc.size * 2 + (w1.size + w2.size) * 2
                      + (b1.size + b2.size) * 4 + n * h * w * c2 * 4)
    cost = pl.CostEstimate(
        flops=flops,
        transcendentals=(2 * n * h * w) if use_pn else 0,
        bytes_accessed=bytes_accessed)

    return pl.pallas_call(
        kern,
        out_shape=jax.ShapeDtypeStruct((n, h, w, c2), jnp.float32),
        grid_spec=pltpu.PrefetchScalarGridSpec(
            num_scalar_prefetch=0,
            grid=(n,),
            in_specs=[
                pl.BlockSpec((1, h, w, cin), lambda b: (b, 0, 0, 0)),
                pl.BlockSpec((9 * cin, c1), lambda b: (0, 0)),
                pl.BlockSpec((1, c1), lambda b: (0, 0)),
                pl.BlockSpec((9 * c1, c2), lambda b: (0, 0)),
                pl.BlockSpec((1, c2), lambda b: (0, 0)),
            ],
            out_specs=pl.BlockSpec((1, h, w, c2), lambda b: (b, 0, 0, 0))),
        compiler_params=pltpu.CompilerParams(
            dimension_semantics=("parallel",)),
        cost_estimate=cost,
    )(x_nhwc, w1, b1, w2, b2)


# ----------------------------- parameters / packing ---------------------------
def init_ws_conv3x3(key, in_c, out_c, gain=2):
    kw_, kb_ = jax.random.split(key)
    w = jax.random.normal(kw_, (out_c, in_c, 3, 3), jnp.float32)   # torch OIHW
    # torch init zeros the bias; small random values here so the bias-add path
    # of the forward pass is actually exercised by the check.
    b = 0.1 * jax.random.normal(kb_, (out_c,), jnp.float32)
    ws = (gain / (3 * 3 * in_c)) ** 0.5
    return {'w': w, 'b': b, 'ws': ws}


def init_conv_block(key, in_c, out_c):
    k1, k2 = jax.random.split(key)
    return {'conv1': init_ws_conv3x3(k1, in_c, out_c),
            'conv2': init_ws_conv3x3(k2, out_c, out_c)}


def _pack_wsconv(p):
    """torch OIHW weight -> tap-folded (9*Cin, Cout) bf16 (ws pre-folded)."""
    out_c, in_c, _, _ = p['w'].shape
    w = jnp.transpose(p['w'], (2, 3, 1, 0)) * p['ws']       # (3,3,Cin,Cout)
    w = w.reshape(9 * in_c, out_c).astype(jnp.bfloat16)     # K = tap*Cin + c
    b = p['b'].reshape(1, out_c).astype(jnp.float32)
    return w, b


# --------------------------------- forward ------------------------------------
@functools.partial(jax.jit, static_argnames=("use_pixel_norm",))
def conv_block_forward(params, x_nchw, use_pixel_norm=True):
    """ConvBlock forward: leaky(conv1(x)) -> [PN] -> leaky(conv2(.)) -> [PN]."""
    x = jnp.transpose(x_nchw, (0, 2, 3, 1)).astype(jnp.bfloat16)   # NCHW->NHWC
    w1, b1 = _pack_wsconv(params['conv1'])
    w2, b2 = _pack_wsconv(params['conv2'])
    out = conv_block_fused(x, w1, b1, w2, b2, use_pn=use_pixel_norm)
    return jnp.transpose(out, (0, 3, 1, 2))                        # NHWC->NCHW


# ------------------------ pure-JAX reference (checking) ------------------------
def _ref_conv_block(params, x_nchw, use_pixel_norm=True, eps=PN_EPS):
    x = jnp.transpose(x_nchw, (0, 2, 3, 1)).astype(jnp.float32)

    def wsconv(x, p):
        w = jnp.transpose(p['w'], (2, 3, 1, 0)) * p['ws']           # HWIO
        out = jax.lax.conv_general_dilated(
            x, w, (1, 1), [(1, 1), (1, 1)],
            dimension_numbers=('NHWC', 'HWIO', 'NHWC'),
            precision=jax.lax.Precision.HIGHEST)
        return out + p['b'][None, None, None, :]

    def pn(x):
        return x * jax.lax.rsqrt(jnp.mean(x * x, axis=-1, keepdims=True) + eps)

    y = wsconv(x, params['conv1'])
    y = jnp.where(y >= 0, y, LEAKY * y)
    if use_pixel_norm:
        y = pn(y)
    y = wsconv(y, params['conv2'])
    y = jnp.where(y >= 0, y, LEAKY * y)
    if use_pixel_norm:
        y = pn(y)
    return jnp.transpose(y, (0, 3, 1, 2))


# ----------------------------------- main --------------------------------------
if __name__ == "__main__":
    key = jax.random.PRNGKey(0)
    k_params, k_x = jax.random.split(key)

    batch, in_chans, out_chans, spatial = 2, 8, 32, 16
    params = init_conv_block(k_params, in_chans, out_chans)
    x = jax.random.normal(k_x, (batch, in_chans, spatial, spatial), jnp.float32)

    for use_pn in (True, False):   # ConvBlock default is use_pixel_norm=True
        out = jax.block_until_ready(
            conv_block_forward(params, x, use_pixel_norm=use_pn))
        assert out.shape == (batch, out_chans, spatial, spatial), out.shape

        ref = jax.block_until_ready(
            _ref_conv_block(params, x, use_pixel_norm=use_pn))
        rel_err = float(jnp.max(jnp.abs(out - ref)) /
                        (jnp.max(jnp.abs(ref)) + 1e-6))
        assert rel_err < 5e-2, f"use_pn={use_pn}: rel_err={rel_err}"

    print("KERNEL_OK")
</pallas_src>

<mosaic_0001>
module attributes {stable_mosaic.version = 11 : i64} {
  func.func @_conv_block_kernel(%arg0: i32, %arg1: memref<1x16x16x8xbf16, #tpu.memory_space<vmem>>, %arg2: memref<72x32xbf16, #tpu.memory_space<vmem>>, %arg3: memref<1x32xf32, #tpu.memory_space<vmem>>, %arg4: memref<288x32xbf16, #tpu.memory_space<vmem>>, %arg5: memref<1x32xf32, #tpu.memory_space<vmem>>, %arg6: memref<1x16x16x32xf32, #tpu.memory_space<vmem>>) attributes {dimension_semantics = [#tpu.dimension_semantics<parallel>], iteration_bounds = array<i64: 2>, scalar_prefetch = 0 : i64, scratch_operands = 0 : i64, tpu.core_type = #tpu.core_type<tc>, window_params = [{transform_indices = @transform_0, window_bounds = array<i64: 1, 16, 16, 8>}, {pipeline_mode = #tpu.pipeline_mode<synchronous>, transform_indices = @transform_1, window_bounds = array<i64: 72, 32>}, {pipeline_mode = #tpu.pipeline_mode<synchronous>, transform_indices = @transform_2, window_bounds = array<i64: 1, 32>}, {pipeline_mode = #tpu.pipeline_mode<synchronous>, transform_indices = @transform_3, window_bounds = array<i64: 288, 32>}, {pipeline_mode = #tpu.pipeline_mode<synchronous>, transform_indices = @transform_4, window_bounds = array<i64: 1, 32>}, {transform_indices = @transform_5, window_bounds = array<i64: 1, 16, 16, 32>}]} {
    %c0 = arith.constant 0 : index
    %c0_0 = arith.constant 0 : index
    %c0_1 = arith.constant 0 : index
    %c0_2 = arith.constant 0 : index
    %0 = vector.load %arg1[%c0, %c0_0, %c0_1, %c0_2] : memref<1x16x16x8xbf16, #tpu.memory_space<vmem>>, vector<1x16x16x8xbf16>
    %1 = vector.shape_cast %0 : vector<1x16x16x8xbf16> to vector<16x16x8xbf16>
    %2 = arith.extf %1 : vector<16x16x8xbf16> to vector<16x16x8xf32>
    %cst = arith.constant 0.000000e+00 : f32
    %3 = vector.broadcast %cst : f32 to vector<1x16x8xf32>
    %4 = tpu.concatenate %3, %2, %3 in 0 : vector<1x16x8xf32>, vector<16x16x8xf32>, vector<1x16x8xf32> -> vector<18x16x8xf32>
    %cst_3 = arith.constant 0.000000e+00 : f32
    %5 = vector.broadcast %cst_3 : f32 to vector<18x1x8xf32>
    %6 = tpu.concatenate %5, %4, %5 in 1 : vector<18x1x8xf32>, vector<18x16x8xf32>, vector<18x1x8xf32> -> vector<18x18x8xf32>
    %7 = vector.extract_strided_slice %6 {offsets = [0, 0, 0], sizes = [16, 16, 8], strides = [1, 1, 1]} : vector<18x18x8xf32> to vector<16x16x8xf32>
    %8 = vector.extract_strided_slice %6 {offsets = [0, 1, 0], sizes = [16, 16, 8], strides = [1, 1, 1]} : vector<18x18x8xf32> to vector<16x16x8xf32>
    %9 = vector.extract_strided_slice %6 {offsets = [0, 2, 0], sizes = [16, 16, 8], strides = [1, 1, 1]} : vector<18x18x8xf32> to vector<16x16x8xf32>
    %10 = vector.extract_strided_slice %6 {offsets = [1, 0, 0], sizes = [16, 16, 8], strides = [1, 1, 1]} : vector<18x18x8xf32> to vector<16x16x8xf32>
    %11 = vector.extract_strided_slice %6 {offsets = [1, 1, 0], sizes = [16, 16, 8], strides = [1, 1, 1]} : vector<18x18x8xf32> to vector<16x16x8xf32>
    %12 = vector.extract_strided_slice %6 {offsets = [1, 2, 0], sizes = [16, 16, 8], strides = [1, 1, 1]} : vector<18x18x8xf32> to vector<16x16x8xf32>
    %13 = vector.extract_strided_slice %6 {offsets = [2, 0, 0], sizes = [16, 16, 8], strides = [1, 1, 1]} : vector<18x18x8xf32> to vector<16x16x8xf32>
    %14 = vector.extract_strided_slice %6 {offsets = [2, 1, 0], sizes = [16, 16, 8], strides = [1, 1, 1]} : vector<18x18x8xf32> to vector<16x16x8xf32>
    %15 = vector.extract_strided_slice %6 {offsets = [2, 2, 0], sizes = [16, 16, 8], strides = [1, 1, 1]} : vector<18x18x8xf32> to vector<16x16x8xf32>
    %16 = tpu.concatenate %7, %8, %9, %10, %11, %12, %13, %14, %15 in 2 : vector<16x16x8xf32>, vector<16x16x8xf32>, vector<16x16x8xf32>, vector<16x16x8xf32>, vector<16x16x8xf32>, vector<16x16x8xf32>, vector<16x16x8xf32>, vector<16x16x8xf32>, vector<16x16x8xf32> -> vector<16x16x72xf32>
    %17 = vector.shape_cast %16 : vector<16x16x72xf32> to vector<256x72xf32>
    %18 = arith.truncf %17 : vector<256x72xf32> to vector<256x72xbf16>
    %c0_4 = arith.constant 0 : index
    %c0_5 = arith.constant 0 : index
    %19 = vector.load %arg2[%c0_4, %c0_5] : memref<72x32xbf16, #tpu.memory_space<vmem>>, vector<72x32xbf16>
    %cst_6 = arith.constant dense<0.000000e+00> : vector<256x32xf32>
    %20 = tpu.matmul %18, %19, %cst_6 {dimension_numbers = #tpu.dot_dimension_numbers<[1], [0], [0], [1], [0, 0, 1, 1], [], []>} : vector<256x72xbf16>, vector<72x32xbf16>, vector<256x32xf32> -> vector<256x32xf32>
    %c0_7 = arith.constant 0 : index
    %c0_8 = arith.constant 0 : index
    %21 = vector.load %arg3[%c0_7, %c0_8] : memref<1x32xf32, #tpu.memory_space<vmem>>, vector<1x32xf32>
    %22 = vector.broadcast %21 : vector<1x32xf32> to vector<256x32xf32>
    %23 = arith.addf %20, %22 : vector<256x32xf32>
    %cst_9 = arith.constant 0.000000e+00 : f32
    %24 = vector.broadcast %cst_9 : f32 to vector<256x32xf32>
    %25 = arith.cmpf oge, %23, %24 : vector<256x32xf32>
    %cst_10 = arith.constant 2.000000e-01 : f32
    %26 = vector.broadcast %cst_10 : f32 to vector<256x32xf32>
    %27 = arith.mulf %26, %23 : vector<256x32xf32>
    %28 = arith.select %25, %23, %27 : vector<256x32xi1>, vector<256x32xf32>
    %29 = arith.mulf %28, %28 : vector<256x32xf32>
    %cst_11 = arith.constant dense<0.000000e+00> : vector<256xf32>
    %30 = vector.multi_reduction <add>, %29, %cst_11 [1] : vector<256x32xf32> to vector<256xf32>
    %31 = vector.shape_cast %30 : vector<256xf32> to vector<256x1xf32>
    %cst_12 = arith.constant 3.200000e+01 : f32
    %32 = vector.broadcast %cst_12 : f32 to vector<256x1xf32>
    %33 = arith.divf %31, %32 : vector<256x1xf32>
    %cst_13 = arith.constant 9.99999993E-9 : f32
    %34 = vector.broadcast %cst_13 : f32 to vector<256x1xf32>
    %35 = arith.addf %33, %34 : vector<256x1xf32>
    %36 = math.rsqrt %35 : vector<256x1xf32>
    %37 = vector.broadcast %36 : vector<256x1xf32> to vector<256x32xf32>
    %38 = arith.mulf %28, %37 : vector<256x32xf32>
    %39 = vector.shape_cast %38 : vector<256x32xf32> to vector<16x16x32xf32>
    %cst_14 = arith.constant 0.000000e+00 : f32
    %40 = vector.broadcast %cst_14 : f32 to vector<1x16x32xf32>
    %41 = tpu.concatenate %40, %39, %40 in 0 : vector<1x16x32xf32>, vector<16x16x32xf32>, vector<1x16x32xf32> -> vector<18x16x32xf32>
    %cst_15 = arith.constant 0.000000e+00 : f32
    %42 = vector.broadcast %cst_15 : f32 to vector<18x1x32xf32>
    %43 = tpu.concatenate %42, %41, %42 in 1 : vector<18x1x32xf32>, vector<18x16x32xf32>, vector<18x1x32xf32> -> vector<18x18x32xf32>
    %44 = vector.extract_strided_slice %43 {offsets = [0, 0, 0], sizes = [16, 16, 32], strides = [1, 1, 1]} : vector<18x18x32xf32> to vector<16x16x32xf32>
    %45 = vector.extract_strided_slice %43 {offsets = [0, 1, 0], sizes = [16, 16, 32], strides = [1, 1, 1]} : vector<18x18x32xf32> to vector<16x16x32xf32>
    %46 = vector.extract_strided_slice %43 {offsets = [0, 2, 0], sizes = [16, 16, 32], strides = [1, 1, 1]} : vector<18x18x32xf32> to vector<16x16x32xf32>
    %47 = vector.extract_strided_slice %43 {offsets = [1, 0, 0], sizes = [16, 16, 32], strides = [1, 1, 1]} : vector<18x18x32xf32> to vector<16x16x32xf32>
    %48 = vector.extract_strided_slice %43 {offsets = [1, 1, 0], sizes = [16, 16, 32], strides = [1, 1, 1]} : vector<18x18x32xf32> to vector<16x16x32xf32>
    %49 = vector.extract_strided_slice %43 {offsets = [1, 2, 0], sizes = [16, 16, 32], strides = [1, 1, 1]} : vector<18x18x32xf32> to vector<16x16x32xf32>
    %50 = vector.extract_strided_slice %43 {offsets = [2, 0, 0], sizes = [16, 16, 32], strides = [1, 1, 1]} : vector<18x18x32xf32> to vector<16x16x32xf32>
    %51 = vector.extract_strided_slice %43 {offsets = [2, 1, 0], sizes = [16, 16, 32], strides = [1, 1, 1]} : vector<18x18x32xf32> to vector<16x16x32xf32>
    %52 = vector.extract_strided_slice %43 {offsets = [2, 2, 0], sizes = [16, 16, 32], strides = [1, 1, 1]} : vector<18x18x32xf32> to vector<16x16x32xf32>
    %53 = tpu.concatenate %44, %45, %46, %47, %48, %49, %50, %51, %52 in 2 : vector<16x16x32xf32>, vector<16x16x32xf32>, vector<16x16x32xf32>, vector<16x16x32xf32>, vector<16x16x32xf32>, vector<16x16x32xf32>, vector<16x16x32xf32>, vector<16x16x32xf32>, vector<16x16x32xf32> -> vector<16x16x288xf32>
    %54 = vector.shape_cast %53 : vector<16x16x288xf32> to vector<256x288xf32>
    %55 = arith.truncf %54 : vector<256x288xf32> to vector<256x288xbf16>
    %c0_16 = arith.constant 0 : index
    %c0_17 = arith.constant 0 : index
    %56 = vector.load %arg4[%c0_16, %c0_17] : memref<288x32xbf16, #tpu.memory_space<vmem>>, vector<288x32xbf16>
    %cst_18 = arith.constant dense<0.000000e+00> : vector<256x32xf32>
    %57 = tpu.matmul %55, %56, %cst_18 {dimension_numbers = #tpu.dot_dimension_numbers<[1], [0], [0], [1], [0, 0, 1, 1], [], []>} : vector<256x288xbf16>, vector<288x32xbf16>, vector<256x32xf32> -> vector<256x32xf32>
    %c0_19 = arith.constant 0 : index
    %c0_20 = arith.constant 0 : index
    %58 = vector.load %arg5[%c0_19, %c0_20] : memref<1x32xf32, #tpu.memory_space<vmem>>, vector<1x32xf32>
    %59 = vector.broadcast %58 : vector<1x32xf32> to vector<256x32xf32>
    %60 = arith.addf %57, %59 : vector<256x32xf32>
    %cst_21 = arith.constant 0.000000e+00 : f32
    %61 = vector.broadcast %cst_21 : f32 to vector<256x32xf32>
    %62 = arith.cmpf oge, %60, %61 : vector<256x32xf32>
    %cst_22 = arith.constant 2.000000e-01 : f32
    %63 = vector.broadcast %cst_22 : f32 to vector<256x32xf32>
    %64 = arith.mulf %63, %60 : vector<256x32xf32>
    %65 = arith.select %62, %60, %64 : vector<256x32xi1>, vector<256x32xf32>
    %66 = arith.mulf %65, %65 : vector<256x32xf32>
    %cst_23 = arith.constant dense<0.000000e+00> : vector<256xf32>
    %67 = vector.multi_reduction <add>, %66, %cst_23 [1] : vector<256x32xf32> to vector<256xf32>
    %68 = vector.shape_cast %67 : vector<256xf32> to vector<256x1xf32>
    %cst_24 = arith.constant 3.200000e+01 : f32
    %69 = vector.broadcast %cst_24 : f32 to vector<256x1xf32>
    %70 = arith.divf %68, %69 : vector<256x1xf32>
    %cst_25 = arith.constant 9.99999993E-9 : f32
    %71 = vector.broadcast %cst_25 : f32 to vector<256x1xf32>
    %72 = arith.addf %70, %71 : vector<256x1xf32>
    %73 = math.rsqrt %72 : vector<256x1xf32>
    %74 = vector.broadcast %73 : vector<256x1xf32> to vector<256x32xf32>
    %75 = arith.mulf %65, %74 : vector<256x32xf32>
    %76 = vector.shape_cast %75 : vector<256x32xf32> to vector<16x16x32xf32>
    %c0_26 = arith.constant 0 : index
    %c0_27 = arith.constant 0 : index
    %c0_28 = arith.constant 0 : index
    %c0_29 = arith.constant 0 : index
    %77 = vector.load %arg6[%c0_26, %c0_27, %c0_28, %c0_29] : memref<1x16x16x32xf32, #tpu.memory_space<vmem>>, vector<1x16x16x32xf32>
    %78 = vector.shape_cast %77 : vector<1x16x16x32xf32> to vector<16x16x32xf32>
    %79 = vector.shape_cast %76 : vector<16x16x32xf32> to vector<1x16x16x32xf32>
    tpu.vector_store %arg6[%c0_26, %c0_27, %c0_28, %c0_29], %79 {strides = array<i32>} : memref<1x16x16x32xf32, #tpu.memory_space<vmem>>, vector<1x16x16x32xf32>,
    return
  }
  func.func @transform_0(%arg0: i32) -> (i32, i32, i32, i32) {
    %c0_i32 = arith.constant 0 : i32
    %c0_i32_0 = arith.constant 0 : i32
    %c0_i32_1 = arith.constant 0 : i32
    %c0_i32_2 = arith.constant 0 : i32
    return %arg0, %c0_i32, %c0_i32_0, %c0_i32_1 : i32, i32, i32, i32
  }
  func.func @transform_1(%arg0: i32) -> (i32, i32) {
    %c0_i32 = arith.constant 0 : i32
    %c0_i32_0 = arith.constant 0 : i32
    %c0_i32_1 = arith.constant 0 : i32
    return %c0_i32, %c0_i32_0 : i32, i32
  }
  func.func @transform_2(%arg0: i32) -> (i32, i32) {
    %c0_i32 = arith.constant 0 : i32
    %c0_i32_0 = arith.constant 0 : i32
    %c0_i32_1 = arith.constant 0 : i32
    return %c0_i32, %c0_i32_0 : i32, i32
  }
  func.func @transform_3(%arg0: i32) -> (i32, i32) {
    %c0_i32 = arith.constant 0 : i32
    %c0_i32_0 = arith.constant 0 : i32
    %c0_i32_1 = arith.constant 0 : i32
    return %c0_i32, %c0_i32_0 : i32, i32
  }
  func.func @transform_4(%arg0: i32) -> (i32, i32) {
    %c0_i32 = arith.constant 0 : i32
    %c0_i32_0 = arith.constant 0 : i32
    %c0_i32_1 = arith.constant 0 : i32
    return %c0_i32, %c0_i32_0 : i32, i32
  }
  func.func @transform_5(%arg0: i32) -> (i32, i32, i32, i32) {
    %c0_i32 = arith.constant 0 : i32
    %c0_i32_0 = arith.constant 0 : i32
    %c0_i32_1 = arith.constant 0 : i32
    %c0_i32_2 = arith.constant 0 : i32
    return %arg0, %c0_i32, %c0_i32_0, %c0_i32_1 : i32, i32, i32, i32
  }
}

</mosaic_0001>

<bundles_post_ra>
// kernel: conv_block_forward.1
= control target key start
LH: loop header
LB: loop body
LE: loop exit
PB: predicated region body
PF: predicated region fallthrough
CT: control target
= control target key end

     0   :  { %10 = vsyncpa [#allocation3], 0  ;;  %s9315_s0 = inlined_call_operand.vmem [shape: bf16[2,16,16,8], index: 0, kind: input, shape index: {}]   ;;  %s9316_s1 = inlined_call_operand.vmem [shape: bf16[72,32], index: 1, kind: input, shape index: {}]   ;;  %s9317_s2 = inlined_call_operand.vmem [shape: f32[1,32], index: 2, kind: input, shape index: {}]   ;;  %s9318_s3 = inlined_call_operand.vmem [shape: bf16[288,32], index: 3, kind: input, shape index: {}]   ;;  %s9319_s4 = inlined_call_operand.vmem [shape: f32[1,32], index: 4, kind: input, shape index: {}]   ;;  %s9320_s5 = inlined_call_operand.hbm [shape: f32[2,16,16,32], index: 5, kind: output, shape index: {}]  }
   0x1   :  { %12 = vsyncpa [#allocation3 + $0x1], 0  ;;  %s6328_s18 = smov 0   ;;  %s6330_s19 = smov 0  }
   0x2   :  { %s6332_s20 = smov 0   ;;  %s6334_s21 = smov 0  }
   0x3 LB: > { %s6349_s22 = sadd.s32 4294967295, %s6284_s21   ;;  %s4526_s23 = sadd.s32 4294967294, %s6284_s21   ;;  %s6284_s21 = sphi %s6334_s21, %s9565_s21   ;;  %s6280_s20 = sphi %s6332_s20, %s9564_s20   ;;  %s6276_s19 = sphi %s6330_s19, %s9563_s19   ;;  %s6272_s18 = sphi %s6328_s18, %s9562_s18  }
   0x4   : > { %s6353_s24 = sadd.s32 1, %s6284_s21   ;;  %s135_s25 = sadd.s32 1, %s6280_s20 }
   0x5   : > { %s132_s26 = ssub.s32 %s6284_s21, %s6353_s24  ;;  %p145_p0 = scmp.ne.s32.totalorder %s6280_s20, %s6276_s19 }
   0x6   : > { %p133_p1 = scmp.eq.s32.totalorder %s132_s26, 0  ;;  %p146_p2 = scmp.eq.s32.totalorder %s6349_s22, 1 }
   0x7   : > { %p151_p3 = scmp.ne.s32.totalorder %s6276_s19, %s6272_s18  ;;  %p152_p4 = scmp.eq.s32.totalorder %s4526_s23, 1 }
   0x8   : > { %s6364_s27 = scalar_select %p133_p1, %s6280_s20, %s135_s25  }
   0x9   : > { %p6366_p5 = por %p146_p2, %p145_p0  ;;  %p6370_p6 = por %p152_p4, %p151_p3 }
   0xa   : > { %p4529_p7 = scmp.ge.s32.totalorder %s6284_s21, 1  ;;  %p190_p8 = scmp.lt.s32.totalorder %s6284_s21, 3 }
   0xc   : > { %p191_p9 = pnand %p4529_p7, %p190_p8 }
   0xe   : > { %194 = sbr.rel (%p191_p9) target bundleno = 1393 (0x571), region = 40 }
  0x15   : > { %vm321_vm0 = vcmask 1040384   ;;  %p218_p10 = scmp.lt.s32.totalorder %s6349_s22, 1  ;;  %v6286_v0 = vmov 0.0   ;;  %vm487_vm1 = vcmask 1046528   ;;  %vm664_vm2 = vcmask 1045504   ;;  %s6287_s10 = smov 8  }
  0x16   : > { %v6377_v1 = vrot.slane %v6286_v0, 7  ;;  %s6288_s11 = smov 16   ;;  %s6289_s12 = smov 24   ;;  %vm1801_vm3 = vcmask 1043456   ;;  %vm1429_vm4 = vcmask 64512   ;;  %vm1462_vm5 = vcmask 130048  }
  0x17   : > { %s219_s30 = scalar_select %p218_p10, %s6349_s22, 1  ;;  %vm1495_vm6 = vcmask 195584   ;;  %vm1528_vm7 = vcmask 261120   ;;  %vm1561_vm8 = vcmask 326656   ;;  %vm1594_vm9 = vcmask 392192  }
  0x18   : > { %9403 = vst [vmem:[#allocation5_spill] sm:$0xff] %v6377_v1  ;;  %v6382_v2 = vsel %vm321_vm0, 0.0, %v6377_v1  ;;  %v438_v3 = vsel %vm321_vm0, %v6377_v1, 0.0  ;;  %v489_v4 = vrot.slane %v6377_v1, 1  ;;  %v666_v5 = vrot.slane %v6377_v1, 2  ;;  %s6290_s25 = smov 32  }
  0x19   : > { %9404 = vst [vmem:[#allocation6_spill] sm:$0xff] %v6382_v2  ;;  %v488_v6 = vrot.slane %v6382_v2, 1  ;;  %v491_v7 = vrot.slane %v438_v3, 1  ;;  %s4595_s6 = sshll.u32 %s219_s30, 7  ;;  %v665_v8 = vrot.slane %v6382_v2, 2  ;;  %v668_v9 = vrot.slane %v438_v3, 2 }
  0x1a   : > { %s6393_s9 = scalar_lea.vmem %s9315_s0, %s4595_s6  ;;  %s6291_s6 = smov 40   ;;  %vm1627_vm10 = vcmask 457728   ;;  %vm1660_vm11 = vcmask 523264   ;;  %vm1752_vm12 = vcmask 588800  }
  0x1b   : > { %v490_v10 = vsel %vm487_vm1, %v488_v6, %v489_v4  ;;  %v492_v11 = vsel %vm487_vm1, %v489_v4, %v491_v7  ;;  %v4661_v12 = vld [vmem:[%s6393_s9 + $0x8] sm:$0xff]   ;;  %v4598_v13 = vld [vmem:[%s6393_s9] sm:$0xff]   ;;  %v4662_v14 = vld [vmem:[%s6393_s9 + $0x10] sm:$0xff]   ;;  %v6401_v15 = vsel %vm664_vm2, %v665_v8, %v666_v5  ;;  %v6404_v16 = vsel %vm664_vm2, %v666_v5, %v668_v9  ;;  %s6293_s13 = smov 56   ;;  %s6294_s14 = smov 64  }
  0x1c   : > { %9405 = vst [vmem:[#allocation7_spill] sm:$0xff] %v6401_v15  ;;  %9406 = vst [vmem:[#allocation8_spill] sm:$0xff] %v6404_v16  ;;  %v6406_v17 = vpack.i.bf16 %v492_v11, %v490_v10  ;;  %v4603_v18 = vunpack.c.l.bf16 %v4661_v12  ;;  %v4604_v19 = vunpack.c.h.bf16 %v4661_v12  ;;  %v4599_v20 = vunpack.c.l.bf16 %v4598_v13  ;;  %v4663_v21 = vld [vmem:[%s6393_s9 + $0x18] sm:$0xff]   ;;  %v4664_v42 = vld [vmem:[%s6393_s9 + $0x20] sm:$0xff]   ;;  %s6295_s8 = smov 96   ;;  %s4596_s17 = sshll.u32 %s6349_s22, 12 }
  0x1d   : > { %v4600_v22 = vunpack.c.h.bf16 %v4598_v13  ;;  %v4607_v23 = vunpack.c.l.bf16 %v4662_v14  ;;  %v4608_v24 = vunpack.c.h.bf16 %v4662_v14  ;;  %v4611_v25 = vunpack.c.l.bf16 %v4663_v21  ;;  %v4665_v55 = vld [vmem:[%s6393_s9 + $0x28] sm:$0xff]   ;;  %v4666_v6 = vld [vmem:[%s6393_s9 + $0x30] sm:$0xff]  }
  0x1e   : > { %9407 = vst [vmem:[#allocation9_spill] sm:$0xff] %v6406_v17  ;;  %4957 = vrot.lane.b32.xlu0 %v6406_v17, %s6287_s10  ;;  %v327_v26 = vrot.slane %v4603_v18, 7  ;;  %v328_v27 = vrot.slane %v4604_v19, 7  ;;  %v324_v28 = vrot.slane %v4599_v20, 7  ;;  %v4612_v29 = vunpack.c.h.bf16 %v4663_v21  ;;  %v4673_v41 = vld [vmem:[%s6393_s9 + $0x68] sm:$0xff]  }
  0x1f   : > { %v325_v30 = vrot.slane %v4600_v22, 7  ;;  %v330_v31 = vrot.slane %v4607_v23, 7  ;;  %v331_v32 = vrot.slane %v4608_v24, 7  ;;  %v333_v33 = vrot.slane %v4611_v25, 7 }
  0x20   : > { %v6412_v34 = vsel %vm321_vm0, %v327_v26, %v328_v27  ;;  %v6415_v35 = vsel %vm321_vm0, 0.0, %v327_v26  ;;  %v6418_v36 = vsel %vm321_vm0, %v328_v27, 0.0  ;;  %v6421_v37 = vsel %vm321_vm0, 0.0, %v324_v28  ;;  %v4667_v26 = vld [vmem:[%s6393_s9 + $0x38] sm:$0xff]  }
  0x21   : > { %v498_v38 = vrot.slane %v6415_v35, 1  ;;  %v499_v39 = vrot.slane %v6412_v34, 1  ;;  %v501_v40 = vrot.slane %v6418_v36, 1  ;;  %v6429_v43 = vsel %vm321_vm0, %v324_v28, %v325_v30 }
  0x22   : > { %v6432_v44 = vsel %vm321_vm0, %v325_v30, 0.0  ;;  %v493_v45 = vrot.slane %v6421_v37, 1  ;;  %v6436_v46 = vsel %vm321_vm0, %v330_v31, %v331_v32  ;;  %v494_v49 = vrot.slane %v6429_v43, 1 }
  0x23   : > { %v500_v47 = vsel %vm487_vm1, %v498_v38, %v499_v39  ;;  %v502_v48 = vsel %vm487_vm1, %v499_v39, %v501_v40  ;;  %v496_v50 = vrot.slane %v6432_v44, 1  ;;  %v6445_v52 = vsel %vm321_vm0, 0.0, %v330_v31 }
  0x24   : > { %v6442_v51 = vpack.i.bf16 %v502_v48, %v500_v47  ;;  %v6448_v53 = vsel %vm321_vm0, %v331_v32, 0.0  ;;  %v504_v54 = vrot.slane %v6436_v46, 1  ;;  %v495_v56 = vsel %vm487_vm1, %v493_v45, %v494_v49 }
  0x25   : > { %v497_v57 = vsel %vm487_vm1, %v494_v49, %v496_v50  ;;  %v503_v58 = vrot.slane %v6445_v52, 1  ;;  %v506_v59 = vrot.slane %v6448_v53, 1  ;;  %v334_v61 = vrot.slane %v4612_v29, 7 }
  0x26   : > { %4967 = vrot.lane.b32.xlu1 %v6442_v51, %s6287_s10  ;;  %v6458_v60 = vpack.i.bf16 %v497_v57, %v495_v56  ;;  %v6461_v62 = vsel %vm321_vm0, 0.0, %v333_v33  ;;  %v4615_v63 = vunpack.c.l.bf16 %v4664_v42  ;;  %v4616_v5 = vunpack.c.h.bf16 %v4664_v42 }
  0x27   : > { %9408 = vst [vmem:[#allocation10_spill] sm:$0xff] %v6461_v62  ;;  %v505_v0 = vsel %vm487_vm1, %v503_v58, %v504_v54  ;;  %v507_v3 = vsel %vm487_vm1, %v504_v54, %v506_v59  ;;  %v508_v4 = vrot.slane %v6461_v62, 1  ;;  %v6472_v8 = vsel %vm321_vm0, %v333_v33, %v334_v61  ;;  %v4668_v58 = vld [vmem:[%s6393_s9 + $0x40] sm:$0xff]  }
  0x28   : > { %4962 = vrot.lane.b32.xlu0 %v6458_v60, %s6287_s10  ;;  %v6469_v7 = vpack.i.bf16 %v507_v3, %v505_v0  ;;  %9410 = vst [vmem:[#allocation12_spill] sm:$0xff] %v6472_v8  ;;  %v6475_v9 = vsel %vm321_vm0, %v334_v61, 0.0  ;;  %v336_v10 = vrot.slane %v4615_v63, 7  ;;  %v509_v11 = vrot.slane %v6472_v8, 1  ;;  %v4669_v3 = vld [vmem:[%s6393_s9 + $0x48] sm:$0xff]  }
  0x29   : > { %v511_v12 = vrot.slane %v6475_v9, 1  ;;  %v337_v13 = vrot.slane %v4616_v5, 7  ;;  %v4619_v14 = vunpack.c.l.bf16 %v4665_v55  ;;  %v4620_v19 = vunpack.c.h.bf16 %v4665_v55 }
  0x2a   : > { %9409 = vst [vmem:[#allocation11_spill] sm:$0xff] %v6469_v7  ;;  %4972 = vrot.lane.b32.xlu1 %v6469_v7, %s6287_s10  ;;  %v6482_v18 = vsel %vm321_vm0, 0.0, %v336_v10  ;;  %v4623_v20 = vunpack.c.l.bf16 %v4666_v6  ;;  %v4624_v21 = vunpack.c.h.bf16 %v4666_v6  ;;  %v510_v22 = vsel %vm487_vm1, %v508_v4, %v509_v11 }
  0x2b   : > { %9411 = vst [vmem:[#allocation13_spill] sm:$0xff] %v6482_v18  ;;  %v512_v23 = vsel %vm487_vm1, %v509_v11, %v511_v12  ;;  %v6487_v24 = vsel %vm321_vm0, %v336_v10, %v337_v13  ;;  %v6490_v25 = vsel %vm321_vm0, %v337_v13, 0.0  ;;  %v513_v28 = vrot.slane %v6482_v18, 1 }
  0x2c   : > { %9412 = vst [vmem:[#allocation14_spill] sm:$0xff] %v6487_v24  ;;  %v6493_v27 = vpack.i.bf16 %v512_v23, %v510_v22  ;;  %v514_v29 = vrot.slane %v6487_v24, 1  ;;  %v516_v30 = vrot.slane %v6490_v25, 1  ;;  %v339_v31 = vrot.slane %v4619_v14, 7  ;;  %v4670_v23 = vld [vmem:[%s6393_s9 + $0x50] sm:$0xff]  }
  0x2d   : > { %v340_v32 = vrot.slane %v4620_v19, 7  ;;  %v342_v33 = vrot.slane %v4623_v20, 7  ;;  %v343_v38 = vrot.slane %v4624_v21, 7  ;;  %v4627_v42 = vunpack.c.l.bf16 %v4667_v26 }
  0x2e   : > { %9413 = vst [vmem:[#allocation15_spill] sm:$0xff] %v6493_v27  ;;  %4977 = vrot.lane.b32.xlu0 %v6493_v27, %s6287_s10  ;;  %v515_v39 = vsel %vm487_vm1, %v513_v28, %v514_v29  ;;  %v517_v40 = vsel %vm487_vm1, %v514_v29, %v516_v30  ;;  %v4628_v45 = vunpack.c.h.bf16 %v4667_v26  ;;  %v6508_v49 = vsel %vm321_vm0, 0.0, %v339_v31 }
  0x2f   : > { %v6502_v47 = vpack.i.bf16 %v517_v40, %v515_v39  ;;  %v6505_v48 = vsel %vm321_vm0, %v339_v31, %v340_v32  ;;  %9416 = vst [vmem:[#allocation18_spill] sm:$0xff] %v6508_v49  ;;  %v6511_v50 = vsel %vm321_vm0, %v340_v32, 0.0  ;;  %v518_v54 = vrot.slane %v6508_v49, 1 }
  0x30   : > { %9415 = vst [vmem:[#allocation17_spill] sm:$0xff] %v6505_v48  ;;  %v519_v55 = vrot.slane %v6505_v48, 1  ;;  %v521_v56 = vrot.slane %v6511_v50, 1  ;;  %v6517_v57 = vsel %vm321_vm0, %v342_v33, %v343_v38  ;;  %v6523_v59 = vsel %vm321_vm0, 0.0, %v342_v33 }
  0x31   : > { %9414 = vst [vmem:[#allocation16_spill] sm:$0xff] %v6502_v47  ;;  %9417 = vst [vmem:[#allocation19_spill] sm:$0xff] %v6517_v57  ;;  %4982 = vrot.lane.b32.xlu1 %v6502_v47, %s6287_s10  ;;  %v6526_v61 = vsel %vm321_vm0, %v343_v38, 0.0  ;;  %v524_v63 = vrot.slane %v6517_v57, 1  ;;  %v345_v0 = vrot.slane %v4627_v42, 7  ;;  %v523_v6 = vrot.slane %v6523_v59, 1 }
  0x32   : > { %9418 = vst [vmem:[#allocation20_spill] sm:$0xff] %v6523_v59  ;;  %v520_v4 = vsel %vm487_vm1, %v518_v54, %v519_v55  ;;  %v522_v5 = vsel %vm487_vm1, %v519_v55, %v521_v56  ;;  %v526_v10 = vrot.slane %v6526_v61, 1  ;;  %v346_v12 = vrot.slane %v4628_v45, 7 }
  0x33   : > { %v6534_v11 = vpack.i.bf16 %v522_v5, %v520_v4  ;;  %v6537_v13 = vsel %vm321_vm0, 0.0, %v345_v0  ;;  %v4631_v14 = vunpack.c.l.bf16 %v4668_v58  ;;  %v525_v19 = vsel %vm487_vm1, %v523_v6, %v524_v63 }
  0x34   : > { %v527_v20 = vsel %vm487_vm1, %v524_v63, %v526_v10  ;;  %v528_v21 = vrot.slane %v6537_v13, 1  ;;  %v4632_v22 = vunpack.c.h.bf16 %v4668_v58  ;;  %v6548_v28 = vsel %vm321_vm0, %v345_v0, %v346_v12  ;;  %v4671_v63 = vld [vmem:[%s6393_s9 + $0x58] sm:$0xff]  }
  0x35   : > { %9419 = vst [vmem:[#allocation21_spill] sm:$0xff] %v6534_v11  ;;  %4987 = vrot.lane.b32.xlu0 %v6534_v11, %s6287_s10  ;;  %v6545_v26 = vpack.i.bf16 %v527_v20, %v525_v19  ;;  %v6551_v29 = vsel %vm321_vm0, %v346_v12, 0.0  ;;  %v348_v30 = vrot.slane %v4631_v14, 7  ;;  %v529_v31 = vrot.slane %v6548_v28, 1 }
  0x36   : > { %v531_v32 = vrot.slane %v6551_v29, 1  ;;  %v349_v33 = vrot.slane %v4632_v22, 7  ;;  %v4635_v38 = vunpack.c.l.bf16 %v4669_v3  ;;  %v4636_v40 = vunpack.c.h.bf16 %v4669_v3 }
  0x37   : > { %9420 = vst [vmem:[#allocation22_spill] sm:$0xff] %v6545_v26  ;;  %4992 = vrot.lane.b32.xlu1 %v6545_v26, %s6287_s10  ;;  %v6558_v39 = vsel %vm321_vm0, 0.0, %v348_v30  ;;  %v4639_v42 = vunpack.c.l.bf16 %v4670_v23  ;;  %v4640_v45 = vunpack.c.h.bf16 %v4670_v23  ;;  %v530_v54 = vsel %vm487_vm1, %v528_v21, %v529_v31 }
  0x38   : > { %v532_v55 = vsel %vm487_vm1, %v529_v31, %v531_v32  ;;  %v6563_v56 = vsel %vm321_vm0, %v348_v30, %v349_v33  ;;  %v6566_v58 = vsel %vm321_vm0, %v349_v33, 0.0  ;;  %v533_v4 = vrot.slane %v6558_v39, 1 }
  0x39   : > { %v6569_v0 = vpack.i.bf16 %v532_v55, %v530_v54  ;;  %v534_v5 = vrot.slane %v6563_v56, 1  ;;  %v536_v3 = vrot.slane %v6566_v58, 1  ;;  %v351_v6 = vrot.slane %v4635_v38, 7 }
  0x3a   : > { %v352_v10 = vrot.slane %v4636_v40, 7  ;;  %v354_v12 = vrot.slane %v4639_v42, 7  ;;  %v355_v14 = vrot.slane %v4640_v45, 7  ;;  %v4643_v21 = vunpack.c.l.bf16 %v4671_v63  ;;  %v4672_v45 = vld [vmem:[%s6393_s9 + $0x60] sm:$0xff]  }
  0x3b   : > { %9421 = vst [vmem:[#allocation23_spill] sm:$0xff] %v6569_v0  ;;  %4997 = vrot.lane.b32.xlu0 %v6569_v0, %s6287_s10  ;;  %v535_v19 = vsel %vm487_vm1, %v533_v4, %v534_v5  ;;  %v537_v20 = vsel %vm487_vm1, %v534_v5, %v536_v3  ;;  %v4644_v22 = vunpack.c.h.bf16 %v4671_v63  ;;  %v6584_v31 = vsel %vm321_vm0, 0.0, %v351_v6 }
  0x3c   : > { %v6578_v23 = vpack.i.bf16 %v537_v20, %v535_v19  ;;  %v6581_v30 = vsel %vm321_vm0, %v351_v6, %v352_v10  ;;  %v6587_v32 = vsel %vm321_vm0, %v352_v10, 0.0  ;;  %v538_v33 = vrot.slane %v6584_v31, 1 }
  0x3d   : > { %v539_v38 = vrot.slane %v6581_v30, 1  ;;  %v541_v40 = vrot.slane %v6587_v32, 1  ;;  %v6593_v42 = vsel %vm321_vm0, %v354_v12, %v355_v14  ;;  %v6599_v54 = vsel %vm321_vm0, 0.0, %v354_v12 }
  0x3e   : > { %9422 = vst [vmem:[#allocation24_spill] sm:$0xff] %v6578_v23  ;;  %5002 = vrot.lane.b32.xlu1 %v6578_v23, %s6287_s10  ;;  %v6602_v55 = vsel %vm321_vm0, %v355_v14, 0.0  ;;  %v544_v63 = vrot.slane %v6593_v42, 1  ;;  %v357_v4 = vrot.slane %v4643_v21, 7  ;;  %v543_v6 = vrot.slane %v6599_v54, 1 }
  0x3f   : > { %v540_v5 = vsel %vm487_vm1, %v538_v33, %v539_v38  ;;  %v542_v3 = vsel %vm487_vm1, %v539_v38, %v541_v40  ;;  %v546_v10 = vrot.slane %v6602_v55, 1  ;;  %v358_v20 = vrot.slane %v4644_v22, 7  ;;  %v4674_v38 = vld [vmem:[%s6393_s9 + $0x70] sm:$0xff]  }
  0x40   : > { %v6609_v19 = vpack.i.bf16 %v542_v3, %v540_v5  ;;  %v6612_v12 = vsel %vm321_vm0, 0.0, %v357_v4  ;;  %v4647_v14 = vunpack.c.l.bf16 %v4672_v45  ;;  %v545_v17 = vsel %vm487_vm1, %v543_v6, %v544_v63 }
  0x41   : > { %v547_v21 = vsel %vm487_vm1, %v544_v63, %v546_v10  ;;  %v548_v33 = vrot.slane %v6612_v12, 1  ;;  %v4648_v2 = vunpack.c.h.bf16 %v4672_v45  ;;  %v6624_v22 = vsel %vm321_vm0, %v357_v4, %v358_v20 }
  0x42   : > { %9423 = vst [vmem:[#allocation25_spill] sm:$0xff] %v6609_v19  ;;  %5007 = vrot.lane.b32.xlu0 %v6609_v19, %s6287_s10  ;;  %v6621_v40 = vpack.i.bf16 %v547_v21, %v545_v17  ;;  %v6627_v5 = vsel %vm321_vm0, %v358_v20, 0.0  ;;  %v360_v3 = vrot.slane %v4647_v14, 7  ;;  %v549_v6 = vrot.slane %v6624_v22, 1 }
  0x43   : > { %v551_v63 = vrot.slane %v6627_v5, 1  ;;  %v361_v10 = vrot.slane %v4648_v2, 7  ;;  %v4651_v1 = vunpack.c.l.bf16 %v4673_v41  ;;  %v4652_v17 = vunpack.c.h.bf16 %v4673_v41 }
  0x44   : > { %9424 = vst [vmem:[#allocation26_spill] sm:$0xff] %v6621_v40  ;;  %5012 = vrot.lane.b32.xlu1 %v6621_v40, %s6287_s10  ;;  %v6634_v45 = vsel %vm321_vm0, 0.0, %v360_v3  ;;  %v4655_v21 = vunpack.c.l.bf16 %v4674_v38  ;;  %v4656_v4 = vunpack.c.h.bf16 %v4674_v38  ;;  %v550_v19 = vsel %vm487_vm1, %v548_v33, %v549_v6 }
  0x45   : > { %v552_v20 = vsel %vm487_vm1, %v549_v6, %v551_v63  ;;  %v6639_v14 = vsel %vm321_vm0, %v360_v3, %v361_v10  ;;  %v6642_v23 = vsel %vm321_vm0, %v361_v10, 0.0  ;;  %v553_v40 = vrot.slane %v6634_v45, 1 }
  0x46   : > { %v6644_v2 = vpack.i.bf16 %v552_v20, %v550_v19  ;;  %v554_v0 = vrot.slane %v6639_v14, 1  ;;  %v556_v41 = vrot.slane %v6642_v23, 1  ;;  %v363_v26 = vrot.slane %v4651_v1, 7 }
  0x47   : > { %v364_v38 = vrot.slane %v4652_v17, 7  ;;  %v366_v11 = vrot.slane %v4655_v21, 7  ;;  %v367_v33 = vrot.slane %v4656_v4, 7  ;;  %v6655_v19 = vpack.i.bf16 %v6404_v16, %v6401_v15 }
  0x48   : > { %9425 = vst [vmem:[#allocation27_spill] sm:$0xff] %v6644_v2  ;;  %5017 = vrot.lane.b32.xlu0 %v6644_v2, %s6287_s10  ;;  %v555_v3 = vsel %vm487_vm1, %v553_v40, %v554_v0  ;;  %v557_v6 = vsel %vm487_vm1, %v554_v0, %v556_v41  ;;  %v670_v63 = vrot.slane %v6421_v37, 2  ;;  %v6664_v17 = vsel %vm321_vm0, 0.0, %v363_v26 }
  0x49   : > { %9426 = vst [vmem:[#allocation28_spill] sm:$0xff] %v6655_v19  ;;  %v6658_v10 = vpack.i.bf16 %v557_v6, %v555_v3  ;;  %v6661_v1 = vsel %vm321_vm0, %v363_v26, %v364_v38  ;;  %v6667_v21 = vsel %vm321_vm0, %v364_v38, 0.0  ;;  %v558_v40 = vrot.slane %v6664_v17, 1 }
  0x4a   : > { %v559_v0 = vrot.slane %v6661_v1, 1  ;;  %v561_v4 = vrot.slane %v6667_v21, 1  ;;  %v6673_v20 = vsel %vm321_vm0, %v366_v11, %v367_v33  ;;  %v6678_v41 = vsel %vm321_vm0, 0.0, %v366_v11 }
  0x4b   : > { %9427 = vst [vmem:[#allocation29_spill] sm:$0xff] %v6658_v10  ;;  %5022 = vrot.lane.b32.xlu1 %v6658_v10, %s6287_s10  ;;  %v6681_v26 = vsel %vm321_vm0, %v367_v33, 0.0  ;;  %v564_v38 = vrot.slane %v6673_v20, 1  ;;  %v671_v3 = vrot.slane %v6429_v43, 2  ;;  %v563_v15 = vrot.slane %v6678_v41, 1 }
  0x4c   : > { %v560_v6 = vsel %vm487_vm1, %v558_v40, %v559_v0  ;;  %v562_v16 = vsel %vm487_vm1, %v559_v0, %v561_v4  ;;  %v566_v2 = vrot.slane %v6681_v26, 1  ;;  %v673_v10 = vrot.slane %v6432_v44, 2 }
  0x4d   : > { %v6689_v47 = vpack.i.bf16 %v562_v16, %v560_v6  ;;  %v672_v11 = vsel %vm664_vm2, %v670_v63, %v671_v3  ;;  %v675_v33 = vrot.slane %v6415_v35, 2  ;;  %v565_v27 = vsel %vm487_vm1, %v563_v15, %v564_v38 }
  0x4e   : > { %v567_v7 = vsel %vm487_vm1, %v564_v38, %v566_v2  ;;  %v676_v40 = vrot.slane %v6412_v34, 2  ;;  %v680_v0 = vrot.slane %v6445_v52, 2  ;;  %v674_v16 = vsel %vm664_vm2, %v671_v3, %v673_v10 }
  0x4f   : > { %9428 = vst [vmem:[#allocation30_spill] sm:$0xff] %v6689_v47  ;;  %5027 = vrot.lane.b32.xlu0 %v6689_v47, %s6287_s10  ;;  %v6700_v4 = vpack.i.bf16 %v567_v7, %v565_v27  ;;  %v681_v63 = vrot.slane %v6436_v46, 2  ;;  %v683_v44 = vrot.slane %v6448_v53, 2  ;;  %v9429_v15 = vrot.slane %v6418_v36, 2 }
  0x50   : > { %v677_v6 = vsel %vm664_vm2, %v675_v33, %v676_v40  ;;  %v685_v38 = vrot.slane %v6461_v62, 2  ;;  %v6712_v47 = vpack.i.bf16 %v674_v16, %v672_v11  ;;  %v686_v27 = vrot.slane %v6472_v8, 2 }
  0x51   : > { %v679_v2 = vsel %vm664_vm2, %v676_v40, %v9429_v15  ;;  %5032 = vrot.lane.b32.xlu1 %v6700_v4, %s6287_s10  ;;  %v682_v7 = vsel %vm664_vm2, %v680_v0, %v681_v63  ;;  %v684_v10 = vsel %vm664_vm2, %v681_v63, %v683_v44  ;;  %v688_v53 = vrot.slane %v6475_v9, 2 }
  0x52   : > { %v690_v3 = vrot.slane %v6482_v18, 2  ;;  %v691_v36 = vrot.slane %v6487_v24, 2  ;;  %v6722_v33 = vpack.i.bf16 %v679_v2, %v677_v6  ;;  %v693_v11 = vrot.slane %v6490_v25, 2 }
  0x53   : > { %5037 = vrot.lane.b32.xlu0 %v6655_v19, %s6288_s11  ;;  %v695_v40 = vrot.slane %v6508_v49, 2  ;;  %v696_v0 = vrot.slane %v6505_v48, 2  ;;  %v687_v16 = vsel %vm664_vm2, %v685_v38, %v686_v27  ;;  %v689_v9 = vsel %vm664_vm2, %v686_v27, %v688_v53 }
  0x54   : > { %v698_v63 = vrot.slane %v6511_v50, 2  ;;  %v6732_v44 = vpack.i.bf16 %v684_v10, %v682_v7  ;;  %v692_v6 = vsel %vm664_vm2, %v690_v3, %v691_v36  ;;  %v694_v15 = vsel %vm664_vm2, %v691_v36, %v693_v11 }
  0x55   : > { %5042 = vrot.lane.b32.xlu1 %v6712_v47, %s6288_s11  ;;  %v700_v25 = vrot.slane %v6523_v59, 2  ;;  %v701_v2 = vrot.slane %v6517_v57, 2  ;;  %v703_v19 = vrot.slane %v6526_v61, 2  ;;  %v6741_v38 = vpack.i.bf16 %v689_v9, %v687_v16 }
  0x56   : > { %v697_v50 = vsel %vm664_vm2, %v695_v40, %v696_v0  ;;  %v699_v7 = vsel %vm664_vm2, %v696_v0, %v698_v63  ;;  %v705_v27 = vrot.slane %v6537_v13, 2  ;;  %v706_v10 = vrot.slane %v6548_v28, 2 }
  0x57   : > { %5047 = vrot.lane.b32.xlu0 %v6722_v33, %s6288_s11  ;;  %v708_v53 = vrot.slane %v6551_v29, 2  ;;  %v6750_v3 = vpack.i.bf16 %v694_v15, %v692_v6  ;;  %v710_v61 = vrot.slane %v6558_v39, 2  ;;  %v711_v36 = vrot.slane %v6563_v56, 2 }
  0x58   : > { %v702_v11 = vsel %vm664_vm2, %v700_v25, %v701_v2  ;;  %v704_v40 = vsel %vm664_vm2, %v701_v2, %v703_v19  ;;  %v713_v0 = vrot.slane %v6566_v58, 2  ;;  %v6759_v16 = vpack.i.bf16 %v699_v7, %v697_v50 }
  0x59   : > { %5052 = vrot.lane.b32.xlu1 %v6732_v44, %s6288_s11  ;;  %v715_v29 = vrot.slane %v6584_v31, 2  ;;  %v716_v9 = vrot.slane %v6581_v30, 2  ;;  %v707_v63 = vsel %vm664_vm2, %v705_v27, %v706_v10  ;;  %v709_v6 = vsel %vm664_vm2, %v706_v10, %v708_v53 }
  0x5a   : > { %v718_v15 = vrot.slane %v6587_v32, 2  ;;  %v6768_v19 = vpack.i.bf16 %v704_v40, %v702_v11  ;;  %v712_v58 = vsel %vm664_vm2, %v710_v61, %v711_v36  ;;  %v714_v25 = vsel %vm664_vm2, %v711_v36, %v713_v0 }
  0x5b   : > { %5057 = vrot.lane.b32.xlu0 %v6741_v38, %s6288_s11  ;;  %v720_v2 = vrot.slane %v6599_v54, 2  ;;  %v721_v50 = vrot.slane %v6593_v42, 2  ;;  %v723_v7 = vrot.slane %v6602_v55, 2  ;;  %v6777_v27 = vpack.i.bf16 %v709_v6, %v707_v63 }
  0x5c   : > { %v717_v32 = vsel %vm664_vm2, %v715_v29, %v716_v9  ;;  %v719_v10 = vsel %vm664_vm2, %v716_v9, %v718_v15  ;;  %v725_v53 = vrot.slane %v6612_v12, 2  ;;  %v726_v61 = vrot.slane %v6624_v22, 2 }
  0x5d   : > { %5062 = vrot.lane.b32.xlu1 %v6750_v3, %s6288_s11  ;;  %v728_v36 = vrot.slane %v6627_v5, 2  ;;  %v6786_v11 = vpack.i.bf16 %v714_v25, %v712_v58  ;;  %v730_v55 = vrot.slane %v6634_v45, 2  ;;  %v731_v40 = vrot.slane %v6639_v14, 2 }
  0x5e   : > { %v733_v0 = vrot.slane %v6642_v23, 2  ;;  %v722_v29 = vsel %vm664_vm2, %v720_v2, %v721_v50  ;;  %v724_v9 = vsel %vm664_vm2, %v721_v50, %v723_v7  ;;  %v6795_v63 = vpack.i.bf16 %v719_v10, %v717_v32 }
  0x5f   : > { %5067 = vrot.lane.b32.xlu0 %v6759_v16, %s6288_s11  ;;  %v735_v5 = vrot.slane %v6664_v17, 2  ;;  %v736_v6 = vrot.slane %v6661_v1, 2  ;;  %v738_v15 = vrot.slane %v6667_v21, 2  ;;  %v727_v58 = vsel %vm664_vm2, %v725_v53, %v726_v61 }
  0x60   : > { %v729_v25 = vsel %vm664_vm2, %v726_v61, %v728_v36  ;;  %v6804_v23 = vpack.i.bf16 %v724_v9, %v722_v29  ;;  %v732_v2 = vsel %vm664_vm2, %v730_v55, %v731_v40  ;;  %v734_v50 = vsel %vm664_vm2, %v731_v40, %v733_v0 }
  0x61   : > { %5072 = vrot.lane.b32.xlu1 %v6768_v19, %s6288_s11  ;;  %v740_v7 = vrot.slane %v6678_v41, 2  ;;  %v741_v32 = vrot.slane %v6673_v20, 2  ;;  %v743_v10 = vrot.slane %v6681_v26, 2  ;;  %v6813_v21 = vpack.i.bf16 %v729_v25, %v727_v58 }
  0x62   : > { %v737_v53 = vsel %vm664_vm2, %v735_v5, %v736_v6  ;;  %v739_v61 = vsel %vm664_vm2, %v736_v6, %v738_v15  ;;  %v6819_v36 = vpack.i.bf16 %v734_v50, %v732_v2  ;;  %v5116_v29 = vpack.i.bf16 %v6429_v43, %v6421_v37  ;;  %v6071_v50 = vld [vmem:[%s9316_s1] sm:$0xff]  }
  0x63   : > { %5077 = vrot.lane.b32.xlu0 %v6777_v27, %s6288_s11  ;;  %v6821_v55 = vpack.i.bf16 %v739_v61, %v737_v53  ;;  %v742_v40 = vsel %vm664_vm2, %v740_v7, %v741_v32  ;;  %v744_v26 = vsel %vm664_vm2, %v741_v32, %v743_v10  ;;  %v5121_v9 = vpack.i.bf16 %v6412_v34, %v6415_v35  ;;  %v6072_v10 = vld [vmem:[%s9316_s1 + $0x8] sm:$0xff]   ;;  %v6073_v61 = vld [vmem:[%s9316_s1 + $0x10] sm:$0xff]  }
  0x64   : > { %v6829_v0 = vpack.i.bf16 %v744_v26, %v742_v40  ;;  %v5126_v5 = vpack.i.bf16 %v6436_v46, %v6445_v52  ;;  %v5131_v6 = vpack.i.bf16 %v6472_v8, %v6461_v62  ;;  %v5136_v15 = vpack.i.bf16 %v6487_v24, %v6482_v18  ;;  %4827 = vmatprep.subr.bf16.mxu0 %v6071_v50  ;;  %v6074_v40 = vld [vmem:[%s9316_s1 + $0x18] sm:$0xff]   ;;  %v6075_v26 = vld [vmem:[%s9316_s1 + $0x20] ss:$0 sps:$4 sm:$0xff]  }
  0x65   : > { %5082 = vrot.lane.b32.xlu1 %v6786_v11, %s6288_s11  ;;  %v6851_v58 = vpack.i.bf16 %v6505_v48, %v6508_v49  ;;  %v6856_v25 = vpack.i.bf16 %v6517_v57, %v6523_v59  ;;  %v6862_v2 = vpack.i.bf16 %v6548_v28, %v6537_v13  ;;  %v6871_v7 = vpack.i.bf16 %v6563_v56, %v6558_v39 }
  0x66   : > { %v6877_v32 = vpack.i.bf16 %v6581_v30, %v6584_v31  ;;  %4828 = vmatpush3.bf16.msra.mxu0 %v6071_v50  ;;  %v6886_v53 = vpack.i.bf16 %v6593_v42, %v6599_v54 }
  0x67   : > { %5087 = vrot.lane.b32.xlu0 %v6795_v63, %s6288_s11  ;;  %4829 = vmatprep.subr.bf16.mxu0 %v6072_v10 }
  0x69   : > { %5092 = vrot.lane.b32.xlu1 %v6804_v23, %s6288_s11 }
  0x6a   : > { %4830 = vmatpush3.bf16.msra.mxu0 %v6072_v10 }
  0x6b   : > { %5097 = vrot.lane.b32.xlu0 %v6813_v21, %s6288_s11  ;;  %4831 = vmatprep.subr.bf16.mxu0 %v6073_v61 }
  0x6d   : > { %5102 = vrot.lane.b32.xlu1 %v6819_v36, %s6288_s11 }
  0x6e   : > { %4832 = vmatpush3.bf16.msra.mxu0 %v6073_v61 }
  0x6f   : > { %5107 = vrot.lane.b32.xlu0 %v6821_v55, %s6288_s11  ;;  %4833 = vmatprep.subr.bf16.mxu0 %v6074_v40 }
  0x71   : > { %5112 = vrot.lane.b32.xlu1 %v6829_v0, %s6288_s11  ;;  %s6292_s11 = smov 48  }
  0x72   : > { %4834 = vmatpush3.bf16.msra.mxu0 %v6074_v40  ;;  %v9433_v40 = vld [vmem:[#allocation16_spill] sm:$0xff] }
  0x73   : > { %5117 = vrot.lane.b32.xlu0 %v5116_v29, %s6289_s12  ;;  %4905 = vmatprep.subr.msk.bf16.mxu0 %vm1801_vm3, %v6075_v26 }
  0x75   : > { %5122 = vrot.lane.b32.xlu1 %v5121_v9, %s6289_s12 }
  0x77   : > { %5127 = vrot.lane.b32.xlu0 %v5126_v5, %s6289_s12 }
  0x79   : > { %5132 = vrot.lane.b32.xlu1 %v5131_v6, %s6289_s12 }
  0x7b   : > { %5137 = vrot.lane.b32.xlu0 %v5136_v15, %s6289_s12 }
  0x7d   : > { %5142 = vrot.lane.b32.xlu1 %v6851_v58, %s6289_s12 }
  0x7f   : > { %5147 = vrot.lane.b32.xlu0 %v6856_v25, %s6289_s12 }
  0x81   : > { %5152 = vrot.lane.b32.xlu1 %v6862_v2, %s6289_s12 }
  0x83   : > { %5157 = vrot.lane.b32.xlu0 %v6871_v7, %s6289_s12 }
  0x85   : > { %5162 = vrot.lane.b32.xlu1 %v6877_v32, %s6289_s12 }
  0x87   : > { %5167 = vrot.lane.b32.xlu0 %v6886_v53, %s6289_s12 }
  0x89   : > { %5172 = vrot.lane.b32.xlu1 %v6458_v60, %s6290_s25  ;;  %v1803_v60 = vsel %vm1801_vm3, %v6075_v26, 0  ;;  %v9435_v26 = vld [vmem:[#allocation21_spill] sm:$0xff] }
  0x8a   : > { %4836 = vmatpush3.bf16.msra.mxu0 %v1803_v60 }
  0x8b   : > { %5177 = vrot.lane.b32.xlu0 %v6442_v51, %s6290_s25 }
  0x8d   : > { %5182 = vrot.lane.b32.xlu1 %v6712_v47, %s6291_s6  ;;  %v9430_v47 = vld [vmem:[#allocation11_spill] sm:$0xff] }
  0x8f   : > { %5187 = vrot.lane.b32.xlu0 %v6722_v33, %s6291_s6 }
  0x90   : > { %v6915_v29 = vpop.permute.xlu0 %4957 }
  0x91   : > { %5192 = vrot.lane.b32.xlu1 %v5121_v9, %s6292_s11 }
  0x93   : > { %5197 = vrot.lane.b32.xlu0 %v5126_v5, %s6292_s11 }
  0x95   : > { %5202 = vrot.lane.b32.xlu1 %v6442_v51, %s6293_s13  ;;  %v9431_v51 = vld [vmem:[#allocation15_spill] sm:$0xff] }
  0x97   : > { %5207 = vrot.lane.b32.xlu0 %v9430_v47, %s6293_s13 }
  0x98   : > { %v6919_v50 = vpop.permute.xlu1 %4967 }
  0x99   : > { %5212 = vrot.lane.b32.xlu1 %v6722_v33, %s6294_s14 }
  0x9a   : > { %v6925_v9 = vpop.permute.xlu0 %4962 }
  0x9b   : > { %5217 = vrot.lane.b32.xlu0 %v6732_v44, %s6294_s14 }
  0x9c   : > { %v6929_v5 = vpop.permute.xlu1 %4972 }
  0x9d   : > { %5222 = vrot.lane.b32.xlu1 %v9430_v47, %s6290_s25 }
  0x9f   : > { %5227 = vrot.lane.b32.xlu0 %v9431_v51, %s6290_s25 }
  0xa0   : > { %v6935_v33 = vpop.permute.xlu0 %4977 }
  0xa1   : > { %5232 = vrot.lane.b32.xlu1 %v6732_v44, %s6291_s6 }
  0xa3   : > { %5237 = vrot.lane.b32.xlu0 %v6741_v38, %s6291_s6  ;;  %v6938_v10 = vpop.permute.xlu1 %4982 }
  0xa5   : > { %5242 = vrot.lane.b32.xlu1 %v5131_v6, %s6292_s11 }
  0xa7   : > { %5247 = vrot.lane.b32.xlu0 %v5136_v15, %s6292_s11  ;;  %v6943_v61 = vpop.permute.xlu0 %4987 }
  0xa8   : > { %9432 = vst [vmem:[#allocation11_spill] sm:$0xff] %v6943_v61  ;;  %v9441_v61 = vld [vmem:[#allocation24_spill] sm:$0xff] }
  0xa9   : > { %5252 = vrot.lane.b32.xlu1 %v9431_v51, %s6293_s13  ;;  %v6947_v44 = vpop.permute.xlu1 %4992 }
  0xaa   : > { %9434 = vst [vmem:[#allocation15_spill] sm:$0xff] %v6947_v44 }
  0xab   : > { %5257 = vrot.lane.b32.xlu0 %v9433_v40, %s6293_s13 }
  0xad   : > { %5262 = vrot.lane.b32.xlu1 %v6741_v38, %s6294_s14  ;;  %v4998_v6 = vpop.permute.xlu0 %4997 }
  0xae   : > { %v4999_v44 = vunpack.i.l.bf16 %v4998_v6 }
  0xaf   : > { %5267 = vrot.lane.b32.xlu0 %v6750_v3, %s6294_s14 }
  0xb0   : > { %v5003_v15 = vpop.permute.xlu1 %5002 }
  0xb1   : > { %5272 = vrot.lane.b32.xlu1 %v9433_v40, %s6290_s25  ;;  %v5005_v24 = vunpack.i.h.bf16 %v5003_v15 }
  0xb3   : > { %5277 = vrot.lane.b32.xlu0 %v9435_v26, %s6290_s25 }
  0xb4   : > { %v5008_v60 = vpop.permute.xlu0 %5007 }
  0xb5   : > { %5282 = vrot.lane.b32.xlu1 %v6750_v3, %s6291_s6  ;;  %v9436_v3 = vld [vmem:[#allocation22_spill] sm:$0xff] }
  0xb6   : > { %v6961_v47 = vpop.permute.xlu1 %5012 }
  0xb7   : > { %5287 = vrot.lane.b32.xlu0 %v6759_v16, %s6291_s6 }
  0xb9   : > { %5292 = vrot.lane.b32.xlu1 %v6851_v58, %s6292_s11 }
  0xba   : > { %v6967_v38 = vpop.permute.xlu0 %5017 }
  0xbb   : > { %5297 = vrot.lane.b32.xlu0 %v6856_v25, %s6292_s11 }
  0xbd   : > { %5302 = vrot.lane.b32.xlu1 %v9435_v26, %s6293_s13  ;;  %v6971_v51 = vpop.permute.xlu1 %5022  ;;  %v9437_v26 = vld [vmem:[#allocation23_spill] sm:$0xff] }
  0xbf   : > { %5307 = vrot.lane.b32.xlu0 %v9436_v3, %s6293_s13 }
  0xc1   : > { %v6975_v40 = vpop.permute.xlu0 %5027  ;;  %5312 = vrot.lane.b32.xlu1 %v6759_v16, %s6294_s14 }
  0xc3   : > { %5317 = vrot.lane.b32.xlu0 %v6768_v19, %s6294_s14  ;;  %v6981_v58 = vpop.permute.xlu1 %5032 }
  0xc5   : > { %v6983_v25 = vpop.permute.xlu0 %5037  ;;  %5322 = vrot.lane.b32.xlu1 %v9436_v3, %s6290_s25 }
  0xc7   : > { %5327 = vrot.lane.b32.xlu0 %v9437_v26, %s6290_s25  ;;  %v6989_v59 = vpop.permute.xlu1 %5042 }
  0xc9   : > { %v6991_v57 = vpop.permute.xlu0 %5047  ;;  %5332 = vrot.lane.b32.xlu1 %v6768_v19, %s6291_s6  ;;  %v5000_v19 = vunpack.i.h.bf16 %v4998_v6  ;;  %v1446_v6 = vsel %vm1429_vm4, %v6537_v13, %v4999_v44  ;;  %v5015_v44 = vunpack.i.h.bf16 %v6961_v47 }
  0xcb   : > { %5337 = vrot.lane.b32.xlu0 %v6777_v27, %s6291_s6  ;;  %v6997_v16 = vpop.permute.xlu1 %5052 }
  0xcd   : > { %v6999_v49 = vpop.permute.xlu0 %5057  ;;  %5342 = vrot.lane.b32.xlu1 %v6862_v2, %s6292_s11  ;;  %v5004_v2 = vunpack.i.l.bf16 %v5003_v15 }
  0xce   : > { %9438 = vst [vmem:[#allocation16_spill] sm:$0xff] %v6999_v49  ;;  %v5009_v49 = vunpack.i.l.bf16 %v5008_v60 }
  0xcf   : > { %5347 = vrot.lane.b32.xlu0 %v6871_v7, %s6292_s11  ;;  %v7005_v3 = vpop.permute.xlu1 %5062  ;;  %v1448_v13 = vsel %vm1429_vm4, %v6558_v39, %v5004_v2 }
  0xd0   : > { %9439 = vst [vmem:[#allocation21_spill] sm:$0xff] %v7005_v3  ;;  %v5010_v3 = vunpack.i.h.bf16 %v5008_v60  ;;  %v5014_v60 = vunpack.i.l.bf16 %v6961_v47  ;;  %v1450_v39 = vsel %vm1429_vm4, %v6584_v31, %v5009_v49  ;;  %v5019_v47 = vunpack.i.l.bf16 %v6967_v38 }
  0xd1   : > { %v7007_v48 = vpop.permute.xlu0 %5067  ;;  %5352 = vrot.lane.b32.xlu1 %v9437_v26, %s6293_s13  ;;  %v1447_v26 = vsel %vm1429_vm4, %v6548_v28, %v5000_v19  ;;  %v1449_v28 = vsel %vm1429_vm4, %v6563_v56, %v5005_v24  ;;  %v5020_v56 = vunpack.i.h.bf16 %v6967_v38  ;;  %v5025_v31 = vunpack.i.h.bf16 %v6971_v51 }
  0xd2   : > { %9440 = vst [vmem:[#allocation22_spill] sm:$0xff] %v7007_v48  ;;  %v1451_v24 = vsel %vm1429_vm4, %v6581_v30, %v5010_v3  ;;  %v1453_v30 = vsel %vm1429_vm4, %v6593_v42, %v5015_v44  ;;  %v1452_v49 = vsel %vm1429_vm4, %v6599_v54, %v5014_v60  ;;  %v5024_v38 = vunpack.i.l.bf16 %v6971_v51 }
  0xd3   : > { %5357 = vrot.lane.b32.xlu0 %v9441_v61, %s6293_s13  ;;  %v7013_v18 = vpop.permute.xlu1 %5072  ;;  %v1455_v42 = vsel %vm1429_vm4, %v6624_v22, %v5020_v56  ;;  %v1454_v54 = vsel %vm1429_vm4, %v6612_v12, %v5019_v47  ;;  %v5030_v51 = vunpack.i.h.bf16 %v6975_v40  ;;  %v5029_v44 = vunpack.i.l.bf16 %v6975_v40 }
  0xd4   : > { %9442 = vst [vmem:[#allocation23_spill] sm:$0xff] %v7013_v18  ;;  %v1457_v56 = vsel %vm1429_vm4, %v6639_v14, %v5025_v31  ;;  %v1456_v47 = vsel %vm1429_vm4, %v6634_v45, %v5024_v38  ;;  %v5035_v40 = vunpack.i.h.bf16 %v6981_v58 }
  0xd5   : > { %v5078_v62 = vpop.permute.xlu0 %5077  ;;  %5362 = vrot.lane.b32.xlu1 %v6777_v27, %s6294_s14  ;;  %v1459_v31 = vsel %vm1429_vm4, %v6661_v1, %v5030_v51  ;;  %v1458_v38 = vsel %vm1429_vm4, %v6664_v17, %v5029_v44 }
  0xd6   : > { %v5080_v7 = vunpack.i.h.bf16 %v5078_v62  ;;  %v5079_v48 = vunpack.i.l.bf16 %v5078_v62 }
  0xd7   : > { %5367 = vrot.lane.b32.xlu0 %v6786_v11, %s6294_s14  ;;  %v5083_v18 = vpop.permute.xlu1 %5082 }
  0xd8   : > { %v7024_v15 = vsel %vm1462_vm5, %v1446_v6, %v5079_v48  ;;  %v7027_v8 = vsel %vm1462_vm5, %v1447_v26, %v5080_v7  ;;  %v5085_v27 = vunpack.i.h.bf16 %v5083_v18  ;;  %v5084_v62 = vunpack.i.l.bf16 %v5083_v18 }
  0xd9   : > { %v5088_v19 = vpop.permute.xlu0 %5087  ;;  %5372 = vrot.lane.b32.xlu1 %v9441_v61, %s6290_s25  ;;  %v9443_v61 = vld [vmem:[#allocation25_spill] sm:$0xff] }
  0xda   : > { %v7038_v48 = vsel %vm1462_vm5, %v1449_v28, %v5085_v27  ;;  %v7041_v7 = vsel %vm1462_vm5, %v1448_v13, %v5084_v62  ;;  %v5090_v18 = vunpack.i.h.bf16 %v5088_v19  ;;  %v5089_v26 = vunpack.i.l.bf16 %v5088_v19 }
  0xdb   : > { %5377 = vrot.lane.b32.xlu0 %v9443_v61, %s6290_s25  ;;  %v5093_v2 = vpop.permute.xlu1 %5092 }
  0xdc   : > { %v7052_v6 = vsel %vm1462_vm5, %v1450_v39, %v5089_v26  ;;  %v7055_v27 = vsel %vm1462_vm5, %v1451_v24, %v5090_v18  ;;  %v5095_v62 = vunpack.i.h.bf16 %v5093_v2  ;;  %v5094_v28 = vunpack.i.l.bf16 %v5093_v2 }
  0xdd   : > { %9444 = vst [vmem:[#allocation24_spill] sm:$0xff] %v7052_v6  ;;  %9445 = vst [vmem:[#allocation25_spill] sm:$0xff] %v7055_v27  ;;  %v5098_v3 = vpop.permute.xlu0 %5097  ;;  %5382 = vrot.lane.b32.xlu1 %v6786_v11, %s6291_s6 }
  0xde   : > { %v7066_v13 = vsel %vm1462_vm5, %v1453_v30, %v5095_v62  ;;  %v7069_v19 = vsel %vm1462_vm5, %v1452_v49, %v5094_v28  ;;  %v5100_v18 = vunpack.i.h.bf16 %v5098_v3  ;;  %v5099_v26 = vunpack.i.l.bf16 %v5098_v3 }
  0xdf   : > { %9446 = vst [vmem:[#allocation31_spill] sm:$0xff] %v7066_v13  ;;  %9447 = vst [vmem:[#allocation32_spill] sm:$0xff] %v7069_v19  ;;  %5387 = vrot.lane.b32.xlu0 %v6795_v63, %s6291_s6  ;;  %v5103_v11 = vpop.permute.xlu1 %5102  ;;  %v5034_v62 = vunpack.i.l.bf16 %v6981_v58 }
  0xe0   : > { %v7080_v60 = vsel %vm1462_vm5, %v1454_v54, %v5099_v26  ;;  %v7083_v24 = vsel %vm1462_vm5, %v1455_v42, %v5100_v18  ;;  %v5105_v39 = vunpack.i.h.bf16 %v5103_v11  ;;  %v5104_v2 = vunpack.i.l.bf16 %v5103_v11 }
  0xe1   : > { %9448 = vst [vmem:[#allocation33_spill] sm:$0xff] %v7080_v60  ;;  %9449 = vst [vmem:[#allocation34_spill] sm:$0xff] %v7083_v24  ;;  %v5108_v28 = vpop.permute.xlu0 %5107  ;;  %5392 = vrot.lane.b32.xlu1 %v6877_v32, %s6292_s11  ;;  %v1461_v11 = vsel %vm1429_vm4, %v6673_v20, %v5035_v40  ;;  %v1460_v51 = vsel %vm1429_vm4, %v6678_v41, %v5034_v62 }
  0xe2   : > { %v7094_v30 = vsel %vm1462_vm5, %v1457_v56, %v5105_v39  ;;  %v7097_v49 = vsel %vm1462_vm5, %v1456_v47, %v5104_v2  ;;  %v5110_v3 = vunpack.i.h.bf16 %v5108_v28  ;;  %v5109_v18 = vunpack.i.l.bf16 %v5108_v28  ;;  %v9456_v2 = vld [vmem:[#allocation26_spill] sm:$0xff] }
  0xe3   : > { %9450 = vst [vmem:[#allocation35_spill] sm:$0xff] %v7094_v30  ;;  %9451 = vst [vmem:[#allocation36_spill] sm:$0xff] %v7097_v49  ;;  %5397 = vrot.lane.b32.xlu0 %v6886_v53, %s6292_s11  ;;  %v5113_v58 = vpop.permute.xlu1 %5112 }
  0xe4   : > { %v7106_v32 = vsel %vm1462_vm5, %v1458_v38, %v5109_v18  ;;  %v7109_v26 = vsel %vm1462_vm5, %v1459_v31, %v5110_v3  ;;  %v5115_v42 = vunpack.i.h.bf16 %v5113_v58  ;;  %v5114_v54 = vunpack.i.l.bf16 %v5113_v58 }
  0xe5   : > { %9452 = vst [vmem:[#allocation37_spill] sm:$0xff] %v7106_v32  ;;  %9453 = vst [vmem:[#allocation38_spill] sm:$0xff] %v7109_v26  ;;  %v7115_v39 = vpop.permute.xlu0 %5117  ;;  %5402 = vrot.lane.b32.xlu1 %v9443_v61, %s6293_s13  ;;  %v5421_v61 = vpack.i.bf16 %v6624_v22, %v6612_v12  ;;  %v4675_v22 = vld [vmem:[%s6393_s9 + $0x78] sm:$0xff]   ;;  %v5451_v31 = vpack.i.bf16 %v6639_v14, %v6634_v45  ;;  %v5044_v32 = vunpack.i.l.bf16 %v6989_v59 }
  0xe6   : > { %v7120_v53 = vsel %vm1462_vm5, %v1461_v11, %v5115_v42  ;;  %v7123_v44 = vsel %vm1462_vm5, %v1460_v51, %v5114_v54  ;;  %v4659_v58 = vunpack.c.l.bf16 %v4675_v22  ;;  %v4660_v42 = vunpack.c.h.bf16 %v4675_v22 }
  0xe7   : > { %9454 = vst [vmem:[#allocation39_spill] sm:$0xff] %v7120_v53  ;;  %9455 = vst [vmem:[#allocation40_spill] sm:$0xff] %v7123_v44  ;;  %5407 = vrot.lane.b32.xlu0 %v9456_v2, %s6293_s13  ;;  %v7127_v56 = vpop.permute.xlu1 %5122  ;;  %v4959_v11 = vunpack.i.l.bf16 %v6915_v29  ;;  %v7179_v22 = vpack.i.bf16 %v6661_v1, %v6664_v17  ;;  %v4964_v44 = vunpack.i.l.bf16 %v6925_v9  ;;  %v9460_v53 = vld [vmem:[#allocation6_spill] sm:$0xff]  ;;  %v5119_v49 = vunpack.i.l.bf16 %v7115_v39 }
  0xe8   : > { %v369_v45 = vrot.slane %v4659_v58, 7  ;;  %v370_v14 = vrot.slane %v4660_v42, 7  ;;  %v9459_v58 = vld [vmem:[#allocation5_spill] sm:$0xff]  ;;  %v5125_v24 = vunpack.i.h.bf16 %v7127_v56 }
  0xe9   : > { %v7129_v47 = vpop.permute.xlu0 %5127  ;;  %5412 = vrot.lane.b32.xlu1 %v6795_v63, %s6294_s14  ;;  %v9457_v63 = vld [vmem:[#allocation27_spill] sm:$0xff]  ;;  %v1430_v26 = vsel %vm1429_vm4, %v9460_v53, %v4959_v11  ;;  %v5045_v11 = vunpack.i.h.bf16 %v6989_v59 }
  0xea   : > { %v7195_v17 = vsel %vm321_vm0, 0.0, %v369_v45 }
  0xeb   : > { %5417 = vrot.lane.b32.xlu0 %v6804_v23, %s6294_s14  ;;  %v7137_v40 = vpop.permute.xlu1 %5132 }
  0xed   : > { %v7139_v62 = vpop.permute.xlu0 %5137  ;;  %5422 = vrot.lane.b32.xlu1 %v5421_v61, %s6289_s12 }
  0xef   : > { %5427 = vrot.lane.b32.xlu0 %v9456_v2, %s6290_s25  ;;  %v7144_v28 = vpop.permute.xlu1 %5142 }
  0xf1   : > { %v7146_v3 = vpop.permute.xlu0 %5147  ;;  %5432 = vrot.lane.b32.xlu1 %v9457_v63, %s6290_s25 }
  0xf3   : > { %5437 = vrot.lane.b32.xlu0 %v6804_v23, %s6291_s6  ;;  %v7152_v12 = vpop.permute.xlu1 %5152  ;;  %v4960_v23 = vunpack.i.h.bf16 %v6915_v29  ;;  %v4965_v29 = vunpack.i.h.bf16 %v6925_v9  ;;  %v5040_v9 = vunpack.i.h.bf16 %v6983_v25 }
  0xf5   : > { %v7155_v18 = vpop.permute.xlu0 %5157  ;;  %5442 = vrot.lane.b32.xlu1 %v6813_v21, %s6291_s6  ;;  %v1431_v42 = vsel %vm1429_vm4, %v9459_v58, %v4960_v23  ;;  %v7203_v23 = vsel %vm321_vm0, %v370_v14, 0.0 }
  0xf7   : > { %5447 = vrot.lane.b32.xlu0 %v5421_v61, %s6292_s11  ;;  %v7162_v38 = vpop.permute.xlu1 %5162  ;;  %v9458_v61 = vld [vmem:[#allocation29_spill] sm:$0xff] }
  0xf9   : > { %v7164_v54 = vpop.permute.xlu0 %5167  ;;  %5452 = vrot.lane.b32.xlu1 %v5451_v31, %s6292_s11 }
  0xfb   : > { %5457 = vrot.lane.b32.xlu0 %v9457_v63, %s6293_s13  ;;  %v7171_v51 = vpop.permute.xlu1 %5172  ;;  %v7185_v63 = vpack.i.bf16 %v6673_v20, %v6678_v41  ;;  %v5039_v20 = vunpack.i.l.bf16 %v6983_v25  ;;  %v7200_v41 = vsel %vm321_vm0, %v369_v45, %v370_v14  ;;  %v1433_v45 = vsel %vm1429_vm4, %v6429_v43, %v4965_v29 }
  0xfc   : > { %v1432_v14 = vsel %vm1429_vm4, %v6421_v37, %v4964_v44  ;;  %v1464_v43 = vsel %vm1462_vm5, %v1431_v42, %v5040_v9  ;;  %v5175_v37 = vunpack.i.h.bf16 %v7171_v51  ;;  %v5174_v44 = vunpack.i.l.bf16 %v7171_v51 }
  0xfd   : > { %v7173_v2 = vpop.permute.xlu0 %5177  ;;  %5462 = vrot.lane.b32.xlu1 %v9458_v61, %s6293_s13  ;;  %v1463_v29 = vsel %vm1462_vm5, %v1430_v26, %v5039_v20  ;;  %v1465_v59 = vsel %vm1462_vm5, %v1432_v14, %v5044_v32 }
  0xfe   : > { %v5180_v42 = vunpack.i.h.bf16 %v7173_v2  ;;  %v5179_v26 = vunpack.i.l.bf16 %v7173_v2 }
  0xff   : > { %5467 = vrot.lane.b32.xlu0 %v6813_v21, %s6294_s14  ;;  %v5183_v1 = vpop.permute.xlu1 %5182  ;;  %v5120_v21 = vunpack.i.h.bf16 %v7115_v39  ;;  %v5124_v39 = vunpack.i.l.bf16 %v7127_v56  ;;  %v1466_v56 = vsel %vm1462_vm5, %v1433_v45, %v5045_v11 }
 0x100   : > { %v5185_v9 = vunpack.i.h.bf16 %v5183_v1  ;;  %v5184_v20 = vunpack.i.l.bf16 %v5183_v1  ;;  %v1499_v32 = vsel %vm1495_vm6, %v1466_v56, %v5125_v24 }
 0x101   : > { %v5188_v30 = vpop.permute.xlu0 %5187  ;;  %5472 = vrot.lane.b32.xlu1 %v6819_v36, %s6294_s14  ;;  %v1497_v13 = vsel %vm1495_vm6, %v1464_v43, %v5120_v21  ;;  %v1498_v51 = vsel %vm1495_vm6, %v1465_v59, %v5124_v39  ;;  %v9461_v59 = vld [vmem:[#allocation30_spill] sm:$0xff] }
 0x102   : > { %v5190_v11 = vunpack.i.h.bf16 %v5188_v30  ;;  %v5189_v45 = vunpack.i.l.bf16 %v5188_v30  ;;  %v1530_v14 = vsel %vm1528_vm7, %v1497_v13, %v5175_v37  ;;  %v1531_v24 = vsel %vm1528_vm7, %v1498_v51, %v5179_v26 }
 0x103   : > { %5477 = vrot.lane.b32.xlu0 %v5451_v31, %s6289_s12  ;;  %v5193_v60 = vpop.permute.xlu1 %5192  ;;  %v1496_v31 = vsel %vm1495_vm6, %v1463_v29, %v5119_v49  ;;  %v1532_v30 = vsel %vm1528_vm7, %v1499_v32, %v5180_v42  ;;  %v1563_v39 = vsel %vm1561_vm8, %v1530_v14, %v5185_v9 }
 0x104   : > { %v1529_v21 = vsel %vm1528_vm7, %v1496_v31, %v5174_v44  ;;  %v5195_v43 = vunpack.i.h.bf16 %v5193_v60  ;;  %v5194_v29 = vunpack.i.l.bf16 %v5193_v60  ;;  %v1564_v13 = vsel %vm1561_vm8, %v1531_v24, %v5189_v45 }
 0x105   : > { %v5198_v27 = vpop.permute.xlu0 %5197  ;;  %5482 = vrot.lane.b32.xlu1 %v7179_v22, %s6289_s12  ;;  %v1565_v60 = vsel %vm1561_vm8, %v1532_v30, %v5190_v11  ;;  %v1043_v24 = vrot.slane %v7203_v23, 2 }
 0x106   : > { %v5200_v2 = vunpack.i.h.bf16 %v5198_v27  ;;  %v5199_v25 = vunpack.i.l.bf16 %v5198_v27  ;;  %v1596_v42 = vsel %vm1594_vm9, %v1563_v39, %v5195_v43 }
 0x107   : > { %5487 = vrot.lane.b32.xlu0 %v9458_v61, %s6290_s25  ;;  %v5203_v49 = vpop.permute.xlu1 %5202  ;;  %v1562_v61 = vsel %vm1561_vm8, %v1529_v21, %v5184_v20 }
 0x108   : > { %v5205_v1 = vunpack.i.h.bf16 %v5203_v49  ;;  %v5204_v19 = vunpack.i.l.bf16 %v5203_v49  ;;  %v1595_v26 = vsel %vm1594_vm9, %v1562_v61, %v5194_v29  ;;  %v1597_v20 = vsel %vm1594_vm9, %v1564_v13, %v5199_v25 }
 0x109   : > { %v5208_v6 = vpop.permute.xlu0 %5207  ;;  %5492 = vrot.lane.b32.xlu1 %v9461_v59, %s6290_s25  ;;  %v1598_v9 = vsel %vm1594_vm9, %v1565_v60, %v5200_v2  ;;  %v1040_v29 = vrot.slane %v7195_v17, 2  ;;  %v9462_v61 = vunpack.i.h.bf16 %v6919_v50  ;;  %v4975_v13 = vunpack.i.h.bf16 %v6929_v5 }
 0x10a   : > { %v5210_v37 = vunpack.i.h.bf16 %v5208_v6  ;;  %v5209_v27 = vunpack.i.l.bf16 %v5208_v6  ;;  %v1628_v6 = vsel %vm1627_vm10, %v1595_v26, %v5204_v19  ;;  %v1629_v32 = vsel %vm1627_vm10, %v1596_v42, %v5205_v1 }
 0x10b   : > { %5497 = vrot.lane.b32.xlu0 %v6819_v36, %s6291_s6  ;;  %v5213_v44 = vpop.permute.xlu1 %5212  ;;  %v1041_v1 = vrot.slane %v7200_v41, 2  ;;  %v1435_v39 = vsel %vm1429_vm4, %v6412_v34, %v9462_v61  ;;  %v4974_v60 = vunpack.i.l.bf16 %v6929_v5  ;;  %v9466_v26 = vrot.slane %v7203_v23, 1 }
 0x10c   : > { %v5215_v56 = vunpack.i.h.bf16 %v5213_v44  ;;  %v5214_v31 = vunpack.i.l.bf16 %v5213_v44  ;;  %v1630_v21 = vsel %vm1627_vm10, %v1597_v20, %v5209_v27  ;;  %v1631_v25 = vsel %vm1627_vm10, %v1598_v9, %v5210_v37 }
 0x10d   : > { %v5218_v51 = vpop.permute.xlu0 %5217  ;;  %5502 = vrot.lane.b32.xlu1 %v6821_v55, %s6291_s6  ;;  %v9463_v37 = vunpack.i.l.bf16 %v6919_v50  ;;  %v5049_v42 = vunpack.i.l.bf16 %v6991_v57  ;;  %v1044_v20 = vsel %vm664_vm2, %v1041_v1, %v1043_v24  ;;  %v5055_v9 = vunpack.i.h.bf16 %v6997_v16 }
 0x10e   : > { %v5220_v36 = vunpack.i.h.bf16 %v5218_v51  ;;  %v5219_v11 = vunpack.i.l.bf16 %v5218_v51  ;;  %v1661_v45 = vsel %vm1660_vm11, %v1628_v6, %v5214_v31  ;;  %v1662_v49 = vsel %vm1660_vm11, %v1629_v32, %v5215_v56 }
 0x10f   : > { %5507 = vrot.lane.b32.xlu0 %v7179_v22, %s6292_s11  ;;  %v5223_v14 = vpop.permute.xlu1 %5222  ;;  %v1693_v43 = vpack.c.bf16 %v1662_v49, %v1661_v45  ;;  %v1434_v27 = vsel %vm1429_vm4, %v6415_v35, %v9463_v37  ;;  %v9464_v56 = vrot.slane %v7200_v41, 1  ;;  %v9465_v31 = vrot.slane %v7195_v17, 1 }
 0x110   : > { %v1663_v19 = vsel %vm1660_vm11, %v1630_v21, %v5219_v11  ;;  %v1664_v2 = vsel %vm1660_vm11, %v1631_v25, %v5220_v36  ;;  %v5050_v35 = vunpack.i.h.bf16 %v6991_v57  ;;  %v5054_v51 = vunpack.i.l.bf16 %v6997_v16 }
 0x111   : > { %v7269_v30 = vpop.permute.xlu0 %5227  ;;  %5512 = vrot.lane.b32.xlu1 %v7185_v63, %s6292_s11  ;;  %4837 = vmatprep.mubr.msk.bf16.mxu0 %vm1752_vm12, %v1693_v43  ;;  %v1694_v22 = vpack.c.bf16 %v1664_v2, %v1663_v19  ;;  %v941_v34 = vsel %vm487_vm1, %v9465_v31, %v9464_v56  ;;  %v9467_v5 = vmov %v9464_v56  ;;  %v5130_v6 = vunpack.i.h.bf16 %v7129_v47 }
 0x112   : > { %v943_v50 = vsel %vm487_vm1, %v9467_v5, %v9466_v26  ;;  %v5129_v23 = vunpack.i.l.bf16 %v7129_v47  ;;  %v1437_v36 = vsel %vm1429_vm4, %v6436_v46, %v4975_v13  ;;  %v1436_v57 = vsel %vm1429_vm4, %v6445_v52, %v4974_v60 }
 0x113   : > { %5517 = vrot.lane.b32.xlu0 %v9461_v59, %s6293_s13  ;;  %4838 = vmatmul.mubr.msk.bf16.vlgmr.msra.gmra.mrb[0].mxu0 %vm1752_vm12, %v1694_v22  ;;  %v5233_v44 = vpop.permute.xlu1 %5232  ;;  %v1042_v59 = vsel %vm664_vm2, %v1040_v29, %v1041_v1  ;;  %v7313_v11 = vpack.i.bf16 %v7200_v41, %v7195_v17  ;;  %v5135_v16 = vunpack.i.h.bf16 %v7137_v40  ;;  %v5134_v45 = vunpack.i.l.bf16 %v7137_v40 }
 0x114   : > { %v7319_v49 = vpack.i.bf16 %v943_v50, %v941_v34  ;;  %v7321_v21 = vpack.i.bf16 %v1044_v20, %v1042_v59  ;;  %v1468_v46 = vsel %vm1462_vm5, %v1435_v39, %v5050_v35  ;;  %v1467_v52 = vsel %vm1462_vm5, %v1434_v27, %v5049_v42 }
 0x115   : > { %v5238_v32 = vpop.permute.xlu0 %5237  ;;  %5522 = vrot.lane.b32.xlu1 %v6700_v4, %s6293_s13  ;;  %v5225_v25 = vunpack.i.h.bf16 %v5223_v14  ;;  %v5224_v43 = vunpack.i.l.bf16 %v5223_v14  ;;  %v1470_v17 = vsel %vm1462_vm5, %v1437_v36, %v5055_v9  ;;  %v1469_v41 = vsel %vm1462_vm5, %v1436_v57, %v5054_v51 }
 0x116   : > { %v1500_v40 = vsel %vm1495_vm6, %v1467_v52, %v5129_v23  ;;  %v1501_v29 = vsel %vm1495_vm6, %v1468_v46, %v5130_v6  ;;  %v5230_v19 = vunpack.i.h.bf16 %v7269_v30  ;;  %v5229_v2 = vunpack.i.l.bf16 %v7269_v30 }
 0x117   : > { %5527 = vrot.lane.b32.xlu0 %v6821_v55, %s6294_s14  ;;  %v5243_v47 = vpop.permute.xlu1 %5242  ;;  %v5235_v1 = vunpack.i.h.bf16 %v5233_v44  ;;  %v5234_v24 = vunpack.i.l.bf16 %v5233_v44  ;;  %v1502_v14 = vsel %vm1495_vm6, %v1469_v41, %v5134_v45  ;;  %v1503_v22 = vsel %vm1495_vm6, %v1470_v17, %v5135_v16 }
 0x118   : > { %v5240_v61 = vunpack.i.h.bf16 %v5238_v32  ;;  %v5239_v39 = vunpack.i.l.bf16 %v5238_v32  ;;  %v1533_v60 = vsel %vm1528_vm7, %v1500_v40, %v5224_v43  ;;  %v1534_v37 = vsel %vm1528_vm7, %v1501_v29, %v5225_v25 }
 0x119   : > { %v5248_v55 = vpop.permute.xlu0 %5247  ;;  %5532 = vrot.lane.b32.xlu1 %v6829_v0, %s6294_s14  ;;  %v5245_v27 = vunpack.i.h.bf16 %v5243_v47  ;;  %v5244_v56 = vunpack.i.l.bf16 %v5243_v47  ;;  %v1536_v5 = vsel %vm1528_vm7, %v1503_v22, %v5230_v19  ;;  %v1535_v50 = vsel %vm1528_vm7, %v1502_v14, %v5229_v2 }
 0x11a   : > { %v5250_v31 = vunpack.i.h.bf16 %v5248_v55  ;;  %v5249_v30 = vunpack.i.l.bf16 %v5248_v55  ;;  %v1567_v35 = vsel %vm1561_vm8, %v1534_v37, %v5235_v1  ;;  %v1568_v42 = vsel %vm1561_vm8, %v1535_v50, %v5239_v39  ;;  %v9470_v37 = vld [vmem:[#allocation16_spill] sm:$0xff] }
 0x11b   : > { %5537 = vrot.lane.b32.xlu0 %v7185_v63, %s6289_s12  ;;  %v5253_v13 = vpop.permute.xlu1 %5252  ;;  %v1566_v63 = vsel %vm1561_vm8, %v1533_v60, %v5234_v24  ;;  %v1569_v59 = vsel %vm1561_vm8, %v1536_v5, %v5240_v61  ;;  %v1600_v23 = vsel %vm1594_vm9, %v1567_v35, %v5245_v27  ;;  %v4980_v55 = vunpack.i.h.bf16 %v6935_v33  ;;  %v9473_v5 = vld [vmem:[#allocation14_spill] sm:$0xff] }
 0x11c   : > { %v5255_v34 = vunpack.i.h.bf16 %v5253_v13  ;;  %v5254_v44 = vunpack.i.l.bf16 %v5253_v13  ;;  %v1599_v6 = vsel %vm1594_vm9, %v1566_v63, %v5244_v56  ;;  %v1601_v57 = vsel %vm1594_vm9, %v1568_v42, %v5249_v30  ;;  %v9469_v13 = vld [vmem:[#allocation12_spill] sm:$0xff]  ;;  %v9474_v63 = vld [vmem:[#allocation13_spill] sm:$0xff] }
 0x11d   : > { %v5258_v26 = vpop.permute.xlu0 %5257  ;;  %5542 = vrot.lane.b32.xlu1 %v7313_v11, %s6289_s12  ;;  %v1602_v16 = vsel %vm1594_vm9, %v1569_v59, %v5250_v31  ;;  %v7371_v14 = vpack.i.bf16 %v9459_v58, %v9460_v53  ;;  %v4985_v22 = vunpack.i.h.bf16 %v6938_v10  ;;  %v4984_v61 = vunpack.i.l.bf16 %v6938_v10  ;;  %v9471_v31 = vld [vmem:[#allocation21_spill] sm:$0xff] }
 0x11e   : > { %v5260_v20 = vunpack.i.h.bf16 %v5258_v26  ;;  %v5259_v9 = vunpack.i.l.bf16 %v5258_v26  ;;  %v1632_v45 = vsel %vm1627_vm10, %v1599_v6, %v5254_v44  ;;  %v1633_v47 = vsel %vm1627_vm10, %v1600_v23, %v5255_v34 }
 0x11f   : > { %5547 = vrot.lane.b32.xlu0 %v6700_v4, %s6290_s25  ;;  %v5263_v51 = vpop.permute.xlu1 %5262  ;;  %9468 = vst [vmem:[#allocation26_spill] sm:$0xff] %v7371_v14  ;;  %v1439_v60 = vsel %vm1429_vm4, %v9469_v13, %v4980_v55  ;;  %v5060_v27 = vunpack.i.h.bf16 %v9470_v37  ;;  %v5059_v56 = vunpack.i.l.bf16 %v9470_v37  ;;  %v5065_v30 = vunpack.i.h.bf16 %v9471_v31 }
 0x120   : > { %v5265_v32 = vunpack.i.h.bf16 %v5263_v51  ;;  %v5264_v36 = vunpack.i.l.bf16 %v5263_v51  ;;  %v1634_v17 = vsel %vm1627_vm10, %v1601_v57, %v5259_v9  ;;  %v1635_v41 = vsel %vm1627_vm10, %v1602_v16, %v5260_v20 }
 0x121   : > { %v5268_v46 = vpop.permute.xlu0 %5267  ;;  %5552 = vrot.lane.b32.xlu1 %v7319_v49, %s6290_s25  ;;  %v5140_v34 = vunpack.i.h.bf16 %v7139_v62  ;;  %v5139_v10 = vunpack.i.l.bf16 %v7139_v62  ;;  %v1441_v50 = vsel %vm1429_vm4, %v9473_v5, %v4985_v22  ;;  %v1440_v35 = vsel %vm1429_vm4, %v9474_v63, %v4984_v61  ;;  %v9476_v22 = vld [vmem:[#allocation28_spill] sm:$0xff] }
 0x122   : > { %v1665_v4 = vsel %vm1660_vm11, %v1632_v45, %v5264_v36  ;;  %v1666_v52 = vsel %vm1660_vm11, %v1633_v47, %v5265_v32  ;;  %v5270_v25 = vunpack.i.h.bf16 %v5268_v46  ;;  %v5269_v43 = vunpack.i.l.bf16 %v5268_v46 }
 0x123   : > { %5557 = vrot.lane.b32.xlu0 %v6829_v0, %s6291_s6  ;;  %v5273_v40 = vpop.permute.xlu1 %5272  ;;  %v1695_v29 = vpack.c.bf16 %v1666_v52, %v1665_v4  ;;  %v4979_v0 = vunpack.i.l.bf16 %v6935_v33  ;;  %v5064_v33 = vunpack.i.l.bf16 %v9471_v31  ;;  %v5145_v42 = vunpack.i.h.bf16 %v7144_v28 }
 0x124   : > { %v1667_v19 = vsel %vm1660_vm11, %v1634_v17, %v5269_v43  ;;  %v1668_v2 = vsel %vm1660_vm11, %v1635_v41, %v5270_v25  ;;  %v5144_v59 = vunpack.i.l.bf16 %v7144_v28  ;;  %v1472_v9 = vsel %vm1462_vm5, %v1439_v60, %v5060_v27  ;;  %v9475_v28 = vld [vmem:[#allocation9_spill] sm:$0xff] }
 0x125   : > { %v5278_v1 = vpop.permute.xlu0 %5277  ;;  %5562 = vrot.lane.b32.xlu1 %v7321_v21, %s6291_s6  ;;  %4841 = vmatprep.mubr.msk.bf16.mxu0 %vm1752_vm12, %v1695_v29  ;;  %v1696_v24 = vpack.c.bf16 %v1668_v2, %v1667_v19  ;;  %v5275_v51 = vunpack.i.h.bf16 %v5273_v40  ;;  %v5274_v6 = vunpack.i.l.bf16 %v5273_v40  ;;  %v1474_v23 = vsel %vm1462_vm5, %v1441_v50, %v5065_v30  ;;  %s9262_s6 = scalar_lea.hbm %s9320_s5, %s4596_s17 }
 0x126   : > { %v1473_v32 = vsel %vm1462_vm5, %v1440_v35, %v5064_v33  ;;  %v1505_v57 = vsel %vm1495_vm6, %v1472_v9, %v5140_v34  ;;  %v5279_v45 = vunpack.i.l.bf16 %v5278_v1  ;;  %v1507_v52 = vsel %vm1495_vm6, %v1474_v23, %v5145_v42 }
 0x127   : > { %5567 = vrot.lane.b32.xlu0 %v7313_v11, %s6292_s11  ;;  %4842 = vmatmul.mubr.msk.bf16.gmra.mrb[4].mxu0 %vm1752_vm12, %v1696_v24  ;;  %v5283_v39 = vpop.permute.xlu1 %5282  ;;  %v9472_v11 = vld [vmem:[#allocation10_spill] sm:$0xff]  ;;  %v1506_v4 = vsel %vm1495_vm6, %v1473_v32, %v5144_v59  ;;  %v1538_v40 = vsel %vm1528_vm7, %v1505_v57, %v5275_v51  ;;  %v9477_v57 = vld [vmem:[#allocation11_spill] sm:$0xff] }
 0x128   : > { %v1438_v26 = vsel %vm1429_vm4, %v9472_v11, %v4979_v0  ;;  %v5285_v47 = vunpack.i.h.bf16 %v5283_v39  ;;  %v5284_v46 = vunpack.i.l.bf16 %v5283_v39  ;;  %v1539_v39 = vsel %vm1528_vm7, %v1506_v4, %v5279_v45  ;;  %v9478_v45 = vld [vmem:[#allocation15_spill] sm:$0xff] }
 0x129   : > { %v5288_v44 = vpop.permute.xlu0 %5287  ;;  %5572 = vrot.lane.b32.xlu1 %v7371_v14, %s6292_s11  ;;  %v1471_v20 = vsel %vm1462_vm5, %v1438_v26, %v5059_v56  ;;  %s6296_s11 = smov [#allocation2]  }
 0x12a   : > { %v1504_v36 = vsel %vm1495_vm6, %v1471_v20, %v5139_v10  ;;  %v5290_v25 = vunpack.i.h.bf16 %v5288_v44  ;;  %v5289_v43 = vunpack.i.l.bf16 %v5288_v44  ;;  %v1571_v13 = vsel %vm1561_vm8, %v1538_v40, %v5285_v47 }
 0x12b   : > { %5577 = vrot.lane.b32.xlu0 %v7319_v49, %s6293_s13  ;;  %v5293_v62 = vpop.permute.xlu1 %5292  ;;  %v5280_v49 = vunpack.i.h.bf16 %v5278_v1  ;;  %v1537_v41 = vsel %vm1528_vm7, %v1504_v36, %v5274_v6  ;;  %v4995_v47 = vunpack.i.h.bf16 %v9478_v45 }
 0x12c   : > { %v5295_v29 = vunpack.i.h.bf16 %v5293_v62  ;;  %v5294_v55 = vunpack.i.l.bf16 %v5293_v62  ;;  %v1572_v60 = vsel %vm1561_vm8, %v1539_v39, %v5289_v43  ;;  %v9484_v39 = vld [vmem:[#allocation20_spill] sm:$0xff] }
 0x12d   : > { %v5298_v16 = vpop.permute.xlu0 %5297  ;;  %5582 = vrot.lane.b32.xlu1 %v9475_v28, %s6293_s13  ;;  %v1540_v61 = vsel %vm1528_vm7, %v1507_v52, %v5280_v49  ;;  %v4989_v49 = vunpack.i.l.bf16 %v9477_v57  ;;  %v9479_v52 = vld [vmem:[#allocation22_spill] sm:$0xff]  ;;  %s6226_s13 = sshll.u32 %s6296_s11, 4  ;;  %s6227_s13 = int_to_ptr.vmem [resolvable:$false] %s6226_s13 }
 0x12e   : > { %v5300_v19 = vunpack.i.h.bf16 %v5298_v16  ;;  %v5299_v2 = vunpack.i.l.bf16 %v5298_v16  ;;  %v1573_v37 = vsel %vm1561_vm8, %v1540_v61, %v5290_v25  ;;  %v1604_v33 = vsel %vm1594_vm9, %v1571_v13, %v5295_v29  ;;  %s6228_s9 = scalar_lea.vmem %s6227_s13, 8192 }
 0x12f   : > { %5587 = vrot.lane.b32.xlu0 %v7321_v21, %s6294_s14  ;;  %v5303_v17 = vpop.permute.xlu1 %5302  ;;  %v1570_v21 = vsel %vm1561_vm8, %v1537_v41, %v5284_v46  ;;  %v4990_v16 = vunpack.i.h.bf16 %v9477_v57  ;;  %v4994_v46 = vunpack.i.l.bf16 %v9478_v45  ;;  %v5070_v25 = vunpack.i.h.bf16 %v9479_v52 }
 0x130   : > { %v5305_v1 = vunpack.i.h.bf16 %v5303_v17  ;;  %v5304_v24 = vunpack.i.l.bf16 %v5303_v17  ;;  %v1603_v30 = vsel %vm1594_vm9, %v1570_v21, %v5294_v55  ;;  %v1605_v44 = vsel %vm1594_vm9, %v1572_v60, %v5299_v2  ;;  %v9480_v17 = vld [vmem:[#allocation23_spill] sm:$0xff]  ;;  %v9481_v2 = vld [vmem:[#allocation17_spill] sm:$0xff] }
 0x131   : > { %v5308_v0 = vpop.permute.xlu0 %5307  ;;  %5592 = vrot.lane.b32.xlu1 %v9476_v22, %s6294_s14  ;;  %v1606_v11 = vsel %vm1594_vm9, %v1573_v37, %v5300_v19  ;;  %v5069_v43 = vunpack.i.l.bf16 %v9479_v52  ;;  %v5075_v41 = vunpack.i.h.bf16 %v9480_v17  ;;  %v5074_v40 = vunpack.i.l.bf16 %v9480_v17  ;;  %v9483_v22 = vld [vmem:[#allocation19_spill] sm:$0xff] }
 0x132   : > { %v5310_v27 = vunpack.i.h.bf16 %v5308_v0  ;;  %v5309_v56 = vunpack.i.l.bf16 %v5308_v0  ;;  %v1636_v26 = vsel %vm1627_vm10, %v1603_v30, %v5304_v24  ;;  %v1637_v5 = vsel %vm1627_vm10, %v1604_v33, %v5305_v1  ;;  %v9482_v24 = vld [vmem:[#allocation18_spill] sm:$0xff] }
 0x133   : > { %5597 = vrot.lane.b32.xlu0 %v9475_v28, %s6290_s25  ;;  %v5313_v31 = vpop.permute.xlu1 %5312  ;;  %v5150_v29 = vunpack.i.h.bf16 %v7146_v3  ;;  %v5149_v55 = vunpack.i.l.bf16 %v7146_v3  ;;  %v1443_v1 = vsel %vm1429_vm4, %v9481_v2, %v4990_v16  ;;  %v1442_v0 = vsel %vm1429_vm4, %v9482_v24, %v4989_v49 }
 0x134   : > { %v5315_v34 = vunpack.i.h.bf16 %v5313_v31  ;;  %v5314_v10 = vunpack.i.l.bf16 %v5313_v31  ;;  %v1638_v62 = vsel %vm1627_vm10, %v1605_v44, %v5309_v56  ;;  %v1639_v20 = vsel %vm1627_vm10, %v1606_v11, %v5310_v27 }
 0x135   : > { %v5318_v50 = vpop.permute.xlu0 %5317  ;;  %v1445_v61 = vsel %vm1429_vm4, %v9483_v22, %v4995_v47  ;;  %v1444_v21 = vsel %vm1429_vm4, %v9484_v39, %v4994_v46  ;;  %v5155_v13 = vunpack.i.h.bf16 %v7152_v12  ;;  %v5154_v60 = vunpack.i.l.bf16 %v7152_v12 }
 0x136   : > { %v1669_v63 = vsel %vm1660_vm11, %v1636_v26, %v5314_v10  ;;  %v1670_v35 = vsel %vm1660_vm11, %v1637_v5, %v5315_v34  ;;  %v5320_v42 = vunpack.i.h.bf16 %v5318_v50  ;;  %v5319_v59 = vunpack.i.l.bf16 %v5318_v50 }
 0x137   : > { %v5323_v9 = vpop.permute.xlu1 %5322  ;;  %v1697_v51 = vpack.c.bf16 %v1670_v35, %v1669_v63  ;;  %v1475_v3 = vsel %vm1462_vm5, %v1442_v0, %v5069_v43  ;;  %v1476_v27 = vsel %vm1462_vm5, %v1443_v1, %v5070_v25  ;;  %v1478_v30 = vsel %vm1462_vm5, %v1445_v61, %v5075_v41 }
 0x138   : > { %v1671_v6 = vsel %vm1660_vm11, %v1638_v62, %v5319_v59  ;;  %v1672_v23 = vsel %vm1660_vm11, %v1639_v20, %v5320_v42  ;;  %v5325_v56 = vunpack.i.h.bf16 %v5323_v9  ;;  %v5324_v31 = vunpack.i.l.bf16 %v5323_v9 }
 0x139   : > { %v5328_v32 = vpop.permute.xlu0 %5327  ;;  %4845 = vmatprep.mubr.msk.bf16.mxu0 %vm1752_vm12, %v1697_v51  ;;  %v1698_v36 = vpack.c.bf16 %v1672_v23, %v1671_v6  ;;  %v1477_v33 = vsel %vm1462_vm5, %v1444_v21, %v5074_v40  ;;  %v1508_v34 = vsel %vm1495_vm6, %v1475_v3, %v5149_v55  ;;  %v1509_v10 = vsel %vm1495_vm6, %v1476_v27, %v5150_v29 }
 0x13a   : > { %v5330_v11 = vunpack.i.h.bf16 %v5328_v32  ;;  %v5329_v26 = vunpack.i.l.bf16 %v5328_v32  ;;  %v1510_v50 = vsel %vm1495_vm6, %v1477_v33, %v5154_v60  ;;  %v1511_v63 = vsel %vm1495_vm6, %v1478_v30, %v5155_v13 }
 0x13b   : > { %4846 = vmatmul.mubr.msk.bf16.gmra.mrb[8].mxu0 %vm1752_vm12, %v1698_v36  ;;  %v5333_v4 = vpop.permute.xlu1 %5332  ;;  %v1541_v62 = vsel %vm1528_vm7, %v1508_v34, %v5324_v31  ;;  %v1542_v20 = vsel %vm1528_vm7, %v1509_v10, %v5325_v56  ;;  %v5160_v33 = vunpack.i.h.bf16 %v7155_v18  ;;  %v5159_v34 = vunpack.i.l.bf16 %v7155_v18 }
 0x13c   : > { %v5335_v5 = vunpack.i.h.bf16 %v5333_v4  ;;  %v5334_v12 = vunpack.i.l.bf16 %v5333_v4  ;;  %v1544_v16 = vsel %vm1528_vm7, %v1511_v63, %v5330_v11  ;;  %v1543_v49 = vsel %vm1528_vm7, %v1510_v50, %v5329_v26 }
 0x13d   : > { %v5338_v19 = vpop.permute.xlu0 %5337  ;;  %v5164_v11 = vunpack.i.l.bf16 %v7162_v38  ;;  %v1512_v50 = vsel %vm1495_vm6, %v7024_v15, %v5159_v34  ;;  %v1513_v63 = vsel %vm1495_vm6, %v7027_v8, %v5160_v33 }
 0x13e   : > { %v5340_v35 = vunpack.i.h.bf16 %v5338_v19  ;;  %v5339_v42 = vunpack.i.l.bf16 %v5338_v19  ;;  %v1574_v45 = vsel %vm1561_vm8, %v1541_v62, %v5334_v12  ;;  %v1575_v47 = vsel %vm1561_vm8, %v1542_v20, %v5335_v5 }
 0x13f   : > { %v5343_v37 = vpop.permute.xlu1 %5342  ;;  %v1514_v18 = vsel %vm1495_vm6, %v7041_v7, %v5164_v11 }
 0x140   : > { %v5345_v9 = vunpack.i.h.bf16 %v5343_v37  ;;  %v5344_v51 = vunpack.i.l.bf16 %v5343_v37  ;;  %v1576_v46 = vsel %vm1561_vm8, %v1543_v49, %v5339_v42  ;;  %v1577_v4 = vsel %vm1561_vm8, %v1544_v16, %v5340_v35 }
 0x141   : > { %v5348_v44 = vpop.permute.xlu0 %5347 }
 0x142   : > { %v5350_v6 = vunpack.i.h.bf16 %v5348_v44  ;;  %v5349_v23 = vunpack.i.l.bf16 %v5348_v44  ;;  %v1607_v17 = vsel %vm1594_vm9, %v1574_v45, %v5344_v51  ;;  %v1608_v41 = vsel %vm1594_vm9, %v1575_v47, %v5345_v9 }
 0x143   : > { %v5353_v59 = vpop.permute.xlu1 %5352  ;;  %v5165_v44 = vunpack.i.h.bf16 %v7162_v38 }
 0x144   : > { %v5355_v36 = vunpack.i.h.bf16 %v5353_v59  ;;  %v5354_v57 = vunpack.i.l.bf16 %v5353_v59  ;;  %v1609_v55 = vsel %vm1594_vm9, %v1576_v46, %v5349_v23  ;;  %v1610_v19 = vsel %vm1594_vm9, %v1577_v4, %v5350_v6 }
 0x145   : > { %v5358_v32 = vpop.permute.xlu0 %5357  ;;  %v1515_v38 = vsel %vm1495_vm6, %v7038_v48, %v5165_v44  ;;  %v5169_v44 = vunpack.i.l.bf16 %v7164_v54 }
 0x146   : > { %v5360_v52 = vunpack.i.h.bf16 %v5358_v32  ;;  %v5359_v25 = vunpack.i.l.bf16 %v5358_v32  ;;  %v1640_v2 = vsel %vm1627_vm10, %v1607_v17, %v5354_v57  ;;  %v1641_v1 = vsel %vm1627_vm10, %v1608_v41, %v5355_v36 }
 0x147   : > { %v5363_v43 = vpop.permute.xlu1 %5362 }
 0x148   : > { %v5365_v40 = vunpack.i.h.bf16 %v5363_v43  ;;  %v5364_v29 = vunpack.i.l.bf16 %v5363_v43  ;;  %v1642_v21 = vsel %vm1627_vm10, %v1609_v55, %v5359_v25  ;;  %v1643_v13 = vsel %vm1627_vm10, %v1610_v19, %v5360_v52 }
 0x149   : > { %v5368_v24 = vpop.permute.xlu0 %5367 }
 0x14a   : > { %v1673_v0 = vsel %vm1660_vm11, %v1640_v2, %v5364_v29  ;;  %v1674_v22 = vsel %vm1660_vm11, %v1641_v1, %v5365_v40  ;;  %v5370_v61 = vunpack.i.h.bf16 %v5368_v24  ;;  %v5369_v39 = vunpack.i.l.bf16 %v5368_v24 }
 0x14b   : > { %v5373_v60 = vpop.permute.xlu1 %5372  ;;  %v1699_v37 = vpack.c.bf16 %v1674_v22, %v1673_v0 }
 0x14c   : > { %v1675_v3 = vsel %vm1660_vm11, %v1642_v21, %v5369_v39  ;;  %v1676_v27 = vsel %vm1660_vm11, %v1643_v13, %v5370_v61  ;;  %v5375_v5 = vunpack.i.h.bf16 %v5373_v60  ;;  %v5374_v12 = vunpack.i.l.bf16 %v5373_v60 }
 0x14d   : > { %v5378_v56 = vpop.permute.xlu0 %5377  ;;  %4849 = vmatprep.mubr.msk.bf16.mxu0 %vm1752_vm12, %v1699_v37  ;;  %v1700_v31 = vpack.c.bf16 %v1676_v27, %v1675_v3 }
 0x14e   : > { %v5380_v42 = vunpack.i.h.bf16 %v5378_v56  ;;  %v5379_v59 = vunpack.i.l.bf16 %v5378_v56  ;;  %v1545_v23 = vsel %vm1528_vm7, %v1512_v50, %v5374_v12  ;;  %v1546_v15 = vsel %vm1528_vm7, %v1513_v63, %v5375_v5 }
 0x14f   : > { %4850 = vmatmul.mubr.msk.bf16.gmra.mrb[12].mxu0 %vm1752_vm12, %v1700_v31  ;;  %v5383_v30 = vpop.permute.xlu1 %5382 }
 0x150   : > { %v5385_v62 = vunpack.i.h.bf16 %v5383_v30  ;;  %v5384_v20 = vunpack.i.l.bf16 %v5383_v30  ;;  %v1548_v47 = vsel %vm1528_vm7, %v1515_v38, %v5380_v42  ;;  %v1547_v7 = vsel %vm1528_vm7, %v1514_v18, %v5379_v59  ;;  %v9486_v59 = vld [vmem:[#allocation25_spill] sm:$0xff] }
 0x151   : > { %v5388_v10 = vpop.permute.xlu0 %5387 }
 0x152   : > { %v5390_v9 = vunpack.i.h.bf16 %v5388_v10  ;;  %v5389_v51 = vunpack.i.l.bf16 %v5388_v10  ;;  %v1578_v48 = vsel %vm1561_vm8, %v1545_v23, %v5384_v20  ;;  %v1579_v46 = vsel %vm1561_vm8, %v1546_v15, %v5385_v62  ;;  %v9488_v23 = vld [vmem:[#allocation32_spill] sm:$0xff] }
 0x153   : > { %v5393_v26 = vpop.permute.xlu1 %5392  ;;  %v5170_v10 = vunpack.i.h.bf16 %v7164_v54 }
 0x154   : > { %v5395_v36 = vunpack.i.h.bf16 %v5393_v26  ;;  %v5394_v8 = vunpack.i.l.bf16 %v5393_v26  ;;  %v1580_v4 = vsel %vm1561_vm8, %v1547_v7, %v5389_v51  ;;  %v1581_v52 = vsel %vm1561_vm8, %v1548_v47, %v5390_v9 }
 0x155   : > { %v5398_v35 = vpop.permute.xlu0 %5397  ;;  %v1517_v62 = vsel %vm1495_vm6, %v9486_v59, %v5170_v10 }
 0x156   : > { %v5400_v57 = vunpack.i.h.bf16 %v5398_v35  ;;  %v5399_v32 = vunpack.i.l.bf16 %v5398_v35  ;;  %v1611_v41 = vsel %vm1594_vm9, %v1578_v48, %v5394_v8  ;;  %v1612_v40 = vsel %vm1594_vm9, %v1579_v46, %v5395_v36  ;;  %v9485_v35 = vld [vmem:[#allocation24_spill] sm:$0xff] }
 0x157   : > { %v5403_v6 = vpop.permute.xlu1 %5402  ;;  %v1516_v42 = vsel %vm1495_vm6, %v9485_v35, %v5169_v44 }
 0x158   : > { %v5405_v16 = vunpack.i.h.bf16 %v5403_v6  ;;  %v5404_v49 = vunpack.i.l.bf16 %v5403_v6  ;;  %v1613_v19 = vsel %vm1594_vm9, %v1580_v4, %v5399_v32  ;;  %v1614_v2 = vsel %vm1594_vm9, %v1581_v52, %v5400_v57  ;;  %v9487_v6 = vld [vmem:[#allocation31_spill] sm:$0xff] }
 0x159   : > { %v5408_v45 = vpop.permute.xlu0 %5407 }
 0x15a   : > { %v5410_v25 = vunpack.i.h.bf16 %v5408_v45  ;;  %v5409_v43 = vunpack.i.l.bf16 %v5408_v45  ;;  %v1644_v1 = vsel %vm1627_vm10, %v1611_v41, %v5404_v49  ;;  %v1645_v24 = vsel %vm1627_vm10, %v1612_v40, %v5405_v16 }
 0x15b   : > { %v5413_v17 = vpop.permute.xlu1 %5412 }
 0x15c   : > { %v5415_v29 = vunpack.i.h.bf16 %v5413_v17  ;;  %v5414_v55 = vunpack.i.l.bf16 %v5413_v17  ;;  %v1646_v13 = vsel %vm1627_vm10, %v1613_v19, %v5409_v43  ;;  %v1647_v60 = vsel %vm1627_vm10, %v1614_v2, %v5410_v25 }
 0x15d   : > { %v5418_v0 = vpop.permute.xlu0 %5417 }
 0x15e   : > { %v1677_v22 = vsel %vm1660_vm11, %v1644_v1, %v5414_v55  ;;  %v1678_v61 = vsel %vm1660_vm11, %v1645_v24, %v5415_v29  ;;  %v5420_v39 = vunpack.i.h.bf16 %v5418_v0  ;;  %v5419_v21 = vunpack.i.l.bf16 %v5418_v0 }
 0x15f   : > { %v5423_v37 = vpop.permute.xlu1 %5422  ;;  %v1701_v3 = vpack.c.bf16 %v1678_v61, %v1677_v22 }
 0x160   : > { %v1679_v27 = vsel %vm1660_vm11, %v1646_v13, %v5419_v21  ;;  %v1680_v56 = vsel %vm1660_vm11, %v1647_v60, %v5420_v39  ;;  %v5425_v26 = vunpack.i.h.bf16 %v5423_v37  ;;  %v5424_v5 = vunpack.i.l.bf16 %v5423_v37 }
 0x161   : > { %v5428_v31 = vpop.permute.xlu0 %5427  ;;  %4853 = vmatprep.mubr.msk.bf16.mxu0 %vm1752_vm12, %v1701_v3  ;;  %v1702_v30 = vpack.c.bf16 %v1680_v56, %v1679_v27 }
 0x162   : > { %v5430_v50 = vunpack.i.h.bf16 %v5428_v31  ;;  %v5429_v63 = vunpack.i.l.bf16 %v5428_v31  ;;  %v1519_v54 = vsel %vm1495_vm6, %v9487_v6, %v5425_v26  ;;  %v1518_v15 = vsel %vm1495_vm6, %v9488_v23, %v5424_v5 }
 0x163   : > { %4854 = vmatmul.mubr.msk.bf16.gmra.mrb[16].mxu0 %vm1752_vm12, %v1702_v30  ;;  %v5433_v33 = vpop.permute.xlu1 %5432 }
 0x164   : > { %v5435_v18 = vunpack.i.h.bf16 %v5433_v33  ;;  %v5434_v38 = vunpack.i.l.bf16 %v5433_v33  ;;  %v1549_v32 = vsel %vm1528_vm7, %v1516_v42, %v5429_v63  ;;  %v1550_v16 = vsel %vm1528_vm7, %v1517_v62, %v5430_v50 }
 0x165   : > { %v5438_v34 = vpop.permute.xlu0 %5437 }
 0x166   : > { %v5440_v9 = vunpack.i.h.bf16 %v5438_v34  ;;  %v5439_v51 = vunpack.i.l.bf16 %v5438_v34  ;;  %v1551_v52 = vsel %vm1528_vm7, %v1518_v15, %v5434_v38  ;;  %v1552_v25 = vsel %vm1528_vm7, %v1519_v54, %v5435_v18  ;;  %v9489_v38 = vld [vmem:[#allocation33_spill] sm:$0xff] }
 0x167   : > { %v5443_v11 = vpop.permute.xlu1 %5442 }
 0x168   : > { %v5445_v36 = vunpack.i.h.bf16 %v5443_v11  ;;  %v5444_v8 = vunpack.i.l.bf16 %v5443_v11  ;;  %v1582_v43 = vsel %vm1561_vm8, %v1549_v32, %v5439_v51  ;;  %v1583_v17 = vsel %vm1561_vm8, %v1550_v16, %v5440_v9  ;;  %v9490_v51 = vld [vmem:[#allocation34_spill] sm:$0xff]  ;;  %v9492_v16 = vld [vmem:[#allocation36_spill] sm:$0xff] }
 0x169   : > { %v5448_v12 = vpop.permute.xlu0 %5447 }
 0x16a   : > { %v5450_v49 = vunpack.i.h.bf16 %v5448_v12  ;;  %v5449_v45 = vunpack.i.l.bf16 %v5448_v12  ;;  %v1584_v41 = vsel %vm1561_vm8, %v1551_v52, %v5444_v8  ;;  %v1585_v40 = vsel %vm1561_vm8, %v1552_v25, %v5445_v36 }
 0x16b   : > { %v5453_v20 = vpop.permute.xlu1 %5452 }
 0x16c   : > { %v5455_v47 = vunpack.i.h.bf16 %v5453_v20  ;;  %v5454_v7 = vunpack.i.l.bf16 %v5453_v20  ;;  %v1615_v2 = vsel %vm1594_vm9, %v1582_v43, %v5449_v45  ;;  %v1616_v1 = vsel %vm1594_vm9, %v1583_v17, %v5450_v49 }
 0x16d   : > { %v5458_v57 = vpop.permute.xlu0 %5457 }
 0x16e   : > { %v5460_v48 = vunpack.i.h.bf16 %v5458_v57  ;;  %v5459_v46 = vunpack.i.l.bf16 %v5458_v57  ;;  %v1617_v22 = vsel %vm1594_vm9, %v1584_v41, %v5454_v7  ;;  %v1618_v61 = vsel %vm1594_vm9, %v1585_v40, %v5455_v47  ;;  %v9491_v57 = vld [vmem:[#allocation35_spill] sm:$0xff] }
 0x16f   : > { %v5463_v4 = vpop.permute.xlu1 %5462 }
 0x170   : > { %v5465_v29 = vunpack.i.h.bf16 %v5463_v4  ;;  %v5464_v55 = vunpack.i.l.bf16 %v5463_v4  ;;  %v1648_v39 = vsel %vm1627_vm10, %v1615_v2, %v5459_v46  ;;  %v1649_v21 = vsel %vm1627_vm10, %v1616_v1, %v5460_v48 }
 0x171   : > { %v5468_v19 = vpop.permute.xlu0 %5467 }
 0x172   : > { %v5470_v24 = vunpack.i.h.bf16 %v5468_v19  ;;  %v5469_v0 = vunpack.i.l.bf16 %v5468_v19  ;;  %v1650_v56 = vsel %vm1627_vm10, %v1617_v22, %v5464_v55  ;;  %v1651_v31 = vsel %vm1627_vm10, %v1618_v61, %v5465_v29 }
 0x173   : > { %v5473_v13 = vpop.permute.xlu1 %5472 }
 0x174   : > { %v1681_v60 = vsel %vm1660_vm11, %v1648_v39, %v5469_v0  ;;  %v1682_v37 = vsel %vm1660_vm11, %v1649_v21, %v5470_v24  ;;  %v5475_v3 = vunpack.i.h.bf16 %v5473_v13  ;;  %v5474_v27 = vunpack.i.l.bf16 %v5473_v13 }
 0x175   : > { %v5478_v30 = vpop.permute.xlu0 %5477  ;;  %v1703_v33 = vpack.c.bf16 %v1682_v37, %v1681_v60 }
 0x176   : > { %v1683_v34 = vsel %vm1660_vm11, %v1650_v56, %v5474_v27  ;;  %v1684_v10 = vsel %vm1660_vm11, %v1651_v31, %v5475_v3  ;;  %v5480_v50 = vunpack.i.h.bf16 %v5478_v30  ;;  %v5479_v63 = vunpack.i.l.bf16 %v5478_v30 }
 0x177   : > { %4857 = vmatprep.mubr.msk.bf16.mxu0 %vm1752_vm12, %v1703_v33  ;;  %v5483_v44 = vpop.permute.xlu1 %5482  ;;  %v1704_v11 = vpack.c.bf16 %v1684_v10, %v1683_v34 }
 0x178   : > { %v5485_v42 = vunpack.i.h.bf16 %v5483_v44  ;;  %v5484_v59 = vunpack.i.l.bf16 %v5483_v44  ;;  %v1520_v9 = vsel %vm1495_vm6, %v9489_v38, %v5479_v63  ;;  %v1521_v6 = vsel %vm1495_vm6, %v9490_v51, %v5480_v50 }
 0x179   : > { %v5488_v26 = vpop.permute.xlu0 %5487  ;;  %4858 = vmatmul.mubr.msk.bf16.gmra.mrb[20].mxu0 %vm1752_vm12, %v1704_v11 }
 0x17a   : > { %v5490_v20 = vunpack.i.h.bf16 %v5488_v26  ;;  %v5489_v18 = vunpack.i.l.bf16 %v5488_v26  ;;  %v1523_v32 = vsel %vm1495_vm6, %v9491_v57, %v5485_v42  ;;  %v1522_v49 = vsel %vm1495_vm6, %v9492_v16, %v5484_v59 }
 0x17b   : > { %v5493_v5 = vpop.permute.xlu1 %5492 }
 0x17c   : > { %v5495_v23 = vunpack.i.h.bf16 %v5493_v5  ;;  %v5494_v15 = vunpack.i.l.bf16 %v5493_v5  ;;  %v1553_v48 = vsel %vm1528_vm7, %v1520_v9, %v5489_v18  ;;  %v1554_v46 = vsel %vm1528_vm7, %v1521_v6, %v5490_v20 }
 0x17d   : > { %v5498_v12 = vpop.permute.xlu0 %5497 }
 0x17e   : > { %v5500_v36 = vunpack.i.h.bf16 %v5498_v12  ;;  %v5499_v8 = vunpack.i.l.bf16 %v5498_v12  ;;  %v1555_v29 = vsel %vm1528_vm7, %v1522_v49, %v5494_v15  ;;  %v1556_v55 = vsel %vm1528_vm7, %v1523_v32, %v5495_v23  ;;  %v9493_v15 = vld [vmem:[#allocation37_spill] sm:$0xff] }
 0x17f   : > { %v5503_v35 = vpop.permute.xlu1 %5502 }
 0x180   : > { %v5505_v45 = vunpack.i.h.bf16 %v5503_v35  ;;  %v5504_v47 = vunpack.i.l.bf16 %v5503_v35  ;;  %v1586_v19 = vsel %vm1561_vm8, %v1553_v48, %v5499_v8  ;;  %v1587_v2 = vsel %vm1561_vm8, %v1554_v46, %v5500_v36  ;;  %v9494_v8 = vld [vmem:[#allocation38_spill] sm:$0xff]  ;;  %v9496_v46 = vld [vmem:[#allocation40_spill] sm:$0xff] }
 0x181   : > { %v5508_v62 = vpop.permute.xlu0 %5507 }
 0x182   : > { %v5510_v4 = vunpack.i.h.bf16 %v5508_v62  ;;  %v5509_v52 = vunpack.i.l.bf16 %v5508_v62  ;;  %v1588_v1 = vsel %vm1561_vm8, %v1555_v29, %v5504_v47  ;;  %v1589_v24 = vsel %vm1561_vm8, %v1556_v55, %v5505_v45 }
 0x183   : > { %v5513_v54 = vpop.permute.xlu1 %5512 }
 0x184   : > { %v5515_v25 = vunpack.i.h.bf16 %v5513_v54  ;;  %v5514_v43 = vunpack.i.l.bf16 %v5513_v54  ;;  %v1619_v39 = vsel %vm1594_vm9, %v1586_v19, %v5509_v52  ;;  %v1620_v21 = vsel %vm1594_vm9, %v1587_v2, %v5510_v4 }
 0x185   : > { %v5518_v7 = vpop.permute.xlu0 %5517 }
 0x186   : > { %v5520_v17 = vunpack.i.h.bf16 %v5518_v7  ;;  %v5519_v41 = vunpack.i.l.bf16 %v5518_v7  ;;  %v1621_v37 = vsel %vm1594_vm9, %v1588_v1, %v5514_v43  ;;  %v1622_v3 = vsel %vm1594_vm9, %v1589_v24, %v5515_v25  ;;  %v9495_v7 = vld [vmem:[#allocation39_spill] sm:$0xff] }
 0x187   : > { %v5523_v40 = vpop.permute.xlu1 %5522 }
 0x188   : > { %v5525_v0 = vunpack.i.h.bf16 %v5523_v40  ;;  %v5524_v22 = vunpack.i.l.bf16 %v5523_v40  ;;  %v1652_v27 = vsel %vm1627_vm10, %v1619_v39, %v5519_v41  ;;  %v1653_v56 = vsel %vm1627_vm10, %v1620_v21, %v5520_v17 }
 0x189   : > { %v5528_v61 = vpop.permute.xlu0 %5527 }
 0x18a   : > { %v5530_v13 = vunpack.i.h.bf16 %v5528_v61  ;;  %v5529_v60 = vunpack.i.l.bf16 %v5528_v61  ;;  %v1654_v44 = vsel %vm1627_vm10, %v1621_v37, %v5524_v22  ;;  %v1655_v11 = vsel %vm1627_vm10, %v1622_v3, %v5525_v0 }
 0x18b   : > { %v5533_v31 = vpop.permute.xlu1 %5532 }
 0x18c   : > { %v1685_v30 = vsel %vm1660_vm11, %v1652_v27, %v5529_v60  ;;  %v1686_v33 = vsel %vm1660_vm11, %v1653_v56, %v5530_v13  ;;  %v5535_v34 = vunpack.i.h.bf16 %v5533_v31  ;;  %v5534_v10 = vunpack.i.l.bf16 %v5533_v31 }
 0x18d   : > { %v5538_v26 = vpop.permute.xlu0 %5537  ;;  %v1705_v5 = vpack.c.bf16 %v1686_v33, %v1685_v30 }
 0x18e   : > { %v1687_v12 = vsel %vm1660_vm11, %v1654_v44, %v5534_v10  ;;  %v1688_v50 = vsel %vm1660_vm11, %v1655_v11, %v5535_v34  ;;  %v5540_v20 = vunpack.i.h.bf16 %v5538_v26  ;;  %v5539_v18 = vunpack.i.l.bf16 %v5538_v26 }
 0x18f   : > { %4861 = vmatprep.mubr.msk.bf16.mxu0 %vm1752_vm12, %v1705_v5  ;;  %v5543_v63 = vpop.permute.xlu1 %5542  ;;  %v1706_v35 = vpack.c.bf16 %v1688_v50, %v1687_v12 }
 0x190   : > { %v5545_v9 = vunpack.i.h.bf16 %v5543_v63  ;;  %v5544_v51 = vunpack.i.l.bf16 %v5543_v63  ;;  %v1524_v36 = vsel %vm1495_vm6, %v9493_v15, %v5539_v18  ;;  %v1525_v57 = vsel %vm1495_vm6, %v9494_v8, %v5540_v20  ;;  %v7624_v18 = vld [vmem:[%s9317_s2] ss:$0 sm:$0xff] }
 0x191   : > { %v5548_v42 = vpop.permute.xlu0 %5547  ;;  %4862 = vmatmul.mubr.msk.bf16.gmra.mrb[24].mxu0 %vm1752_vm12, %v1706_v35 }
 0x192   : > { %v5550_v54 = vunpack.i.h.bf16 %v5548_v42  ;;  %v5549_v23 = vunpack.i.l.bf16 %v5548_v42  ;;  %v1527_v48 = vsel %vm1495_vm6, %v9495_v7, %v5545_v9  ;;  %v1526_v4 = vsel %vm1495_vm6, %v9496_v46, %v5544_v51 }
 0x193   : > { %v5553_v59 = vpop.permute.xlu1 %5552 }
 0x194   : > { %v5555_v16 = vunpack.i.h.bf16 %v5553_v59  ;;  %v5554_v49 = vunpack.i.l.bf16 %v5553_v59  ;;  %v1557_v17 = vsel %vm1528_vm7, %v1524_v36, %v5549_v23  ;;  %v1558_v41 = vsel %vm1528_vm7, %v1525_v57, %v5550_v54 }
 0x195   : > { %v5558_v62 = vpop.permute.xlu0 %5557 }
 0x196   : > { %v5560_v45 = vunpack.i.h.bf16 %v5558_v62  ;;  %v5559_v47 = vunpack.i.l.bf16 %v5558_v62  ;;  %v1559_v0 = vsel %vm1528_vm7, %v1526_v4, %v5554_v49  ;;  %v1560_v22 = vsel %vm1528_vm7, %v1527_v48, %v5555_v16 }
 0x197   : > { %v5563_v38 = vpop.permute.xlu1 %5562 }
 0x198   : > { %v5565_v52 = vunpack.i.h.bf16 %v5563_v38  ;;  %v5564_v25 = vunpack.i.l.bf16 %v5563_v38  ;;  %v1590_v61 = vsel %vm1561_vm8, %v1557_v17, %v5559_v47  ;;  %v1591_v39 = vsel %vm1561_vm8, %v1558_v41, %v5560_v45 }
 0x199   : > { %v5568_v6 = vpop.permute.xlu0 %5567 }
 0x19a   : > { %v5570_v40 = vunpack.i.h.bf16 %v5568_v6  ;;  %v5569_v29 = vunpack.i.l.bf16 %v5568_v6  ;;  %v1592_v21 = vsel %vm1561_vm8, %v1559_v0, %v5564_v25  ;;  %v1593_v13 = vsel %vm1561_vm8, %v1560_v22, %v5565_v52 }
 0x19b   : > { %v5573_v32 = vpop.permute.xlu1 %5572 }
 0x19c   : > { %v5575_v55 = vunpack.i.h.bf16 %v5573_v32  ;;  %v5574_v19 = vunpack.i.l.bf16 %v5573_v32  ;;  %v1623_v27 = vsel %vm1594_vm9, %v1590_v61, %v5569_v29  ;;  %v1624_v56 = vsel %vm1594_vm9, %v1591_v39, %v5570_v40 }
 0x19d   : > { %v5578_v43 = vpop.permute.xlu0 %5577 }
 0x19e   : > { %v5580_v2 = vunpack.i.h.bf16 %v5578_v43  ;;  %v5579_v1 = vunpack.i.l.bf16 %v5578_v43  ;;  %v1625_v33 = vsel %vm1594_vm9, %v1592_v21, %v5574_v19  ;;  %v1626_v34 = vsel %vm1594_vm9, %v1593_v13, %v5575_v55 }
 0x19f   : > { %v5583_v24 = vpop.permute.xlu1 %5582 }
 0x1a0   : > { %v5585_v60 = vunpack.i.h.bf16 %v5583_v24  ;;  %v5584_v37 = vunpack.i.l.bf16 %v5583_v24  ;;  %v1656_v10 = vsel %vm1627_vm10, %v1623_v27, %v5579_v1  ;;  %v1657_v44 = vsel %vm1627_vm10, %v1624_v56, %v5580_v2 }
 0x1a1   : > { %v5588_v3 = vpop.permute.xlu0 %5587 }
 0x1a2   : > { %v5590_v31 = vunpack.i.h.bf16 %v5588_v3  ;;  %v5589_v30 = vunpack.i.l.bf16 %v5588_v3  ;;  %v1658_v63 = vsel %vm1627_vm10, %v1625_v33, %v5584_v37  ;;  %v1659_v35 = vsel %vm1627_vm10, %v1626_v34, %v5585_v60 }
 0x1a3   : > { %v7605_v11 = vpop.permute.xlu1 %5592 }
 0x1a4   : > { %v1689_v26 = vsel %vm1660_vm11, %v1656_v10, %v5589_v30  ;;  %v1690_v5 = vsel %vm1660_vm11, %v1657_v44, %v5590_v31  ;;  %v9368_v12 = vunpack.i.h.bf16 %v7605_v11  ;;  %v9369_v50 = vunpack.i.l.bf16 %v7605_v11 }
 0x1a5   : > { %v1707_v42 = vpack.c.bf16 %v1690_v5, %v1689_v26 }
 0x1a6   : > { %v1691_v59 = vsel %vm1660_vm11, %v1658_v63, %v9369_v50  ;;  %v1692_v62 = vsel %vm1660_vm11, %v1659_v35, %v9368_v12 }
 0x1a7   : > { %4865 = vmatprep.mubr.msk.bf16.mxu0 %vm1752_vm12, %v1707_v42  ;;  %v1708_v20 = vpack.c.bf16 %v1692_v62, %v1691_v59 }
 0x1a9   : > { %4866 = vmatmul.mubr.msk.bf16.gmra.mrb[28].mxu0 %vm1752_vm12, %v1708_v20 }
 0x1e6   : > { %v4839_v38 = vpop.f32.mrb[0].mxu0 }
 0x1e7   : > { %v1848_v9 = vadd.f32 %v4839_v38, %v7624_v18  ;;  %v1839_v51 = vpop.f32.mrb[1].mxu0 }
 0x1e8   : > { %v1840_v6 = vadd.f32 %v7624_v18, %v1839_v51  ;;  %v4840_v54 = vpop.f32.mrb[2].mxu0 }
 0x1e9   : > { %vm1968_vm13 = vcmp.ge.f32.partialorder %v1848_v9, 0.0  ;;  %v2000_v23 = vmul.f32 0.2, %v1848_v9  ;;  %v1851_v15 = vadd.f32 %v4840_v54, %v7624_v18  ;;  %v1842_v36 = vpop.f32.mrb[3].mxu0 }
 0x1ea   : > { %vm1966_vm14 = vcmp.ge.f32.partialorder %v1840_v6, 0.0  ;;  %v1998_v8 = vmul.f32 0.2, %v1840_v6  ;;  %v1843_v57 = vadd.f32 %v7624_v18, %v1842_v36 }
 0x1eb   : > { %vm1969_vm15 = vcmp.ge.f32.partialorder %v1851_v15, 0.0  ;;  %v2001_v32 = vmul.f32 0.2, %v1851_v15  ;;  %v7630_v16 = vsel %vm1968_vm13, %v1848_v9, %v2000_v23 }
 0x1ec   : > { %vm1967_vm3 = vcmp.ge.f32.partialorder %v1843_v57, 0.0  ;;  %v1999_v49 = vmul.f32 0.2, %v1843_v57  ;;  %v2064_v45 = vmul.f32 %v7630_v16, %v7630_v16  ;;  %v7634_v47 = vsel %vm1966_vm14, %v1840_v6, %v1998_v8 }
 0x1ed   : > { %v2062_v46 = vmul.f32 %v7634_v47, %v7634_v47  ;;  %v7643_v52 = vsel %vm1969_vm15, %v1851_v15, %v2001_v32 }
 0x1ee   : > { %v2100_v7 = vsel %vm1528_vm7, %v2064_v45, 0.0  ;;  %v7637_v48 = vsel %vm1967_vm3, %v1843_v57, %v1999_v49  ;;  %v2065_v17 = vmul.f32 %v7643_v52, %v7643_v52 }
 0x1ef   : > { %2101 = vadd.xlane.f32.xlu0 %v2100_v7  ;;  %v2063_v4 = vmul.f32 %v7637_v48, %v7637_v48  ;;  %v2094_v43 = vsel %vm1528_vm7, %v2062_v46, 0.0 }
 0x1f0   : > { %v2103_v41 = vsel %vm1528_vm7, %v2065_v17, 0.0 }
 0x1f1   : > { %v2097_v25 = vsel %vm1528_vm7, %v2063_v4, 0.0 }
 0x1f2   : > { %2098 = vadd.xlane.f32.xlu1 %v2097_v25 }
 0x1f3   : > { %2095 = vadd.xlane.f32.xlu0 %v2094_v43 }
 0x1f7   : > { %2104 = vadd.xlane.f32.xlu0 %v2103_v41 }
 0x1fa   : > { %v4843_v40 = vpop.f32.mrb[4].mxu0 }
 0x1fb   : > { %v1864_v29 = vadd.f32 %v4843_v40, %v7624_v18  ;;  %v1855_v55 = vpop.f32.mrb[5].mxu0 }
 0x1fc   : > { %v1856_v19 = vadd.f32 %v7624_v18, %v1855_v55  ;;  %v4844_v2 = vpop.f32.mrb[6].mxu0 }
 0x1fd   : > { %vm1972_vm4 = vcmp.ge.f32.partialorder %v1864_v29, 0.0  ;;  %v2004_v1 = vmul.f32 0.2, %v1864_v29  ;;  %v1867_v24 = vadd.f32 %v4844_v2, %v7624_v18  ;;  %v1858_v0 = vpop.f32.mrb[7].mxu0 }
 0x1fe   : > { %vm1970_vm5 = vcmp.ge.f32.partialorder %v1856_v19, 0.0  ;;  %v2002_v22 = vmul.f32 0.2, %v1856_v19  ;;  %v1859_v61 = vadd.f32 %v7624_v18, %v1858_v0 }
 0x1ff   : > { %vm1973_vm6 = vcmp.ge.f32.partialorder %v1867_v24, 0.0  ;;  %v2005_v39 = vmul.f32 0.2, %v1867_v24  ;;  %v7654_v21 = vsel %vm1972_vm4, %v1864_v29, %v2004_v1 }
 0x200   : > { %vm1971_vm8 = vcmp.ge.f32.partialorder %v1859_v61, 0.0  ;;  %v2003_v13 = vmul.f32 0.2, %v1859_v61  ;;  %v2068_v60 = vmul.f32 %v7654_v21, %v7654_v21  ;;  %v7658_v37 = vsel %vm1970_vm5, %v1856_v19, %v2002_v22  ;;  %v6076_v22 = vld [vmem:[%s9318_s3 + $0x80] sm:$0xff]  }
 0x201   : > { %v7660_v3 = vsel %vm1973_vm6, %v1867_v24, %v2005_v39  ;;  %v2066_v31 = vmul.f32 %v7658_v37, %v7658_v37  ;;  %4869 = vmatprep.subr.bf16.mxu0 %v6076_v22 }
 0x202   : > { %v2112_v27 = vsel %vm1528_vm7, %v2068_v60, 0.0  ;;  %v2069_v56 = vmul.f32 %v7660_v3, %v7660_v3  ;;  %v7667_v30 = vsel %vm1971_vm8, %v1859_v61, %v2003_v13  ;;  %4870 = vmatpush3.bf16.msra.mxu0 %v6076_v22 }
 0x203   : > { %2113 = vadd.xlane.f32.xlu1 %v2112_v27  ;;  %v2067_v34 = vmul.f32 %v7667_v30, %v7667_v30  ;;  %v2106_v10 = vsel %vm1528_vm7, %v2066_v31, 0.0 }
 0x204   : > { %v2115_v33 = vsel %vm1528_vm7, %v2069_v56, 0.0 }
 0x205   : > { %2116 = vadd.xlane.f32.xlu0 %v2115_v33  ;;  %v2109_v44 = vsel %vm1528_vm7, %v2067_v34, 0.0 }
 0x207   : > { %2107 = vadd.xlane.f32.xlu1 %v2106_v10 }
 0x209   : > { %2110 = vadd.xlane.f32.xlu0 %v2109_v44  ;;  %v6077_v44 = vld [vmem:[%s9318_s3 + $0x88] sm:$0xff]  }
 0x20a   : > { %4871 = vmatprep.subr.bf16.mxu0 %v6077_v44 }
 0x20b   : > { %4872 = vmatpush3.bf16.msra.mxu0 %v6077_v44 }
 0x20e   : > { %v4847_v26 = vpop.f32.mrb[8].mxu0 }
 0x20f   : > { %v1880_v5 = vadd.f32 %v4847_v26, %v7624_v18  ;;  %v1871_v63 = vpop.f32.mrb[9].mxu0 }
 0x210   : > { %v1872_v35 = vadd.f32 %v7624_v18, %v1871_v63  ;;  %v4848_v42 = vpop.f32.mrb[10].mxu0 }
 0x211   : > { %vm1976_vm9 = vcmp.ge.f32.partialorder %v1880_v5, 0.0  ;;  %v2008_v59 = vmul.f32 0.2, %v1880_v5  ;;  %v1883_v62 = vadd.f32 %v4848_v42, %v7624_v18  ;;  %v1874_v20 = vpop.f32.mrb[11].mxu0 }
 0x212   : > { %vm1974_vm10 = vcmp.ge.f32.partialorder %v1872_v35, 0.0  ;;  %v2006_v38 = vmul.f32 0.2, %v1872_v35  ;;  %v1875_v9 = vadd.f32 %v7624_v18, %v1874_v20 }
 0x213   : > { %vm1977_vm12 = vcmp.ge.f32.partialorder %v1883_v62, 0.0  ;;  %v2009_v51 = vmul.f32 0.2, %v1883_v62  ;;  %v7678_v6 = vsel %vm1976_vm9, %v1880_v5, %v2008_v59 }
 0x214   : > { %vm1975_vm13 = vcmp.ge.f32.partialorder %v1875_v9, 0.0  ;;  %v2007_v54 = vmul.f32 0.2, %v1875_v9  ;;  %v2072_v23 = vmul.f32 %v7678_v6, %v7678_v6  ;;  %v7682_v15 = vsel %vm1974_vm10, %v1872_v35, %v2006_v38 }
 0x215   : > { %v7684_v36 = vsel %vm1977_vm12, %v1883_v62, %v2009_v51  ;;  %v2070_v32 = vmul.f32 %v7682_v15, %v7682_v15 }
 0x216   : > { %v2124_v8 = vsel %vm1528_vm7, %v2072_v23, 0.0  ;;  %v2073_v57 = vmul.f32 %v7684_v36, %v7684_v36  ;;  %v7691_v49 = vsel %vm1975_vm13, %v1875_v9, %v2007_v54 }
 0x217   : > { %2125 = vadd.xlane.f32.xlu1 %v2124_v8  ;;  %v2071_v7 = vmul.f32 %v7691_v49, %v7691_v49  ;;  %v2118_v46 = vsel %vm1528_vm7, %v2070_v32, 0.0 }
 0x218   : > { %v2127_v45 = vsel %vm1528_vm7, %v2073_v57, 0.0 }
 0x219   : > { %2128 = vadd.xlane.f32.xlu0 %v2127_v45  ;;  %v2121_v4 = vsel %vm1528_vm7, %v2071_v7, 0.0 }
 0x21b   : > { %2119 = vadd.xlane.f32.xlu1 %v2118_v46 }
 0x21d   : > { %2122 = vadd.xlane.f32.xlu0 %v2121_v4 }
 0x222   : > { %v4851_v25 = vpop.f32.mrb[12].mxu0 }
 0x223   : > { %v1896_v43 = vadd.f32 %v4851_v25, %v7624_v18  ;;  %v1887_v17 = vpop.f32.mrb[13].mxu0 }
 0x224   : > { %v1888_v41 = vadd.f32 %v7624_v18, %v1887_v17  ;;  %v4852_v40 = vpop.f32.mrb[14].mxu0 }
 0x225   : > { %vm1980_vm14 = vcmp.ge.f32.partialorder %v1896_v43, 0.0  ;;  %v2012_v29 = vmul.f32 0.2, %v1896_v43  ;;  %v1899_v55 = vadd.f32 %v4852_v40, %v7624_v18  ;;  %v1890_v19 = vpop.f32.mrb[15].mxu0 }
 0x226   : > { %vm1978_vm15 = vcmp.ge.f32.partialorder %v1888_v41, 0.0  ;;  %v2010_v2 = vmul.f32 0.2, %v1888_v41  ;;  %v1891_v1 = vadd.f32 %v7624_v18, %v1890_v19 }
 0x227   : > { %vm1981_vm3 = vcmp.ge.f32.partialorder %v1899_v55, 0.0  ;;  %v2013_v24 = vmul.f32 0.2, %v1899_v55  ;;  %v7702_v0 = vsel %vm1980_vm14, %v1896_v43, %v2012_v29 }
 0x228   : > { %vm1979_vm4 = vcmp.ge.f32.partialorder %v1891_v1, 0.0  ;;  %v2011_v61 = vmul.f32 0.2, %v1891_v1  ;;  %v2076_v39 = vmul.f32 %v7702_v0, %v7702_v0  ;;  %v7709_v13 = vsel %vm1978_vm15, %v1888_v41, %v2010_v2 }
 0x229   : > { %v7711_v60 = vsel %vm1981_vm3, %v1899_v55, %v2013_v24  ;;  %v2074_v31 = vmul.f32 %v7709_v13, %v7709_v13 }
 0x22a   : > { %v2136_v27 = vsel %vm1528_vm7, %v2076_v39, 0.0  ;;  %v2077_v56 = vmul.f32 %v7711_v60, %v7711_v60  ;;  %v7718_v33 = vsel %vm1979_vm4, %v1891_v1, %v2011_v61 }
 0x22b   : > { %2137 = vadd.xlane.f32.xlu1 %v2136_v27  ;;  %v2075_v10 = vmul.f32 %v7718_v33, %v7718_v33  ;;  %v2130_v26 = vsel %vm1528_vm7, %v2074_v31, 0.0 }
 0x22c   : > { %v2139_v34 = vsel %vm1528_vm7, %v2077_v56, 0.0 }
 0x22d   : > { %2140 = vadd.xlane.f32.xlu0 %v2139_v34  ;;  %v2133_v5 = vsel %vm1528_vm7, %v2075_v10, 0.0 }
 0x22f   : > { %2131 = vadd.xlane.f32.xlu1 %v2130_v26 }
 0x231   : > { %2134 = vadd.xlane.f32.xlu0 %v2133_v5 }
 0x236   : > { %v4855_v63 = vpop.f32.mrb[16].mxu0 }
 0x237   : > { %v1912_v35 = vadd.f32 %v4855_v63, %v7624_v18  ;;  %v1903_v42 = vpop.f32.mrb[17].mxu0 }
 0x238   : > { %v1904_v59 = vadd.f32 %v7624_v18, %v1903_v42  ;;  %v4856_v62 = vpop.f32.mrb[18].mxu0 }
 0x239   : > { %vm1984_vm5 = vcmp.ge.f32.partialorder %v1912_v35, 0.0  ;;  %v2016_v20 = vmul.f32 0.2, %v1912_v35  ;;  %v1915_v38 = vadd.f32 %v4856_v62, %v7624_v18  ;;  %v1906_v9 = vpop.f32.mrb[19].mxu0 }
 0x23a   : > { %vm1982_vm6 = vcmp.ge.f32.partialorder %v1904_v59, 0.0  ;;  %v2014_v51 = vmul.f32 0.2, %v1904_v59  ;;  %v1907_v54 = vadd.f32 %v7624_v18, %v1906_v9 }
 0x23b   : > { %vm1985_vm8 = vcmp.ge.f32.partialorder %v1915_v38, 0.0  ;;  %v2017_v23 = vmul.f32 0.2, %v1915_v38  ;;  %v7732_v8 = vsel %vm1984_vm5, %v1912_v35, %v2016_v20 }
 0x23c   : > { %vm1983_vm9 = vcmp.ge.f32.partialorder %v1907_v54, 0.0  ;;  %v2015_v57 = vmul.f32 0.2, %v1907_v54  ;;  %v2080_v32 = vmul.f32 %v7732_v8, %v7732_v8  ;;  %v7736_v45 = vsel %vm1982_vm6, %v1904_v59, %v2014_v51 }
 0x23d   : > { %v7738_v7 = vsel %vm1985_vm8, %v1915_v38, %v2017_v23  ;;  %v2078_v25 = vmul.f32 %v7736_v45, %v7736_v45 }
 0x23e   : > { %v2148_v46 = vsel %vm1528_vm7, %v2080_v32, 0.0  ;;  %v2081_v4 = vmul.f32 %v7738_v7, %v7738_v7  ;;  %v7745_v43 = vsel %vm1983_vm9, %v1907_v54, %v2015_v57 }
 0x23f   : > { %2149 = vadd.xlane.f32.xlu1 %v2148_v46  ;;  %v2079_v41 = vmul.f32 %v7745_v43, %v7745_v43  ;;  %v2142_v40 = vsel %vm1528_vm7, %v2078_v25, 0.0 }
 0x240   : > { %v2151_v17 = vsel %vm1528_vm7, %v2081_v4, 0.0 }
 0x241   : > { %2152 = vadd.xlane.f32.xlu0 %v2151_v17  ;;  %v2145_v29 = vsel %vm1528_vm7, %v2079_v41, 0.0 }
 0x243   : > { %2143 = vadd.xlane.f32.xlu1 %v2142_v40 }
 0x245   : > { %2146 = vadd.xlane.f32.xlu0 %v2145_v29 }
 0x24c   : > { %v4859_v55 = vpop.f32.mrb[20].mxu0 }
 0x24d   : > { %v1928_v19 = vadd.f32 %v4859_v55, %v7624_v18  ;;  %v1919_v2 = vpop.f32.mrb[21].mxu0 }
 0x24e   : > { %v1920_v1 = vadd.f32 %v7624_v18, %v1919_v2  ;;  %v4860_v24 = vpop.f32.mrb[22].mxu0 }
 0x24f   : > { %vm1988_vm10 = vcmp.ge.f32.partialorder %v1928_v19, 0.0  ;;  %v2020_v22 = vmul.f32 0.2, %v1928_v19  ;;  %v1931_v61 = vadd.f32 %v4860_v24, %v7624_v18  ;;  %v1922_v39 = vpop.f32.mrb[23].mxu0 }
 0x250   : > { %vm1986_vm12 = vcmp.ge.f32.partialorder %v1920_v1, 0.0  ;;  %v2018_v27 = vmul.f32 0.2, %v1920_v1  ;;  %v1923_v56 = vadd.f32 %v7624_v18, %v1922_v39 }
 0x251   : > { %vm1989_vm13 = vcmp.ge.f32.partialorder %v1931_v61, 0.0  ;;  %v2021_v31 = vmul.f32 0.2, %v1931_v61  ;;  %v7756_v34 = vsel %vm1988_vm10, %v1928_v19, %v2020_v22 }
 0x252   : > { %vm1987_vm14 = vcmp.ge.f32.partialorder %v1923_v56, 0.0  ;;  %v2019_v10 = vmul.f32 0.2, %v1923_v56  ;;  %v2084_v44 = vmul.f32 %v7756_v34, %v7756_v34  ;;  %v7760_v26 = vsel %vm1986_vm12, %v1920_v1, %v2018_v27 }
 0x253   : > { %v7762_v5 = vsel %vm1989_vm13, %v1931_v61, %v2021_v31  ;;  %v2082_v42 = vmul.f32 %v7760_v26, %v7760_v26  ;;  %vm3368_vm12 = vcmask 785408  }
 0x254   : > { %v2160_v63 = vsel %vm1528_vm7, %v2084_v44, 0.0  ;;  %v2085_v35 = vmul.f32 %v7762_v5, %v7762_v5  ;;  %v7769_v59 = vsel %vm1987_vm14, %v1923_v56, %v2019_v10  ;;  %v7800_v44 = vpop.permute.xlu0 %5597 }
 0x255   : > { %2161 = vadd.xlane.f32.xlu1 %v2160_v63  ;;  %v2083_v20 = vmul.f32 %v7769_v59, %v7769_v59  ;;  %v2154_v38 = vsel %vm1528_vm7, %v2082_v42, 0.0 }
 0x256   : > { %v2163_v62 = vsel %vm1528_vm7, %v2085_v35, 0.0 }
 0x257   : > { %2164 = vadd.xlane.f32.xlu0 %v2163_v62  ;;  %v2157_v9 = vsel %vm1528_vm7, %v2083_v20, 0.0 }
 0x259   : > { %2155 = vadd.xlane.f32.xlu1 %v2154_v38 }
 0x25b   : > { %2158 = vadd.xlane.f32.xlu0 %v2157_v9 }
 0x264   : > { %v4863_v51 = vpop.f32.mrb[24].mxu0 }
 0x265   : > { %v1944_v54 = vadd.f32 %v4863_v51, %v7624_v18  ;;  %v1935_v23 = vpop.f32.mrb[25].mxu0 }
 0x266   : > { %v1936_v57 = vadd.f32 %v7624_v18, %v1935_v23  ;;  %v4864_v32 = vpop.f32.mrb[26].mxu0 }
 0x267   : > { %vm1992_vm15 = vcmp.ge.f32.partialorder %v1944_v54, 0.0  ;;  %v2024_v46 = vmul.f32 0.2, %v1944_v54  ;;  %v1947_v4 = vadd.f32 %v4864_v32, %v7624_v18  ;;  %v1938_v25 = vpop.f32.mrb[27].mxu0 }
 0x268   : > { %vm1990_vm3 = vcmp.ge.f32.partialorder %v1936_v57, 0.0  ;;  %v2022_v17 = vmul.f32 0.2, %v1936_v57  ;;  %v1939_v41 = vadd.f32 %v7624_v18, %v1938_v25 }
 0x269   : > { %vm1993_vm4 = vcmp.ge.f32.partialorder %v1947_v4, 0.0  ;;  %v2025_v40 = vmul.f32 0.2, %v1947_v4  ;;  %v7780_v29 = vsel %vm1992_vm15, %v1944_v54, %v2024_v46 }
 0x26a   : > { %vm1991_vm5 = vcmp.ge.f32.partialorder %v1939_v41, 0.0  ;;  %v2023_v55 = vmul.f32 0.2, %v1939_v41  ;;  %v2088_v19 = vmul.f32 %v7780_v29, %v7780_v29  ;;  %v7784_v2 = vsel %vm1990_vm3, %v1936_v57, %v2022_v17 }
 0x26b   : > { %v2086_v1 = vmul.f32 %v7784_v2, %v7784_v2  ;;  %v7788_v24 = vsel %vm1993_vm4, %v1947_v4, %v2025_v40 }
 0x26c   : > { %v2172_v22 = vsel %vm1528_vm7, %v2088_v19, 0.0  ;;  %v7791_v61 = vsel %vm1991_vm5, %v1939_v41, %v2023_v55  ;;  %v2089_v56 = vmul.f32 %v7788_v24, %v7788_v24 }
 0x26d   : > { %2173 = vadd.xlane.f32.xlu0 %v2172_v22  ;;  %v2166_v39 = vsel %vm1528_vm7, %v2086_v1, 0.0  ;;  %v2087_v27 = vmul.f32 %v7791_v61, %v7791_v61 }
 0x26e   : > { %2167 = vadd.xlane.f32.xlu1 %v2166_v39  ;;  %v2175_v10 = vsel %vm1528_vm7, %v2089_v56, 0.0 }
 0x26f   : > { %v2169_v31 = vsel %vm1528_vm7, %v2087_v27, 0.0 }
 0x271   : > { %2170 = vadd.xlane.f32.xlu0 %v2169_v31 }
 0x272   : > { %2176 = vadd.xlane.f32.xlu1 %v2175_v10 }
 0x27c   : > { %v2102_v63 = vpop.xlane.xlu0 %2101  ;;  %v4867_v35 = vpop.f32.mrb[28].mxu0 }
 0x27d   : > { %v2193_v42 = vmul.f32 0.03125, %v2102_v63  ;;  %v1960_v62 = vadd.f32 %v4867_v35, %v7624_v18  ;;  %v1951_v20 = vpop.f32.mrb[29].mxu0 }
 0x27e   : > { %v1952_v38 = vadd.f32 %v7624_v18, %v1951_v20  ;;  %v4868_v9 = vpop.f32.mrb[30].mxu0 }
 0x27f   : > { %v2225_v51 = vadd.f32 1e-08, %v2193_v42  ;;  %vm1996_vm6 = vcmp.ge.f32.partialorder %v1960_v62, 0.0  ;;  %v2028_v54 = vmul.f32 0.2, %v1960_v62  ;;  %v1963_v23 = vadd.f32 %v4868_v9, %v7624_v18  ;;  %v2099_v57 = vpop.xlane.xlu1 %2098  ;;  %v1954_v32 = vpop.f32.mrb[31].mxu0 }
 0x280   : > { %vm1994_vm8 = vcmp.ge.f32.partialorder %v1952_v38, 0.0  ;;  %v2026_v46 = vmul.f32 0.2, %v1952_v38  ;;  %v2192_v4 = vmul.f32 0.03125, %v2099_v57  ;;  %v1955_v25 = vadd.f32 %v7624_v18, %v1954_v32  ;;  %v2096_v17 = vpop.xlane.xlu0 %2095 }
 0x281   : > { %6094 = vrsqrt.f32 %v2225_v51  ;;  %vm1997_vm9 = vcmp.ge.f32.partialorder %v1963_v23, 0.0  ;;  %v2029_v41 = vmul.f32 0.2, %v1963_v23  ;;  %v2191_v40 = vmul.f32 0.03125, %v2096_v17 }
 0x282   : > { %v2224_v55 = vadd.f32 1e-08, %v2192_v4  ;;  %vm1995_vm10 = vcmp.ge.f32.partialorder %v1955_v25, 0.0  ;;  %v2027_v19 = vmul.f32 0.2, %v1955_v25  ;;  %v7806_v1 = vsel %vm1994_vm8, %v1952_v38, %v2026_v46 }
 0x283   : > { %v2223_v22 = vadd.f32 1e-08, %v2191_v40  ;;  %v2090_v39 = vmul.f32 %v7806_v1, %v7806_v1  ;;  %v7811_v27 = vsel %vm1996_vm6, %v1960_v62, %v2028_v54  ;;  %v7817_v10 = vsel %vm1997_vm9, %v1963_v23, %v2029_v41 }
 0x284   : > { %6096 = vrsqrt.f32 %v2224_v55  ;;  %v2105_v56 = vpop.xlane.xlu0 %2104  ;;  %v7813_v18 = vsel %vm1995_vm10, %v1955_v25, %v2027_v19  ;;  %v2092_v31 = vmul.f32 %v7811_v27, %v7811_v27  ;;  %v2093_v38 = vmul.f32 %v7817_v10, %v7817_v10 }
 0x285   : > { %6098 = vrsqrt.f32 %v2223_v22  ;;  %v2194_v63 = vmul.f32 0.03125, %v2105_v56  ;;  %v2178_v35 = vsel %vm1528_vm7, %v2090_v39, 0.0  ;;  %v2091_v42 = vmul.f32 %v7813_v18, %v7813_v18  ;;  %v6078_v39 = vld [vmem:[%s9318_s3 + $0x40] sm:$0xff]  }
 0x286   : > { %2179 = vadd.xlane.f32.xlu0 %v2178_v35  ;;  %v2184_v9 = vsel %vm1528_vm7, %v2092_v31, 0.0  ;;  %v2187_v54 = vsel %vm1528_vm7, %v2093_v38, 0.0  ;;  %4697 = vmatprep.subr.bf16.mxu1 %v6078_v39 }
 0x287   : > { %v2226_v20 = vadd.f32 1e-08, %v2194_v63  ;;  %v2181_v62 = vsel %vm1528_vm7, %v2091_v42, 0.0 }
 0x288   : > { %2182 = vadd.xlane.f32.xlu1 %v2181_v62 }
 0x289   : > { %6100 = vrsqrt.f32 %v2226_v20 }
 0x28a   : > { %2185 = vadd.xlane.f32.xlu0 %v2184_v9 }
 0x28b   : > { %v6095_v51 = vpop.eup %6094 }
 0x28c   : > { %v2289_v23 = vmul.f32 %v6095_v51, %v7630_v16  ;;  %2188 = vadd.xlane.f32.xlu1 %v2187_v54  ;;  %v6079_v16 = vld [vmem:[%s9318_s3] sm:$0xff]  }
 0x28d   : > { %4698 = vmatpush3.bf16.msra.mxu1 %v6079_v16 }
 0x28e   : > { %v6097_v57 = vpop.eup %6096  ;;  %v2354_v46 = vrot.slane %v2289_v23, 7 }
 0x28f   : > { %v6099_v32 = vpop.eup %6098  ;;  %v2288_v25 = vmul.f32 %v6097_v57, %v7637_v48 }
 0x290   : > { %v2114_v4 = vpop.xlane.xlu1 %2113  ;;  %v2287_v41 = vmul.f32 %v6099_v32, %v7634_v47  ;;  %v7838_v48 = vsel %vm321_vm0, 0.0, %v2354_v46 }
 0x291   : > { %v2197_v17 = vmul.f32 0.03125, %v2114_v4  ;;  %v2352_v63 = vrot.slane %v2288_v25, 7  ;;  %v2684_v54 = vrot.slane %v7838_v48, 2  ;;  %v2513_v23 = vrot.slane %v7838_v48, 1 }
 0x292   : > { %v2117_v40 = vpop.xlane.xlu0 %2116  ;;  %v2351_v62 = vrot.slane %v2287_v41, 7 }
 0x293   : > { %v6101_v55 = vpop.eup %6100  ;;  %v2229_v19 = vadd.f32 1e-08, %v2197_v17  ;;  %v2198_v22 = vmul.f32 0.03125, %v2117_v40  ;;  %v7848_v4 = vsel %vm321_vm0, %v2352_v63, 0.0 }
 0x294   : > { %v2290_v56 = vmul.f32 %v6101_v55, %v7643_v52  ;;  %v2108_v31 = vpop.xlane.xlu1 %2107 }
 0x295   : > { %6102 = vrsqrt.f32 %v2229_v19  ;;  %v2230_v47 = vadd.f32 1e-08, %v2198_v22  ;;  %v2195_v35 = vmul.f32 0.03125, %v2108_v31  ;;  %v7858_v19 = vsel %vm321_vm0, 0.0, %v2351_v62 }
 0x296   : > { %v2355_v42 = vrot.slane %v2290_v56, 7  ;;  %v2111_v20 = vpop.xlane.xlu0 %2110  ;;  %v2679_v31 = vrot.slane %v7858_v19, 2 }
 0x297   : > { %6104 = vrsqrt.f32 %v2230_v47  ;;  %v2227_v38 = vadd.f32 1e-08, %v2195_v35  ;;  %v2196_v9 = vmul.f32 0.03125, %v2111_v20  ;;  %v2682_v47 = vrot.slane %v7848_v4, 2 }
 0x298   : > { %v7841_v51 = vsel %vm321_vm0, %v2354_v46, %v2355_v42  ;;  %v2463_v52 = vsel %vm321_vm0, %v2355_v42, 0.0  ;;  %v7852_v46 = vsel %vm321_vm0, %v2351_v62, %v2352_v63  ;;  %v6080_v62 = vld [vmem:[%s9318_s3 + $0x48] sm:$0xff]  }
 0x299   : > { %6106 = vrsqrt.f32 %v2227_v38  ;;  %v2228_v57 = vadd.f32 1e-08, %v2196_v9  ;;  %v2685_v32 = vrot.slane %v7841_v51, 2  ;;  %v2687_v25 = vrot.slane %v2463_v52, 2  ;;  %4699 = vmatprep.subr.bf16.mxu1 %v6080_v62 }
 0x29a   : > { %v2514_v17 = vrot.slane %v7841_v51, 1  ;;  %v2516_v41 = vrot.slane %v2463_v52, 1  ;;  %v5601_v40 = vpack.i.bf16 %v7841_v51, %v7838_v48  ;;  %v2680_v63 = vrot.slane %v7852_v46, 2 }
 0x29b   : > { %6108 = vrsqrt.f32 %v2228_v57  ;;  %v2686_v55 = vsel %vm664_vm2, %v2684_v54, %v2685_v32  ;;  %v2688_v22 = vsel %vm664_vm2, %v2685_v32, %v2687_v25  ;;  %v2508_v9 = vrot.slane %v7858_v19, 1  ;;  %v6081_v54 = vld [vmem:[%s9318_s3 + $0x8] sm:$0xff]  }
 0x29c   : > { %v7862_v39 = vsel %vm487_vm1, %v2513_v23, %v2514_v17  ;;  %v7865_v16 = vsel %vm487_vm1, %v2514_v17, %v2516_v41  ;;  %v3499_v56 = vpack.c.bf16 %v2688_v22, %v2686_v55  ;;  %v2509_v52 = vrot.slane %v7852_v46, 1  ;;  %4700 = vmatpush3.bf16.msra.mxu1 %v6081_v54 }
 0x29d   : > { %5602 = vrot.lane.b32.xlu1 %v5601_v40, %s6294_s14  ;;  %v5616_v42 = vpack.i.bf16 %v7865_v16, %v7862_v39  ;;  %v5611_v23 = vpack.i.bf16 %v7852_v46, %v7858_v19  ;;  %v2681_v57 = vsel %vm664_vm2, %v2679_v31, %v2680_v63  ;;  %v2683_v32 = vsel %vm664_vm2, %v2680_v63, %v2682_v47 }
 0x29e   : > { %4873 = vmatprep.mubr.msk.bf16.mxu0 %vm1528_vm7, %v3499_v56  ;;  %v5621_v41 = vpack.i.bf16 %v2688_v22, %v2686_v55  ;;  %v7897_v63 = vpack.i.bf16 %v2683_v32, %v2681_v57  ;;  %v7900_v55 = vsel %vm487_vm1, %v2508_v9, %v2509_v52 }
 0x29f   : > { %v6103_v35 = vpop.eup %6102 }
 0x2a0   : > { %v2293_v20 = vmul.f32 %v6103_v35, %v7654_v21  ;;  %5607 = vrot.lane.b32.xlu0 %v5601_v40, %s6295_s8 }
 0x2a1   : > { %v6105_v38 = vpop.eup %6104  ;;  %5617 = vrot.lane.b32.xlu1 %v5616_v42, %s6295_s8 }
 0x2a2   : > { %v2294_v21 = vmul.f32 %v6105_v38, %v7660_v3  ;;  %v2360_v17 = vrot.slane %v2293_v20, 7  ;;  %v2511_v3 = vrot.slane %v7848_v4, 1  ;;  %v6082_v38 = vld [vmem:[%s9318_s3 + $0x50] sm:$0xff]  }
 0x2a3   : > { %v6107_v25 = vpop.eup %6106  ;;  %4701 = vmatprep.subr.bf16.mxu1 %v6082_v38 }
 0x2a4   : > { %v2361_v40 = vrot.slane %v2294_v21, 7  ;;  %v2291_v56 = vmul.f32 %v6107_v25, %v7658_v37  ;;  %v2126_v35 = vpop.xlane.xlu1 %2125  ;;  %5612 = vrot.lane.b32.xlu0 %v5611_v23, %s6295_s8  ;;  %v6083_v37 = vld [vmem:[%s9318_s3 + $0x10] sm:$0xff]   ;;  %v7911_v23 = vsel %vm321_vm0, 0.0, %v2360_v17 }
 0x2a5   : > { %v6109_v31 = vpop.eup %6108  ;;  %v2201_v12 = vmul.f32 0.03125, %v2126_v35  ;;  %5622 = vrot.lane.b32.xlu1 %v5621_v41, %s6290_s25  ;;  %9498 = vst [vmem:[#allocation29_spill] sm:$0xff] %v7911_v23  ;;  %4702 = vmatpush3.bf16.msra.mxu1 %v6083_v37  ;;  %v2523_v28 = vrot.slane %v7911_v23, 1 }
 0x2a6   : > { %v2357_v22 = vrot.slane %v2291_v56, 7  ;;  %v2292_v4 = vmul.f32 %v6109_v31, %v7667_v30  ;;  %v2129_v47 = vpop.xlane.xlu0 %2128  ;;  %v7907_v20 = vsel %vm321_vm0, %v2360_v17, %v2361_v40  ;;  %v2465_v62 = vsel %vm321_vm0, %v2361_v40, 0.0 }
 0x2a7   : > { %9497 = vst [vmem:[#allocation27_spill] sm:$0xff] %v7907_v20  ;;  %v2233_v54 = vadd.f32 1e-08, %v2201_v12  ;;  %v2202_v21 = vmul.f32 0.03125, %v2129_v47  ;;  %v7918_v30 = vsel %vm487_vm1, %v2509_v52, %v2511_v3  ;;  %v2695_v25 = vrot.slane %v7907_v20, 2  ;;  %v6084_v12 = vld [vmem:[%s9318_s3 + $0x58] sm:$0xff]  }
 0x2a8   : > { %v7914_v9 = vsel %vm321_vm0, 0.0, %v2357_v22  ;;  %v2358_v57 = vrot.slane %v2292_v4, 7  ;;  %v2120_v32 = vpop.xlane.xlu1 %2119  ;;  %5627 = vrot.lane.b32.xlu0 %v5616_v42, %s6290_s25  ;;  %v2697_v56 = vrot.slane %v2465_v62, 2  ;;  %v6085_v42 = vld [vmem:[%s9318_s3 + $0x18] sm:$0xff]   ;;  %v7935_v38 = vpack.i.bf16 %v7907_v20, %v7911_v23  ;;  %4703 = vmatprep.subr.bf16.mxu1 %v6084_v12 }
 0x2a9   : > { %9499 = vst [vmem:[#allocation5_spill] sm:$0xff] %v7914_v9  ;;  %6110 = vrsqrt.f32 %v2233_v54  ;;  %v2234_v17 = vadd.f32 1e-08, %v2202_v21  ;;  %v2199_v40 = vmul.f32 0.03125, %v2120_v32  ;;  %5637 = vrot.lane.b32.xlu1 %v7897_v63, %s6290_s25  ;;  %v2694_v31 = vrot.slane %v7911_v23, 2  ;;  %4704 = vmatpush3.bf16.msra.mxu1 %v6085_v42  ;;  %v6087_v54 = vld [vmem:[%s9318_s3 + $0x20] sm:$0xff]  }
 0x2aa   : > { %v7930_v52 = vsel %vm321_vm0, %v2357_v22, %v2358_v57  ;;  %v2464_v35 = vsel %vm321_vm0, %v2358_v57, 0.0  ;;  %v2123_v3 = vpop.xlane.xlu0 %2122  ;;  %v6086_v22 = vld [vmem:[%s9318_s3 + $0x60] sm:$0xff]   ;;  %v2689_v21 = vrot.slane %v7914_v9, 2  ;;  %v2524_v12 = vrot.slane %v7907_v20, 1 }
 0x2ab   : > { %v2692_v37 = vrot.slane %v2464_v35, 2  ;;  %6112 = vrsqrt.f32 %v2234_v17  ;;  %v2231_v4 = vadd.f32 1e-08, %v2199_v40  ;;  %v2200_v47 = vmul.f32 0.03125, %v2123_v3  ;;  %v6088_v17 = vld [vmem:[%s9318_s3 + $0x68] sm:$0xff]   ;;  %4705 = vmatprep.subr.bf16.mxu1 %v6086_v22 }
 0x2ac   : > { %5632 = vrot.lane.b32.xlu0 %v5621_v41, %s6294_s14  ;;  %v2690_v57 = vrot.slane %v7930_v52, 2  ;;  %v2696_v32 = vsel %vm664_vm2, %v2694_v31, %v2695_v25  ;;  %v2698_v42 = vsel %vm664_vm2, %v2695_v25, %v2697_v56  ;;  %v2526_v3 = vrot.slane %v2465_v62, 1  ;;  %v6089_v62 = vld [vmem:[%s9318_s3 + $0x28] sm:$0xff]  }
 0x2ad   : > { %6114 = vrsqrt.f32 %v2231_v4  ;;  %v2232_v40 = vadd.f32 1e-08, %v2200_v47  ;;  %5652 = vrot.lane.b32.xlu1 %v7935_v38, %s6294_s14  ;;  %v5641_v31 = vpack.i.bf16 %v7918_v30, %v7900_v55  ;;  %v5656_v4 = vpack.i.bf16 %v7930_v52, %v7914_v9  ;;  %4706 = vmatpush3.bf16.msra.mxu1 %v6087_v54  ;;  %v6090_v47 = vld [vmem:[%s9318_s3 + $0x70] sm:$0xff]  }
 0x2ae   : > { %v2691_v41 = vsel %vm664_vm2, %v2689_v21, %v2690_v57  ;;  %v2693_v50 = vsel %vm664_vm2, %v2690_v57, %v2692_v37  ;;  %v3505_v25 = vpack.c.bf16 %v2698_v42, %v2696_v32  ;;  %v7967_v56 = vsel %vm487_vm1, %v2523_v28, %v2524_v12  ;;  %4707 = vmatprep.subr.bf16.mxu1 %v6088_v17  ;;  %v6091_v57 = vld [vmem:[%s9318_s3 + $0x30] sm:$0xff]  }
 0x2af   : > { %6116 = vrsqrt.f32 %v2232_v40  ;;  %v3502_v14 = vpack.c.bf16 %v2693_v50, %v2691_v41  ;;  %v7970_v37 = vsel %vm487_vm1, %v2524_v12, %v2526_v3  ;;  %v2519_v22 = vrot.slane %v7930_v52, 1 }
 0x2b0   : > { %5642 = vrot.lane.b32.xlu0 %v5641_v31, %s6290_s25  ;;  %v2521_v54 = vrot.slane %v2464_v35, 1  ;;  %v7981_v28 = vpack.i.bf16 %v7970_v37, %v7967_v56  ;;  %v6092_v35 = vld [vmem:[%s9318_s3 + $0x78] sm:$0xff]  }
 0x2b1   : > { %4874 = vmatmul.mubr.msk.bf16.vlgmr.msra.gmra.mrb[32].mxu0 %vm1528_vm7, %v3502_v14  ;;  %5657 = vrot.lane.b32.xlu1 %v5656_v4, %s6294_s14  ;;  %v2518_v14 = vrot.slane %v7914_v9, 1 }
 0x2b2   : > { %4877 = vmatprep.mubr.msk.bf16.mxu0 %vm1528_vm7, %v3505_v25  ;;  %4708 = vmatpush3.bf16.msra.mxu1 %v6089_v62  ;;  %v8002_v62 = vpack.i.bf16 %v2698_v42, %v2696_v32  ;;  %v6093_v25 = vld [vmem:[%s9318_s3 + $0x38] sm:$0xff]   ;;  %v5691_v42 = vpack.i.bf16 %v2693_v50, %v2691_v41 }
 0x2b3   : > { %v6111_v21 = vpop.eup %6110  ;;  %4709 = vmatprep.subr.bf16.mxu1 %v6090_v47  ;;  %v7997_v3 = vsel %vm487_vm1, %v2518_v14, %v2519_v22 }
 0x2b4   : > { %v2297_v12 = vmul.f32 %v6111_v21, %v7678_v6  ;;  %5647 = vrot.lane.b32.xlu0 %v7897_v63, %s6294_s14  ;;  %v8000_v6 = vsel %vm487_vm1, %v2519_v22, %v2521_v54 }
 0x2b5   : > { %v6113_v17 = vpop.eup %6112  ;;  %5667 = vrot.lane.b32.xlu1 %v7981_v28, %s6295_s8  ;;  %v5686_v32 = vpack.i.bf16 %v8000_v6, %v7997_v3 }
 0x2b6   : > { %v2298_v40 = vmul.f32 %v6113_v17, %v7684_v36  ;;  %v2366_v31 = vrot.slane %v2297_v12, 7  ;;  %4710 = vmatpush3.bf16.msra.mxu1 %v6091_v57 }
 0x2b7   : > { %v6115_v63 = vpop.eup %6114  ;;  %4711 = vmatprep.subr.bf16.mxu1 %v6092_v35 }
 0x2b8   : > { %v2367_v47 = vrot.slane %v2298_v40, 7  ;;  %v2295_v21 = vmul.f32 %v6115_v63, %v7682_v15  ;;  %v2138_v23 = vpop.xlane.xlu1 %2137  ;;  %5662 = vrot.lane.b32.xlu0 %v5656_v4, %s6295_s8  ;;  %v8021_v4 = vsel %vm321_vm0, 0.0, %v2366_v31 }
 0x2b9   : > { %v6117_v36 = vpop.eup %6116  ;;  %v2205_v14 = vmul.f32 0.03125, %v2138_v23  ;;  %5672 = vrot.lane.b32.xlu1 %v8002_v62, %s6290_s25  ;;  %9501 = vst [vmem:[#allocation30_spill] sm:$0xff] %v8021_v4 }
 0x2ba   : > { %v8014_v22 = vsel %vm321_vm0, %v2366_v31, %v2367_v47  ;;  %v2363_v54 = vrot.slane %v2295_v21, 7  ;;  %v2296_v57 = vmul.f32 %v6117_v36, %v7691_v49  ;;  %v2141_v15 = vpop.xlane.xlu0 %2140  ;;  %v8018_v12 = vsel %vm321_vm0, %v2367_v47, 0.0  ;;  %4712 = vmatpush3.bf16.msra.mxu1 %v6093_v25 }
 0x2bb   : > { %9500 = vst [vmem:[#allocation6_spill] sm:$0xff] %v8014_v22  ;;  %v2237_v23 = vadd.f32 1e-08, %v2205_v14  ;;  %v2206_v35 = vmul.f32 0.03125, %v2141_v15  ;;  %v2705_v40 = vrot.slane %v8014_v22, 2  ;;  %v2707_v49 = vrot.slane %v8018_v12, 2 }
 0x2bc   : > { %v8024_v17 = vsel %vm321_vm0, 0.0, %v2363_v54  ;;  %v2364_v50 = vrot.slane %v2296_v57, 7  ;;  %v2132_v41 = vpop.xlane.xlu1 %2131  ;;  %5687 = vrot.lane.b32.xlu0 %v5686_v32, %s6290_s25  ;;  %v2704_v14 = vrot.slane %v8021_v4, 2 }
 0x2bd   : > { %9502 = vst [vmem:[#allocation12_spill] sm:$0xff] %v8024_v17  ;;  %6118 = vrsqrt.f32 %v2237_v23  ;;  %v2238_v63 = vadd.f32 1e-08, %v2206_v35  ;;  %v2203_v47 = vmul.f32 0.03125, %v2132_v41  ;;  %5677 = vrot.lane.b32.xlu1 %v5686_v32, %s6295_s8  ;;  %v2699_v36 = vrot.slane %v8024_v17, 2 }
 0x2be   : > { %v8031_v31 = vsel %vm321_vm0, %v2363_v54, %v2364_v50  ;;  %v2135_v25 = vpop.xlane.xlu0 %2134  ;;  %v2466_v21 = vsel %vm321_vm0, %v2364_v50, 0.0  ;;  %v8039_v32 = vsel %vm664_vm2, %v2704_v14, %v2705_v40  ;;  %v8042_v54 = vsel %vm664_vm2, %v2705_v40, %v2707_v49 }
 0x2bf   : > { %6120 = vrsqrt.f32 %v2238_v63  ;;  %v2235_v57 = vadd.f32 1e-08, %v2203_v47  ;;  %v2204_v15 = vmul.f32 0.03125, %v2135_v25  ;;  %v2700_v20 = vrot.slane %v8031_v31, 2 }
 0x2c0   : > { %5692 = vrot.lane.b32.xlu0 %v5691_v42, %s6294_s14  ;;  %v2702_v23 = vrot.slane %v2466_v21, 2  ;;  %v2529_v41 = vrot.slane %v8031_v31, 1  ;;  %v2528_v47 = vrot.slane %v8024_v17, 1  ;;  %v2531_v25 = vrot.slane %v2466_v21, 1 }
 0x2c1   : > { %6122 = vrsqrt.f32 %v2235_v57  ;;  %v2236_v35 = vadd.f32 1e-08, %v2204_v15  ;;  %5682 = vrot.lane.b32.xlu1 %v5691_v42, %s6290_s25  ;;  %v2701_v50 = vsel %vm664_vm2, %v2699_v36, %v2700_v20  ;;  %v5706_v14 = vpack.i.bf16 %v8031_v31, %v8024_v17 }
 0x2c2   : > { %v2703_v63 = vsel %vm664_vm2, %v2700_v20, %v2702_v23  ;;  %v3511_v42 = vpack.c.bf16 %v8042_v54, %v8039_v32  ;;  %v8056_v40 = vsel %vm487_vm1, %v2528_v47, %v2529_v41  ;;  %v8059_v49 = vsel %vm487_vm1, %v2529_v41, %v2531_v25 }
 0x2c3   : > { %6124 = vrsqrt.f32 %v2236_v35  ;;  %v3508_v9 = vpack.c.bf16 %v2703_v63, %v2701_v50  ;;  %v5711_v21 = vpack.i.bf16 %v8059_v49, %v8056_v40  ;;  %v2534_v57 = vrot.slane %v8014_v22, 1 }
 0x2c4   : > { %5697 = vrot.lane.b32.xlu0 %v7935_v38, %s6295_s8  ;;  %v5716_v41 = vpack.i.bf16 %v2703_v63, %v2701_v50  ;;  %v2533_v47 = vrot.slane %v8021_v4, 1 }
 0x2c5   : > { %4878 = vmatmul.mubr.msk.bf16.gmra.mrb[36].mxu0 %vm1528_vm7, %v3508_v9  ;;  %5707 = vrot.lane.b32.xlu1 %v5706_v14, %s6294_s14  ;;  %v2536_v9 = vrot.slane %v8018_v12, 1 }
 0x2c6   : > { %4881 = vmatprep.mubr.msk.bf16.mxu0 %vm1528_vm7, %v3511_v42 }
 0x2c7   : > { %v6119_v20 = vpop.eup %6118  ;;  %v8084_v12 = vsel %vm487_vm1, %v2534_v57, %v2536_v9 }
 0x2c8   : > { %v2301_v38 = vmul.f32 %v6119_v20, %v7702_v0  ;;  %5702 = vrot.lane.b32.xlu0 %v7981_v28, %s6290_s25  ;;  %v5721_v28 = vpack.i.bf16 %v8014_v22, %v8021_v4 }
 0x2c9   : > { %v6121_v36 = vpop.eup %6120  ;;  %5712 = vrot.lane.b32.xlu1 %v5711_v21, %s6295_s8 }
 0x2ca   : > { %v2302_v15 = vmul.f32 %v6121_v36, %v7711_v60  ;;  %v2372_v35 = vrot.slane %v2301_v38, 7  ;;  %v8081_v60 = vsel %vm487_vm1, %v2533_v47, %v2534_v57 }
 0x2cb   : > { %v6123_v23 = vpop.eup %6122  ;;  %9503 = vst [vmem:[#allocation16_spill] sm:$0xff] %v8081_v60 }
 0x2cc   : > { %v2373_v25 = vrot.slane %v2302_v15, 7  ;;  %v2299_v0 = vmul.f32 %v6123_v23, %v7709_v13  ;;  %v2150_v42 = vpop.xlane.xlu1 %2149  ;;  %5727 = vrot.lane.b32.xlu0 %v8002_v62, %s6294_s14  ;;  %v8094_v36 = vsel %vm321_vm0, 0.0, %v2372_v35 }
 0x2cd   : > { %v6125_v20 = vpop.eup %6124  ;;  %v2209_v17 = vmul.f32 0.03125, %v2150_v42  ;;  %5717 = vrot.lane.b32.xlu1 %v5716_v41, %s6290_s25  ;;  %9505 = vst [vmem:[#allocation10_spill] sm:$0xff] %v8094_v36 }
 0x2ce   : > { %v8087_v50 = vsel %vm321_vm0, %v2372_v35, %v2373_v25  ;;  %v2369_v13 = vrot.slane %v2299_v0, 7  ;;  %v2300_v63 = vmul.f32 %v6125_v20, %v7718_v33  ;;  %v2153_v62 = vpop.xlane.xlu0 %2152  ;;  %v8091_v38 = vsel %vm321_vm0, %v2373_v25, 0.0 }
 0x2cf   : > { %9504 = vst [vmem:[#allocation21_spill] sm:$0xff] %v8087_v50  ;;  %v2241_v15 = vadd.f32 1e-08, %v2209_v17  ;;  %v2210_v23 = vmul.f32 0.03125, %v2153_v62  ;;  %v5731_v0 = vpack.i.bf16 %v8084_v12, %v8081_v60  ;;  %v2715_v33 = vrot.slane %v8087_v50, 2 }
 0x2d0   : > { %v8097_v47 = vsel %vm321_vm0, 0.0, %v2369_v13  ;;  %v2370_v57 = vrot.slane %v2300_v63, 7  ;;  %v2144_v9 = vpop.xlane.xlu1 %2143  ;;  %5737 = vrot.lane.b32.xlu0 %v5706_v14, %s6295_s8  ;;  %v2717_v17 = vrot.slane %v8091_v38, 2  ;;  %v2714_v62 = vrot.slane %v8094_v36, 2 }
 0x2d1   : > { %9506 = vst [vmem:[#allocation14_spill] sm:$0xff] %v8097_v47  ;;  %6126 = vrsqrt.f32 %v2241_v15  ;;  %v2242_v25 = vadd.f32 1e-08, %v2210_v23  ;;  %v2207_v42 = vmul.f32 0.03125, %v2144_v9  ;;  %5722 = vrot.lane.b32.xlu1 %v5721_v28, %s6294_s14  ;;  %v2709_v14 = vrot.slane %v8097_v47, 2 }
 0x2d2   : > { %v8106_v35 = vsel %vm321_vm0, %v2369_v13, %v2370_v57  ;;  %v2147_v20 = vpop.xlane.xlu0 %2146  ;;  %v2468_v63 = vsel %vm321_vm0, %v2370_v57, 0.0  ;;  %v8114_v9 = vsel %vm664_vm2, %v2714_v62, %v2715_v33  ;;  %v8119_v60 = vsel %vm664_vm2, %v2715_v33, %v2717_v17 }
 0x2d3   : > { %9507 = vst [vmem:[#allocation13_spill] sm:$0xff] %v8106_v35  ;;  %6128 = vrsqrt.f32 %v2242_v25  ;;  %v2239_v4 = vadd.f32 1e-08, %v2207_v42  ;;  %v2208_v22 = vmul.f32 0.03125, %v2147_v20  ;;  %v2710_v15 = vrot.slane %v8106_v35, 2 }
 0x2d4   : > { %5747 = vrot.lane.b32.xlu0 %v5711_v21, %s6290_s25  ;;  %v2712_v23 = vrot.slane %v2468_v63, 2  ;;  %v5741_v21 = vpack.i.bf16 %v8042_v54, %v8039_v32  ;;  %v2541_v20 = vrot.slane %v2468_v63, 1  ;;  %v2538_v33 = vrot.slane %v8097_v47, 1 }
 0x2d5   : > { %6130 = vrsqrt.f32 %v2239_v4  ;;  %v2240_v13 = vadd.f32 1e-08, %v2208_v22  ;;  %5732 = vrot.lane.b32.xlu1 %v5731_v0, %s6295_s8  ;;  %v2711_v57 = vsel %vm664_vm2, %v2709_v14, %v2710_v15  ;;  %v3517_v4 = vpack.c.bf16 %v8119_v60, %v8114_v9 }
 0x2d6   : > { %v2713_v25 = vsel %vm664_vm2, %v2710_v15, %v2712_v23  ;;  %v2539_v22 = vrot.slane %v8106_v35, 1  ;;  %v5751_v32 = vpack.i.bf16 %v8106_v35, %v8097_v47 }
 0x2d7   : > { %6132 = vrsqrt.f32 %v2240_v13  ;;  %v3514_v42 = vpack.c.bf16 %v2713_v25, %v2711_v57 }
 0x2d8   : > { %5757 = vrot.lane.b32.xlu0 %v5716_v41, %s6294_s14  ;;  %v8137_v41 = vsel %vm487_vm1, %v2538_v33, %v2539_v22  ;;  %v8140_v63 = vsel %vm487_vm1, %v2539_v22, %v2541_v20  ;;  %v2543_v22 = vrot.slane %v8094_v36, 1 }
 0x2d9   : > { %4882 = vmatmul.mubr.msk.bf16.gmra.mrb[40].mxu0 %vm1528_vm7, %v3514_v42  ;;  %5742 = vrot.lane.b32.xlu1 %v5741_v21, %s6290_s25  ;;  %9508 = vst [vmem:[#allocation28_spill] sm:$0xff] %v8137_v41  ;;  %9509 = vst [vmem:[#allocation11_spill] sm:$0xff] %v8140_v63  ;;  %v5761_v13 = vpack.i.bf16 %v8140_v63, %v8137_v41 }
 0x2da   : > { %4885 = vmatprep.mubr.msk.bf16.mxu0 %vm1528_vm7, %v3517_v4  ;;  %v8151_v4 = vpack.i.bf16 %v8087_v50, %v8094_v36 }
 0x2db   : > { %v6127_v17 = vpop.eup %6126 }
 0x2dc   : > { %v2305_v54 = vmul.f32 %v6127_v17, %v7732_v8  ;;  %5767 = vrot.lane.b32.xlu0 %v5721_v28, %s6295_s8 }
 0x2dd   : > { %v6129_v14 = vpop.eup %6128  ;;  %5752 = vrot.lane.b32.xlu1 %v5751_v32, %s6294_s14 }
 0x2de   : > { %v2306_v62 = vmul.f32 %v6129_v14, %v7738_v7  ;;  %v2378_v23 = vrot.slane %v2305_v54, 7  ;;  %v2544_v7 = vrot.slane %v8087_v50, 1 }
 0x2df   : > { %v6131_v15 = vpop.eup %6130 }
 0x2e0   : > { %v2379_v42 = vrot.slane %v2306_v62, 7  ;;  %v2303_v8 = vmul.f32 %v6131_v15, %v7736_v45  ;;  %5777 = vrot.lane.b32.xlu0 %v5731_v0, %s6290_s25  ;;  %v8163_v54 = vsel %vm321_vm0, 0.0, %v2378_v23  ;;  %v5771_v62 = vpack.i.bf16 %v2713_v25, %v2711_v57 }
 0x2e1   : > { %v6133_v28 = vpop.eup %6132  ;;  %5762 = vrot.lane.b32.xlu1 %v5761_v13, %s6295_s8  ;;  %9511 = vst [vmem:[#allocation22_spill] sm:$0xff] %v8163_v54  ;;  %v2546_v15 = vrot.slane %v8091_v38, 1 }
 0x2e2   : > { %v8156_v20 = vsel %vm321_vm0, %v2378_v23, %v2379_v42  ;;  %v2375_v33 = vrot.slane %v2303_v8, 7  ;;  %v2304_v17 = vmul.f32 %v6133_v28, %v7745_v43  ;;  %v2162_v45 = vpop.xlane.xlu1 %2161  ;;  %v8160_v0 = vsel %vm321_vm0, %v2379_v42, 0.0 }
 0x2e3   : > { %9510 = vst [vmem:[#allocation15_spill] sm:$0xff] %v8156_v20  ;;  %v2213_v14 = vmul.f32 0.03125, %v2162_v45  ;;  %v2725_v43 = vrot.slane %v8156_v20, 2  ;;  %v2727_v28 = vrot.slane %v8160_v0, 2  ;;  %v8174_v23 = vsel %vm487_vm1, %v2543_v22, %v2544_v7 }
 0x2e4   : > { %v8167_v36 = vsel %vm321_vm0, 0.0, %v2375_v33  ;;  %v2376_v50 = vrot.slane %v2304_v17, 7  ;;  %5787 = vrot.lane.b32.xlu0 %v5741_v21, %s6294_s14  ;;  %v2165_v8 = vpop.xlane.xlu0 %2164  ;;  %v2724_v17 = vrot.slane %v8163_v54, 2 }
 0x2e5   : > { %9512 = vst [vmem:[#allocation23_spill] sm:$0xff] %v8167_v36  ;;  %v2245_v42 = vadd.f32 1e-08, %v2213_v14  ;;  %v2214_v47 = vmul.f32 0.03125, %v2165_v8  ;;  %5772 = vrot.lane.b32.xlu1 %v5771_v62, %s6290_s25  ;;  %v2719_v21 = vrot.slane %v8167_v36, 2 }
 0x2e6   : > { %v8177_v38 = vsel %vm321_vm0, %v2375_v33, %v2376_v50  ;;  %v2156_v57 = vpop.xlane.xlu1 %2155  ;;  %v2470_v25 = vsel %vm321_vm0, %v2376_v50, 0.0  ;;  %v8185_v41 = vsel %vm664_vm2, %v2724_v17, %v2725_v43  ;;  %v8188_v33 = vsel %vm664_vm2, %v2725_v43, %v2727_v28 }
 0x2e7   : > { %9513 = vst [vmem:[#allocation17_spill] sm:$0xff] %v8177_v38  ;;  %6134 = vrsqrt.f32 %v2245_v42  ;;  %v2246_v45 = vadd.f32 1e-08, %v2214_v47  ;;  %v2211_v35 = vmul.f32 0.03125, %v2156_v57  ;;  %v2720_v14 = vrot.slane %v8177_v38, 2 }
 0x2e8   : > { %5797 = vrot.lane.b32.xlu0 %v5751_v32, %s6295_s8  ;;  %v2159_v8 = vpop.xlane.xlu0 %2158  ;;  %v2722_v22 = vrot.slane %v2470_v25, 2  ;;  %v8191_v50 = vsel %vm487_vm1, %v2544_v7, %v2546_v15  ;;  %v3523_v7 = vpack.c.bf16 %v8188_v33, %v8185_v41  ;;  %v2551_v15 = vrot.slane %v2470_v25, 1 }
 0x2e9   : > { %6136 = vrsqrt.f32 %v2246_v45  ;;  %v2243_v63 = vadd.f32 1e-08, %v2211_v35  ;;  %v2212_v42 = vmul.f32 0.03125, %v2159_v8  ;;  %5782 = vrot.lane.b32.xlu1 %v8151_v4, %s6294_s14  ;;  %v2721_v47 = vsel %vm664_vm2, %v2719_v21, %v2720_v14 }
 0x2ea   : > { %v2723_v32 = vsel %vm664_vm2, %v2720_v14, %v2722_v22  ;;  %v5791_v43 = vpack.i.bf16 %v8191_v50, %v8174_v23  ;;  %v5801_v35 = vpack.i.bf16 %v8119_v60, %v8114_v9  ;;  %v2548_v21 = vrot.slane %v8167_v36, 1 }
 0x2eb   : > { %6138 = vrsqrt.f32 %v2243_v63  ;;  %v2244_v57 = vadd.f32 1e-08, %v2212_v42  ;;  %v3520_v17 = vpack.c.bf16 %v2723_v32, %v2721_v47  ;;  %v2549_v63 = vrot.slane %v8177_v38, 1 }
 0x2ec   : > { %5807 = vrot.lane.b32.xlu0 %v5761_v13, %s6290_s25  ;;  %v5811_v14 = vpack.i.bf16 %v8177_v38, %v8167_v36 }
 0x2ed   : > { %6140 = vrsqrt.f32 %v2244_v57  ;;  %4886 = vmatmul.mubr.msk.bf16.gmra.mrb[44].mxu0 %vm1528_vm7, %v3520_v17  ;;  %5792 = vrot.lane.b32.xlu1 %v5791_v43, %s6295_s8  ;;  %v8218_v60 = vsel %vm487_vm1, %v2548_v21, %v2549_v63  ;;  %v8221_v9 = vsel %vm487_vm1, %v2549_v63, %v2551_v15  ;;  %v2553_v15 = vrot.slane %v8163_v54, 1 }
 0x2ee   : > { %4889 = vmatprep.mubr.msk.bf16.mxu0 %vm1528_vm7, %v3523_v7  ;;  %9514 = vst [vmem:[#allocation18_spill] sm:$0xff] %v8218_v60  ;;  %9515 = vst [vmem:[#allocation19_spill] sm:$0xff] %v8221_v9 }
 0x2f0   : > { %5817 = vrot.lane.b32.xlu0 %v5771_v62, %s6294_s14 }
 0x2f1   : > { %v6135_v28 = vpop.eup %6134  ;;  %5802 = vrot.lane.b32.xlu1 %v5801_v35, %s6290_s25 }
 0x2f2   : > { %v2309_v13 = vmul.f32 %v6135_v28, %v7756_v34  ;;  %v2554_v28 = vrot.slane %v8156_v20, 1 }
 0x2f3   : > { %v6137_v45 = vpop.eup %6136 }
 0x2f4   : > { %v2310_v8 = vmul.f32 %v6137_v45, %v7762_v5  ;;  %5827 = vrot.lane.b32.xlu0 %v8151_v4, %s6295_s8  ;;  %v2384_v25 = vrot.slane %v2309_v13, 7  ;;  %v5821_v5 = vpack.i.bf16 %v8221_v9, %v8218_v60 }
 0x2f5   : > { %v6139_v62 = vpop.eup %6138  ;;  %5812 = vrot.lane.b32.xlu1 %v5811_v14, %s6294_s14 }
 0x2f6   : > { %v2385_v34 = vrot.slane %v2310_v8, 7  ;;  %v2307_v22 = vmul.f32 %v6139_v62, %v7760_v26  ;;  %v8236_v63 = vsel %vm321_vm0, 0.0, %v2384_v25  ;;  %v5841_v26 = vpack.i.bf16 %v8156_v20, %v8163_v54 }
 0x2f7   : > { %v6141_v42 = vpop.eup %6140  ;;  %9517 = vst [vmem:[#allocation24_spill] sm:$0xff] %v8236_v63 }
 0x2f8   : > { %v8228_v57 = vsel %vm321_vm0, %v2384_v25, %v2385_v34  ;;  %v2381_v4 = vrot.slane %v2307_v22, 7  ;;  %v2308_v17 = vmul.f32 %v6141_v42, %v7769_v59  ;;  %5837 = vrot.lane.b32.xlu0 %v5791_v43, %s6290_s25  ;;  %v8233_v7 = vsel %vm321_vm0, %v2385_v34, 0.0 }
 0x2f9   : > { %9516 = vst [vmem:[#allocation20_spill] sm:$0xff] %v8228_v57  ;;  %5822 = vrot.lane.b32.xlu1 %v5821_v5, %s6295_s8  ;;  %v2735_v21 = vrot.slane %v8228_v57, 2  ;;  %v2737_v45 = vrot.slane %v8233_v7, 2  ;;  %v5831_v25 = vpack.i.bf16 %v2723_v32, %v2721_v47  ;;  %v2556_v34 = vrot.slane %v8160_v0, 1 }
 0x2fa   : > { %v8244_v13 = vsel %vm321_vm0, 0.0, %v2381_v4  ;;  %v2382_v59 = vrot.slane %v2308_v17, 7  ;;  %v2174_v43 = vpop.xlane.xlu0 %2173  ;;  %v2734_v17 = vrot.slane %v8236_v63, 2 }
 0x2fb   : > { %9518 = vst [vmem:[#allocation25_spill] sm:$0xff] %v8244_v13  ;;  %v2217_v8 = vmul.f32 0.03125, %v2174_v43  ;;  %v2168_v62 = vpop.xlane.xlu1 %2167  ;;  %v2729_v36 = vrot.slane %v8244_v13, 2 }
 0x2fc   : > { %v8250_v22 = vsel %vm321_vm0, %v2381_v4, %v2382_v59  ;;  %v2215_v42 = vmul.f32 0.03125, %v2168_v62  ;;  %5847 = vrot.lane.b32.xlu0 %v5801_v35, %s6294_s14  ;;  %v2472_v54 = vsel %vm321_vm0, %v2382_v59, 0.0  ;;  %v8259_v4 = vsel %vm664_vm2, %v2734_v17, %v2735_v21 }
 0x2fd   : > { %v2249_v20 = vadd.f32 1e-08, %v2217_v8  ;;  %5832 = vrot.lane.b32.xlu1 %v5831_v25, %s6290_s25  ;;  %v2730_v43 = vrot.slane %v8250_v22, 2  ;;  %v2732_v47 = vrot.slane %v2472_v54, 2  ;;  %v8262_v62 = vsel %vm664_vm2, %v2735_v21, %v2737_v45 }
 0x2fe   : > { %v2247_v32 = vadd.f32 1e-08, %v2215_v42  ;;  %v2171_v0 = vpop.xlane.xlu0 %2170  ;;  %v8265_v35 = vsel %vm487_vm1, %v2553_v15, %v2554_v28  ;;  %v8271_v17 = vsel %vm487_vm1, %v2554_v28, %v2556_v34  ;;  %v2561_v28 = vrot.slane %v2472_v54, 1 }
 0x2ff   : > { %6142 = vrsqrt.f32 %v2249_v20  ;;  %v2216_v59 = vmul.f32 0.03125, %v2171_v0  ;;  %v2177_v8 = vpop.xlane.xlu1 %2176  ;;  %v2731_v38 = vsel %vm664_vm2, %v2729_v36, %v2730_v43  ;;  %v2733_v60 = vsel %vm664_vm2, %v2730_v43, %v2732_v47 }
 0x300   : > { %6144 = vrsqrt.f32 %v2247_v32  ;;  %v2218_v9 = vmul.f32 0.03125, %v2177_v8  ;;  %5857 = vrot.lane.b32.xlu0 %v5811_v14, %s6295_s8  ;;  %v3526_v42 = vpack.c.bf16 %v2733_v60, %v2731_v38  ;;  %v3529_v20 = vpack.c.bf16 %v8262_v62, %v8259_v4 }
 0x301   : > { %v2248_v21 = vadd.f32 1e-08, %v2216_v59  ;;  %5842 = vrot.lane.b32.xlu1 %v5841_v26, %s6294_s14  ;;  %v5851_v36 = vpack.i.bf16 %v8271_v17, %v8265_v35  ;;  %v5861_v14 = vpack.i.bf16 %v8188_v33, %v8185_v41  ;;  %v2558_v47 = vrot.slane %v8244_v13, 1 }
 0x302   : > { %v2250_v15 = vadd.f32 1e-08, %v2218_v9  ;;  %4890 = vmatmul.mubr.msk.bf16.gmra.mrb[48].mxu0 %vm1528_vm7, %v3526_v42  ;;  %v2559_v9 = vrot.slane %v8250_v22, 1  ;;  %v5871_v32 = vpack.i.bf16 %v8250_v22, %v8244_v13  ;;  %v5901_v13 = vpack.i.bf16 %v8228_v57, %v8236_v63 }
 0x303   : > { %6146 = vrsqrt.f32 %v2248_v21  ;;  %4893 = vmatprep.mubr.msk.bf16.mxu0 %vm1528_vm7, %v3529_v20 }
 0x304   : > { %6148 = vrsqrt.f32 %v2250_v15  ;;  %5867 = vrot.lane.b32.xlu0 %v5821_v5, %s6290_s25  ;;  %v8294_v41 = vsel %vm487_vm1, %v2558_v47, %v2559_v9  ;;  %v8297_v54 = vsel %vm487_vm1, %v2559_v9, %v2561_v28  ;;  %v2564_v15 = vrot.slane %v8228_v57, 1 }
 0x305   : > { %5852 = vrot.lane.b32.xlu1 %v5851_v36, %s6295_s8 }
 0x308   : > { %5877 = vrot.lane.b32.xlu0 %v5831_v25, %s6294_s14 }
 0x309   : > { %v6143_v45 = vpop.eup %6142  ;;  %5862 = vrot.lane.b32.xlu1 %v5861_v14, %s6290_s25 }
 0x30a   : > { %v6145_v34 = vpop.eup %6144  ;;  %v2313_v43 = vmul.f32 %v6143_v45, %v7780_v29 }
 0x30b   : > { %v2311_v5 = vmul.f32 %v6145_v34, %v7784_v2 }
 0x30c   : > { %5887 = vrot.lane.b32.xlu0 %v5841_v26, %s6295_s8  ;;  %v2390_v25 = vrot.slane %v2313_v43, 7  ;;  %v5881_v26 = vpack.i.bf16 %v8297_v54, %v8294_v41 }
 0x30d   : > { %v6147_v33 = vpop.eup %6146  ;;  %v2387_v0 = vrot.slane %v2311_v5, 7  ;;  %5872 = vrot.lane.b32.xlu1 %v5871_v32, %s6294_s14 }
 0x30e   : > { %v6149_v29 = vpop.eup %6148  ;;  %v2312_v59 = vmul.f32 %v6147_v33, %v7791_v61  ;;  %v8309_v21 = vsel %vm321_vm0, 0.0, %v2390_v25  ;;  %v2566_v61 = vrot.slane %v8233_v7, 1 }
 0x30f   : > { %v8302_v2 = vsel %vm321_vm0, 0.0, %v2387_v0  ;;  %v2314_v8 = vmul.f32 %v6149_v29, %v7788_v24  ;;  %9520 = vst [vmem:[#allocation32_spill] sm:$0xff] %v8309_v21  ;;  %v5891_v24 = vpack.i.bf16 %v2733_v60, %v2731_v38  ;;  %v2744_v38 = vrot.slane %v8309_v21, 2 }
 0x310   : > { %9519 = vst [vmem:[#allocation31_spill] sm:$0xff] %v8302_v2  ;;  %v2388_v42 = vrot.slane %v2312_v59, 7  ;;  %5897 = vrot.lane.b32.xlu0 %v5851_v36, %s6290_s25  ;;  %v2739_v45 = vrot.slane %v8302_v2, 2  ;;  %v2563_v59 = vrot.slane %v8236_v63, 1  ;;  %v5600_v63 = vunpack.i.h.bf16 %v7800_v44 }
 0x311   : > { %v2391_v20 = vrot.slane %v2314_v8, 7  ;;  %5882 = vrot.lane.b32.xlu1 %v5881_v26, %s6295_s8 }
 0x312   : > { %v8315_v9 = vsel %vm321_vm0, %v2387_v0, %v2388_v42  ;;  %v8318_v28 = vsel %vm321_vm0, %v2388_v42, 0.0 }
 0x313   : > { %9521 = vst [vmem:[#allocation33_spill] sm:$0xff] %v8315_v9  ;;  %v8322_v36 = vsel %vm321_vm0, %v2390_v25, %v2391_v20  ;;  %v2180_v34 = vpop.xlane.xlu0 %2179  ;;  %v2740_v43 = vrot.slane %v8315_v9, 2  ;;  %v2742_v47 = vrot.slane %v8318_v28, 2  ;;  %v8327_v5 = vsel %vm321_vm0, %v2391_v20, 0.0 }
 0x314   : > { %9522 = vst [vmem:[#allocation34_spill] sm:$0xff] %v8322_v36  ;;  %v2219_v7 = vmul.f32 0.03125, %v2180_v34  ;;  %5907 = vrot.lane.b32.xlu0 %v5861_v14, %s6294_s14  ;;  %v2745_v60 = vrot.slane %v8322_v36, 2  ;;  %v2747_v33 = vrot.slane %v8327_v5, 2 }
 0x315   : > { %v2183_v0 = vpop.xlane.xlu1 %2182  ;;  %5892 = vrot.lane.b32.xlu1 %v5891_v24, %s6290_s25  ;;  %v8335_v25 = vsel %vm664_vm2, %v2739_v45, %v2740_v43  ;;  %v8338_v29 = vsel %vm664_vm2, %v2740_v43, %v2742_v47  ;;  %v8352_v43 = vsel %vm487_vm1, %v2563_v59, %v2564_v15  ;;  %v8355_v47 = vsel %vm487_vm1, %v2564_v15, %v2566_v61 }
 0x316   : > { %v2251_v8 = vadd.f32 1e-08, %v2219_v7  ;;  %v2220_v42 = vmul.f32 0.03125, %v2183_v0  ;;  %v3532_v14 = vpack.c.bf16 %v8338_v29, %v8335_v25  ;;  %v8344_v20 = vsel %vm664_vm2, %v2744_v38, %v2745_v60  ;;  %9523 = vst [vmem:[#allocation35_spill] sm:$0xff] %v8352_v43 }
 0x317   : > { %v2186_v34 = vpop.xlane.xlu0 %2185  ;;  %v8349_v45 = vsel %vm664_vm2, %v2745_v60, %v2747_v33  ;;  %v5599_v60 = vunpack.i.l.bf16 %v7800_v44  ;;  %v3305_v44 = vsel %vm1528_vm7, %v9459_v58, %v5600_v63  ;;  %v9525_v63 = vunpack.i.h.bf16 %v7605_v11 }
 0x318   : > { %6150 = vrsqrt.f32 %v2251_v8  ;;  %v2252_v7 = vadd.f32 1e-08, %v2220_v42  ;;  %v2221_v0 = vmul.f32 0.03125, %v2186_v34  ;;  %5917 = vrot.lane.b32.xlu0 %v5871_v32, %s6295_s8  ;;  %4894 = vmatmul.mubr.msk.bf16.gmra.mrb[52].mxu0 %vm1528_vm7, %v3532_v14  ;;  %v3535_v38 = vpack.c.bf16 %v8349_v45, %v8344_v20 }
 0x319   : > { %v2189_v33 = vpop.xlane.xlu1 %2188  ;;  %5902 = vrot.lane.b32.xlu1 %v5901_v13, %s6294_s14  ;;  %v5911_v32 = vpack.i.bf16 %v8355_v47, %v8352_v43  ;;  %v3304_v14 = vsel %vm1528_vm7, %v9460_v53, %v5599_v60  ;;  %v9524_v53 = vunpack.i.l.bf16 %v7605_v11  ;;  %v2568_v60 = vrot.slane %v8302_v2, 1 }
 0x31a   : > { %6152 = vrsqrt.f32 %v2252_v7  ;;  %v2253_v15 = vadd.f32 1e-08, %v2221_v0  ;;  %v2222_v61 = vmul.f32 0.03125, %v2189_v33  ;;  %4897 = vmatprep.mubr.msk.bf16.mxu0 %vm1528_vm7, %v3535_v38  ;;  %v5921_v7 = vpack.i.bf16 %v8262_v62, %v8259_v4 }
 0x31b   : > { %v8365_v59 = vpop.permute.xlu0 %5607  ;;  %v2571_v33 = vrot.slane %v8318_v28, 1  ;;  %v3336_v58 = vsel %vm1660_vm11, %v3304_v14, %v9524_v53  ;;  %v3337_v4 = vsel %vm1660_vm11, %v3305_v44, %v9525_v63  ;;  %v5931_v14 = vpack.i.bf16 %v8315_v9, %v8302_v2 }
 0x31c   : > { %6154 = vrsqrt.f32 %v2253_v15  ;;  %v2254_v8 = vadd.f32 1e-08, %v2222_v61  ;;  %5927 = vrot.lane.b32.xlu0 %v5881_v26, %s6290_s25  ;;  %v2569_v26 = vrot.slane %v8315_v9, 1 }
 0x31d   : > { %v8370_v42 = vpop.permute.xlu1 %5602  ;;  %5912 = vrot.lane.b32.xlu1 %v5911_v32, %s6295_s8 }
 0x31e   : > { %6156 = vrsqrt.f32 %v2254_v8  ;;  %v5604_v9 = vunpack.i.l.bf16 %v8370_v42 }
 0x31f   : > { %v5613_v34 = vpop.permute.xlu0 %5612 }
 0x320   : > { %v5615_v0 = vunpack.i.h.bf16 %v5613_v34  ;;  %v5614_v38 = vunpack.i.l.bf16 %v5613_v34  ;;  %5937 = vrot.lane.b32.xlu0 %v5891_v24, %s6294_s14  ;;  %v8407_v34 = vsel %vm487_vm1, %v2568_v60, %v2569_v26  ;;  %v2573_v60 = vrot.slane %v8309_v21, 1 }
 0x321   : > { %v8382_v15 = vpop.permute.xlu1 %5617  ;;  %5922 = vrot.lane.b32.xlu1 %v5921_v7, %s6290_s25  ;;  %9526 = vst [vmem:[#allocation36_spill] sm:$0xff] %v8407_v34 }
 0x322   : > { %v6151_v62 = vpop.eup %6150  ;;  %v8393_v24 = vsel %vm3368_vm12, %v3336_v58, %v5614_v38  ;;  %v8396_v28 = vsel %vm3368_vm12, %v3337_v4, %v5615_v0  ;;  %v8410_v38 = vsel %vm487_vm1, %v2569_v26, %v2571_v33 }
 0x323   : > { %v2315_v61 = vmul.f32 %v6151_v62, %v7806_v1  ;;  %v8399_v8 = vpop.permute.xlu0 %5627  ;;  %9527 = vst [vmem:[#allocation37_spill] sm:$0xff] %v8410_v38  ;;  %v5941_v26 = vpack.i.bf16 %v8410_v38, %v8407_v34  ;;  %v5619_v34 = vunpack.i.l.bf16 %v8382_v15 }
 0x324   : > { %v6153_v44 = vpop.eup %6152  ;;  %5947 = vrot.lane.b32.xlu0 %v5901_v13, %s6295_s8 }
 0x325   : > { %v2393_v0 = vrot.slane %v2315_v61, 7  ;;  %v2316_v1 = vmul.f32 %v6153_v44, %v7813_v18  ;;  %v8413_v53 = vpop.permute.xlu1 %5622  ;;  %5932 = vrot.lane.b32.xlu1 %v5931_v14, %s6294_s14  ;;  %v8427_v18 = vpack.i.bf16 %v8338_v29, %v8335_v25 }
 0x326   : > { %v6155_v58 = vpop.eup %6154 }
 0x327   : > { %v8417_v63 = vsel %vm321_vm0, 0.0, %v2393_v0  ;;  %v2394_v4 = vrot.slane %v2316_v1, 7  ;;  %v2317_v13 = vmul.f32 %v6155_v58, %v7811_v27  ;;  %v8420_v62 = vpop.permute.xlu0 %5632 }
 0x328   : > { %v6157_v33 = vpop.eup %6156  ;;  %5957 = vrot.lane.b32.xlu0 %v5911_v32, %s6290_s25  ;;  %v2749_v2 = vrot.slane %v8417_v63, 2 }
 0x329   : > { %v8431_v61 = vsel %vm321_vm0, %v2393_v0, %v2394_v4  ;;  %v2396_v44 = vrot.slane %v2317_v13, 7  ;;  %v2318_v27 = vmul.f32 %v6157_v33, %v7817_v10  ;;  %v5638_v1 = vpop.permute.xlu1 %5637  ;;  %5942 = vrot.lane.b32.xlu1 %v5941_v26, %s6295_s8  ;;  %v8436_v58 = vsel %vm321_vm0, %v2394_v4, 0.0 }
 0x32a   : > { %v5640_v11 = vunpack.i.h.bf16 %v5638_v1  ;;  %v5639_v32 = vunpack.i.l.bf16 %v5638_v1  ;;  %v2750_v25 = vrot.slane %v8431_v61, 2  ;;  %v2752_v13 = vrot.slane %v8436_v58, 2 }
 0x32b   : > { %v2397_v29 = vrot.slane %v2318_v27, 7  ;;  %v8441_v0 = vpop.permute.xlu0 %5642  ;;  %v2574_v10 = vrot.slane %v8322_v36, 1  ;;  %v5605_v33 = vunpack.i.h.bf16 %v8370_v42  ;;  %v2576_v27 = vrot.slane %v8327_v5, 1 }
 0x32c   : > { %5967 = vrot.lane.b32.xlu0 %v5921_v7, %s6294_s14  ;;  %v8448_v4 = vsel %vm664_vm2, %v2749_v2, %v2750_v25  ;;  %v3401_v1 = vsel %vm1528_vm7, %v7900_v55, %v5639_v32  ;;  %v8459_v57 = vsel %vm664_vm2, %v2750_v25, %v2752_v13  ;;  %v3402_v42 = vsel %vm1528_vm7, %v7918_v30, %v5640_v11 }
 0x32d   : > { %v8454_v38 = vpop.permute.xlu1 %5652  ;;  %5952 = vrot.lane.b32.xlu1 %v8427_v18, %s6290_s25  ;;  %v3433_v2 = vsel %vm1660_vm11, %v3401_v1, %v5604_v9  ;;  %v8465_v7 = vsel %vm321_vm0, 0.0, %v2396_v44  ;;  %v5620_v55 = vunpack.i.h.bf16 %v8382_v15  ;;  %v5961_v5 = vpack.i.bf16 %v8322_v36, %v8309_v21 }
 0x32e   : > { %v8471_v32 = vsel %vm321_vm0, %v2396_v44, %v2397_v29  ;;  %v3538_v25 = vpack.c.bf16 %v8459_v57, %v8448_v4  ;;  %v3434_v43 = vsel %vm1660_vm11, %v3402_v42, %v5605_v33  ;;  %v3465_v30 = vsel %vm3368_vm12, %v3433_v2, %v5619_v34 }
 0x32f   : > { %v5648_v13 = vpop.permute.xlu0 %5647  ;;  %v8478_v9 = vsel %vm321_vm0, %v2397_v29, 0.0  ;;  %v3466_v15 = vsel %vm3368_vm12, %v3434_v43, %v5620_v55  ;;  %v8483_v11 = vsel %vm487_vm1, %v2573_v60, %v2574_v10  ;;  %v8486_v44 = vsel %vm487_vm1, %v2574_v10, %v2576_v27 }
 0x330   : > { %5977 = vrot.lane.b32.xlu0 %v5931_v14, %s6295_s8  ;;  %4898 = vmatmul.mubr.msk.bf16.gmra.mrb[56].mxu0 %vm1528_vm7, %v3538_v25  ;;  %v3498_v1 = vpack.c.bf16 %v3466_v15, %v3465_v30  ;;  %v2979_v34 = vrot.slane %v8465_v7, 2  ;;  %v2980_v29 = vrot.slane %v8471_v32, 2  ;;  %v2982_v14 = vrot.slane %v8478_v9, 2 }
 0x331   : > { %v8489_v21 = vpop.permute.xlu1 %5657  ;;  %5962 = vrot.lane.b32.xlu1 %v5961_v5, %s6294_s14  ;;  %v5971_v33 = vpack.i.bf16 %v8486_v44, %v8483_v11  ;;  %v9528_v27 = vpack.c.bf16 %v8396_v28, %v8393_v24  ;;  %v5630_v2 = vunpack.i.h.bf16 %v8399_v8  ;;  %v5645_v25 = vunpack.i.h.bf16 %v8441_v0 }
 0x332   : > { %3776 = vmatprep.mubr.bf16.mxu1 %v3498_v1  ;;  %v8496_v43 = vsel %vm664_vm2, %v2979_v34, %v2980_v29  ;;  %v8499_v60 = vsel %vm664_vm2, %v2980_v29, %v2982_v14  ;;  %v5644_v30 = vunpack.i.l.bf16 %v8441_v0  ;;  %v8520_v24 = vpack.i.bf16 %v8349_v45, %v8344_v20 }
 0x333   : > { %v8501_v10 = vpop.permute.xlu0 %5662  ;;  %3777 = vmatmul.mubr.bf16.vlgmr.msra.gmra.mrb[0].mxu1 %v9528_v27  ;;  %v3541_v42 = vpack.c.bf16 %v8499_v60, %v8496_v43  ;;  %v5610_v28 = vunpack.i.h.bf16 %v8365_v59  ;;  %v5650_v15 = vunpack.i.h.bf16 %v5648_v13  ;;  %v5649_v1 = vunpack.i.l.bf16 %v5648_v13 }
 0x334   : > { %5987 = vrot.lane.b32.xlu0 %v5941_v26, %s6290_s25  ;;  %v5609_v26 = vunpack.i.l.bf16 %v8365_v59  ;;  %v5629_v29 = vunpack.i.l.bf16 %v8399_v8  ;;  %v5625_v14 = vunpack.i.h.bf16 %v8413_v53  ;;  %v2579_v0 = vrot.slane %v8431_v61, 1 }
 0x335   : > { %v8512_v55 = vpop.permute.xlu1 %5667  ;;  %5972 = vrot.lane.b32.xlu1 %v5971_v33, %s6295_s8  ;;  %4901 = vmatprep.mubr.msk.bf16.mxu0 %vm1528_vm7, %v3541_v42  ;;  %v2581_v20 = vrot.slane %v8436_v58, 1  ;;  %v3309_v45 = vsel %vm1528_vm7, %v7841_v51, %v5630_v2  ;;  %v5624_v59 = vunpack.i.l.bf16 %v8413_v53  ;;  %v3307_v8 = vsel %vm1528_vm7, %v7852_v46, %v5645_v25 }
 0x336   : > { %v8545_v13 = vpack.i.bf16 %v8431_v61, %v8417_v63  ;;  %v2578_v58 = vrot.slane %v8417_v63, 1  ;;  %v5660_v51 = vunpack.i.h.bf16 %v8489_v21  ;;  %v5659_v53 = vunpack.i.l.bf16 %v8489_v21 }
 0x337   : > { %v8524_v34 = vpop.permute.xlu0 %5687  ;;  %v3339_v36 = vsel %vm1660_vm11, %v3307_v8, %v5650_v15  ;;  %v3308_v46 = vsel %vm1528_vm7, %v7838_v48, %v5629_v29  ;;  %v3403_v21 = vsel %vm1528_vm7, %v7862_v39, %v5624_v59  ;;  %v5634_v15 = vunpack.i.l.bf16 %v8420_v62 }
 0x338   : > { %5997 = vrot.lane.b32.xlu0 %v8427_v18, %s6294_s14  ;;  %v3306_v18 = vsel %vm1528_vm7, %v7858_v19, %v5644_v30  ;;  %v3404_v19 = vsel %vm1528_vm7, %v7865_v16, %v5625_v14  ;;  %v8560_v25 = vsel %vm487_vm1, %v2578_v58, %v2579_v0  ;;  %v8563_v30 = vsel %vm487_vm1, %v2579_v0, %v2581_v20 }
 0x339   : > { %v8535_v27 = vpop.permute.xlu1 %5672  ;;  %5982 = vrot.lane.b32.xlu1 %v8520_v24, %s6290_s25  ;;  %v3338_v2 = vsel %vm1660_vm11, %v3306_v18, %v5649_v1  ;;  %v5635_v1 = vunpack.i.h.bf16 %v8420_v62  ;;  %v5655_v48 = vunpack.i.h.bf16 %v8454_v38  ;;  %v3372_v0 = vsel %vm3368_vm12, %v3339_v36, %v5610_v28 }
 0x33a   : > { %v3371_v14 = vsel %vm3368_vm12, %v3338_v2, %v5609_v26  ;;  %v5654_v20 = vunpack.i.l.bf16 %v8454_v38  ;;  %v8579_v39 = vpack.i.bf16 %v8563_v30, %v8560_v25  ;;  %v3435_v62 = vsel %vm1660_vm11, %v3403_v21, %v5659_v53 }
 0x33b   : > { %v8550_v42 = vpop.permute.xlu0 %5692  ;;  %v3436_v59 = vsel %vm1660_vm11, %v3404_v19, %v5660_v51  ;;  %v5665_v18 = vunpack.i.h.bf16 %v8501_v10  ;;  %v5664_v58 = vunpack.i.l.bf16 %v8501_v10  ;;  %v5670_v28 = vunpack.i.h.bf16 %v8512_v55 }
 0x33c   : > { %6007 = vrot.lane.b32.xlu0 %v5961_v5, %s6295_s8  ;;  %v5669_v26 = vunpack.i.l.bf16 %v8512_v55  ;;  %v3500_v51 = vpack.c.bf16 %v3372_v0, %v3371_v14  ;;  %v2943_v10 = vrot.slane %v8471_v32, 1  ;;  %v8600_v55 = vpack.i.bf16 %v8471_v32, %v8465_v7 }
 0x33d   : > { %v5678_v29 = vpop.permute.xlu1 %5677  ;;  %5992 = vrot.lane.b32.xlu1 %v8545_v13, %s6294_s14  ;;  %v5674_v32 = vunpack.i.l.bf16 %v8535_v27 }
 0x33e   : > { %v5680_v16 = vunpack.i.h.bf16 %v5678_v29  ;;  %v5679_v5 = vunpack.i.l.bf16 %v5678_v29 }
 0x33f   : > { %v8575_v8 = vpop.permute.xlu0 %5697 }
 0x340   : > { %6017 = vrot.lane.b32.xlu0 %v5971_v33, %s6290_s25  ;;  %v3467_v36 = vsel %vm3368_vm12, %v3435_v62, %v5679_v5  ;;  %v3468_v38 = vsel %vm3368_vm12, %v3436_v59, %v5680_v16  ;;  %v2945_v33 = vrot.slane %v8478_v9, 1  ;;  %v6011_v16 = vpack.i.bf16 %v8459_v57, %v8448_v4 }
 0x341   : > { %v5683_v2 = vpop.permute.xlu1 %5682  ;;  %6002 = vrot.lane.b32.xlu1 %v8579_v39, %s6295_s8  ;;  %v3501_v53 = vpack.c.bf16 %v3468_v38, %v3467_v36  ;;  %v3340_v5 = vsel %vm1660_vm11, %v3308_v46, %v5634_v15  ;;  %v3341_v9 = vsel %vm1660_vm11, %v3309_v45, %v5635_v1  ;;  %v2942_v57 = vrot.slane %v8465_v7, 1 }
 0x342   : > { %v5685_v19 = vunpack.i.h.bf16 %v5683_v2  ;;  %v5684_v21 = vunpack.i.l.bf16 %v5683_v2  ;;  %v5675_v4 = vunpack.i.h.bf16 %v8535_v27  ;;  %v8622_v7 = vsel %vm487_vm1, %v2943_v10, %v2945_v33 }
 0x343   : > { %v8594_v29 = vpop.permute.xlu0 %5702  ;;  %3784 = vmatprep.mubr.bf16.mxu1 %v3501_v53  ;;  %v8619_v15 = vsel %vm487_vm1, %v2942_v57, %v2943_v10  ;;  %v3407_v38 = vsel %vm1528_vm7, %v7967_v56, %v5674_v32  ;;  %v5695_v2 = vunpack.i.h.bf16 %v8550_v42  ;;  %v6041_v32 = vpack.i.bf16 %v8499_v60, %v8496_v43 }
 0x344   : > { %v3406_v14 = vsel %vm1528_vm7, %v8000_v6, %v5685_v19  ;;  %v3405_v0 = vsel %vm1528_vm7, %v7997_v3, %v5684_v21  ;;  %6027 = vrot.lane.b32.xlu0 %v8520_v24, %s6294_s14  ;;  %3785 = vmatmul.mubr.bf16.gmra.mrb[4].mxu1 %v3500_v51  ;;  %v3373_v3 = vsel %vm3368_vm12, %v3340_v5, %v5664_v58  ;;  %v5699_v19 = vunpack.i.l.bf16 %v8575_v8 }
 0x345   : > { %v5708_v62 = vpop.permute.xlu1 %5707  ;;  %6012 = vrot.lane.b32.xlu1 %v6011_v16, %s6290_s25  ;;  %v3437_v6 = vsel %vm1660_vm11, %v3405_v0, %v5654_v20  ;;  %v3438_v46 = vsel %vm1660_vm11, %v3406_v14, %v5655_v48  ;;  %v3374_v24 = vsel %vm3368_vm12, %v3341_v9, %v5665_v18  ;;  %v5690_v20 = vunpack.i.h.bf16 %v8524_v34  ;;  %v9529_v14 = vld [vmem:[#allocation5_spill] sm:$0xff] }
 0x346   : > { %v5710_v45 = vunpack.i.h.bf16 %v5708_v62  ;;  %v5709_v1 = vunpack.i.l.bf16 %v5708_v62  ;;  %v3469_v59 = vsel %vm3368_vm12, %v3437_v6, %v5669_v26  ;;  %v3470_v36 = vsel %vm3368_vm12, %v3438_v46, %v5670_v28 }
 0x347   : > { %v5728_v27 = vpop.permute.xlu0 %5727  ;;  %v5689_v48 = vunpack.i.l.bf16 %v8524_v34  ;;  %v3504_v18 = vpack.c.bf16 %v3470_v36, %v3469_v59  ;;  %v3408_v58 = vsel %vm1528_vm7, %v7970_v37, %v5675_v4  ;;  %v5694_v26 = vunpack.i.l.bf16 %v8550_v42 }
 0x348   : > { %6037 = vrot.lane.b32.xlu0 %v8545_v13, %s6295_s8  ;;  %v3503_v51 = vpack.c.bf16 %v3374_v24, %v3373_v3  ;;  %v6031_v13 = vpack.i.bf16 %v8622_v7, %v8619_v15  ;;  %v5700_v37 = vunpack.i.h.bf16 %v8575_v8  ;;  %v3439_v21 = vsel %vm1660_vm11, %v3407_v38, %v5709_v1 }
 0x349   : > { %v5713_v53 = vpop.permute.xlu1 %5712  ;;  %6022 = vrot.lane.b32.xlu1 %v8600_v55, %s6294_s14  ;;  %3792 = vmatprep.mubr.bf16.mxu1 %v3504_v18  ;;  %v3440_v42 = vsel %vm1660_vm11, %v3408_v58, %v5710_v45  ;;  %v3311_v5 = vsel %vm1528_vm7, %v7930_v52, %v5690_v20  ;;  %v3310_v0 = vsel %vm1528_vm7, %v9529_v14, %v5689_v48  ;;  %v5705_v6 = vunpack.i.h.bf16 %v8594_v29  ;;  %v9530_v58 = vld [vmem:[#allocation27_spill] sm:$0xff]  ;;  %v9535_v14 = vld [vmem:[#allocation8_spill] sm:$0xff] }
 0x34a   : > { %v5715_v28 = vunpack.i.h.bf16 %v5713_v53  ;;  %v5714_v34 = vunpack.i.l.bf16 %v5713_v53  ;;  %v3342_v57 = vsel %vm1660_vm11, %v3310_v0, %v5694_v26  ;;  %v3343_v4 = vsel %vm1660_vm11, %v3311_v5, %v5695_v2  ;;  %v9531_v2 = vld [vmem:[#allocation29_spill] sm:$0xff]  ;;  %v9532_v53 = vld [vmem:[#allocation26_spill] sm:$0xff] }
 0x34b   : > { %v5738_v56 = vpop.permute.xlu0 %5737  ;;  %v3375_v62 = vsel %vm3368_vm12, %v3342_v57, %v5699_v19  ;;  %v3376_v52 = vsel %vm3368_vm12, %v3343_v4, %v5700_v37  ;;  %v5704_v46 = vunpack.i.l.bf16 %v8594_v29  ;;  %v5730_v3 = vunpack.i.h.bf16 %v5728_v27  ;;  %v9533_v5 = vld [vmem:[#allocation9_spill] sm:$0xff] }
 0x34c   : > { %6047 = vrot.lane.b32.xlu0 %v8579_v39, %s6290_s25  ;;  %3793 = vmatmul.mubr.bf16.gmra.mrb[8].mxu1 %v3503_v51  ;;  %v3471_v10 = vsel %vm3368_vm12, %v3439_v21, %v5714_v34  ;;  %v3472_v33 = vsel %vm3368_vm12, %v3440_v42, %v5715_v28  ;;  %v5729_v24 = vunpack.i.l.bf16 %v5728_v27  ;;  %v3506_v36 = vpack.c.bf16 %v3376_v52, %v3375_v62 }
 0x34d   : > { %v5718_v8 = vpop.permute.xlu1 %5717  ;;  %6032 = vrot.lane.b32.xlu1 %v6031_v13, %s6295_s8  ;;  %v3507_v9 = vpack.c.bf16 %v3472_v33, %v3471_v10  ;;  %v5740_v20 = vunpack.i.h.bf16 %v5738_v56  ;;  %v5739_v43 = vunpack.i.l.bf16 %v5738_v56  ;;  %v3313_v38 = vsel %vm1528_vm7, %v9530_v58, %v5705_v6  ;;  %v9537_v58 = vld [vmem:[#allocation16_spill] sm:$0xff] }
 0x34e   : > { %v5720_v1 = vunpack.i.h.bf16 %v5718_v8  ;;  %v5719_v59 = vunpack.i.l.bf16 %v5718_v8  ;;  %v3312_v29 = vsel %vm1528_vm7, %v9531_v2, %v5704_v46  ;;  %v3345_v26 = vsel %vm1660_vm11, %v3313_v38, %v5730_v3 }
 0x34f   : > { %v8655_v39 = vpop.permute.xlu0 %5747  ;;  %3800 = vmatprep.mubr.bf16.mxu1 %v3507_v9  ;;  %v3344_v27 = vsel %vm1660_vm11, %v3312_v29, %v5729_v24  ;;  %v3378_v21 = vsel %vm3368_vm12, %v3345_v26, %v5740_v20  ;;  %v9536_v20 = vld [vmem:[#allocation12_spill] sm:$0xff] }
 0x350   : > { %6057 = vrot.lane.b32.xlu0 %v6011_v16, %s6294_s14  ;;  %v3410_v28 = vsel %vm1528_vm7, %v8059_v49, %v5720_v1  ;;  %v3409_v34 = vsel %vm1528_vm7, %v8056_v40, %v5719_v59  ;;  %v3377_v56 = vsel %vm3368_vm12, %v3344_v27, %v5739_v43  ;;  %v9534_v40 = vld [vmem:[#allocation7_spill] sm:$0xff]  ;;  %v5750_v57 = vunpack.i.h.bf16 %v8655_v39 }
 0x351   : > { %v5723_v45 = vpop.permute.xlu1 %5722  ;;  %6042 = vrot.lane.b32.xlu1 %v6041_v32, %s6290_s25  ;;  %v3544_v0 = vpack.c.bf16 %v9535_v14, %v9534_v40  ;;  %v3509_v8 = vpack.c.bf16 %v3378_v21, %v3377_v56  ;;  %v5749_v4 = vunpack.i.l.bf16 %v8655_v39 }
 0x352   : > { %v5725_v60 = vunpack.i.h.bf16 %v5723_v45  ;;  %v5724_v48 = vunpack.i.l.bf16 %v5723_v45 }
 0x353   : > { %v5758_v18 = vpop.permute.xlu0 %5757  ;;  %4902 = vmatmul.mubr.msk.bf16.gmra.mrb[60].mxu0 %vm1528_vm7, %v3544_v0  ;;  %v3314_v43 = vsel %vm1528_vm7, %v9536_v20, %v5749_v4  ;;  %v9539_v4 = vld [vmem:[#allocation30_spill] sm:$0xff] }
 0x354   : > { %6067 = vrot.lane.b32.xlu0 %v8600_v55, %s6295_s8  ;;  %3801 = vmatmul.mubr.bf16.gmra.mrb[12].mxu1 %v3506_v36  ;;  %v3441_v55 = vsel %vm1660_vm11, %v3409_v34, %v5724_v48  ;;  %v3442_v19 = vsel %vm1660_vm11, %v3410_v28, %v5725_v60  ;;  %v5760_v32 = vunpack.i.h.bf16 %v5758_v18  ;;  %v5759_v62 = vunpack.i.l.bf16 %v5758_v18 }
 0x355   : > { %v5733_v16 = vpop.permute.xlu1 %5732  ;;  %6052 = vrot.lane.b32.xlu1 %v9532_v53, %s6294_s14  ;;  %v3315_v36 = vsel %vm1528_vm7, %v8031_v31, %v5750_v57 }
 0x356   : > { %v5735_v51 = vunpack.i.h.bf16 %v5733_v16  ;;  %v5734_v13 = vunpack.i.l.bf16 %v5733_v16  ;;  %v3346_v60 = vsel %vm1660_vm11, %v3314_v43, %v5759_v62  ;;  %v3347_v39 = vsel %vm1660_vm11, %v3315_v36, %v5760_v32 }
 0x357   : > { %v5768_v37 = vpop.permute.xlu0 %5767 }
 0x358   : > { %v3473_v42 = vsel %vm3368_vm12, %v3441_v55, %v5734_v13  ;;  %v3474_v10 = vsel %vm3368_vm12, %v3442_v19, %v5735_v51  ;;  %v5770_v3 = vunpack.i.h.bf16 %v5768_v37  ;;  %v5769_v24 = vunpack.i.l.bf16 %v5768_v37 }
 0x359   : > { %v5743_v33 = vpop.permute.xlu1 %5742  ;;  %v3510_v49 = vpack.c.bf16 %v3474_v10, %v3473_v42  ;;  %6062 = vrot.lane.b32.xlu1 %v9533_v5, %s6295_s8  ;;  %s215_s8 = sand.u32 1, %s6276_s19  }
 0x35a   : > { %v5745_v6 = vunpack.i.h.bf16 %v5743_v33  ;;  %v5744_v46 = vunpack.i.l.bf16 %v5743_v33  ;;  %v3379_v26 = vsel %vm3368_vm12, %v3346_v60, %v5769_v24  ;;  %v3380_v53 = vsel %vm3368_vm12, %v3347_v39, %v5770_v3  ;;  %v9541_v3 = vld [vmem:[#allocation28_spill] sm:$0xff]  ;;  %s4530_s15 = sshll.u32 %s215_s8, 8  ;;  %s9273_s22 = scalar_lea.sflag [#allocation3], %s215_s8 }
 0x35b   : > { %v5778_v9 = vpop.permute.xlu0 %5777  ;;  %3808 = vmatprep.mubr.bf16.mxu1 %v3510_v49  ;;  %v3512_v13 = vpack.c.bf16 %v3380_v53, %v3379_v26  ;;  %s9147_s16 = scalar_lea.vmem [#allocation2], %s4530_s15 }
 0x35c   : > { %3809 = vmatmul.mubr.bf16.gmra.mrb[16].mxu1 %v3509_v8  ;;  %v3412_v18 = vsel %vm1528_vm7, %v8084_v12, %v5745_v6  ;;  %v3411_v38 = vsel %vm1528_vm7, %v9537_v58, %v5744_v46  ;;  %v5780_v55 = vunpack.i.h.bf16 %v5778_v9  ;;  %v5779_v19 = vunpack.i.l.bf16 %v5778_v9  ;;  %v9538_v8 = vld [vmem:[#allocation6_spill] sm:$0xff]  ;;  %v9540_v6 = vld [vmem:[#allocation11_spill] sm:$0xff]  ;;  %s4464_s23 = sshll.u32 %s9147_s16, 4  ;;  %s9267_s23 = int_to_ptr.vmem [resolvable:$true] %s4464_s23 }
 0x35d   : > { %v5753_v52 = vpop.permute.xlu1 %5752  ;;  %s6222_s7 = scalar_lea.vmem %s9267_s23, 4096  ;;  %p6229_p0 = scmp.lt.s32.totalorder %s9267_s23, %s6227_s13 }
 0x35e   : > { %v5755_v45 = vunpack.i.h.bf16 %v5753_v52  ;;  %v5754_v1 = vunpack.i.l.bf16 %v5753_v52  ;;  %v3317_v57 = vsel %vm1528_vm7, %v9538_v8, %v5780_v55  ;;  %v3316_v32 = vsel %vm1528_vm7, %v9539_v4, %v5779_v19  ;;  %v9542_v19 = vld [vmem:[#allocation13_spill] sm:$0xff]  ;;  %p6223_p11 = scmp.ne.s32.totalorder %s9267_s23, %s6222_s7  ;;  %p6230_p1 = scmp.lt.s32.totalorder %s6228_s9, %s6222_s7 }
 0x35f   : > { %v5788_v59 = vpop.permute.xlu0 %5787 }
 0x360   : > { %v3444_v16 = vsel %vm1660_vm11, %v3412_v18, %v5755_v45  ;;  %v3443_v31 = vsel %vm1660_vm11, %v3411_v38, %v5754_v1  ;;  %v5790_v56 = vunpack.i.h.bf16 %v5788_v59  ;;  %v5789_v21 = vunpack.i.l.bf16 %v5788_v59  ;;  %p6224_p12 = pnand %p6223_p11, %p6366_p5  ;;  %p6231_p2 = por %p6230_p1, %p6229_p0 }
 0x361   : > { %v5763_v48 = vpop.permute.xlu1 %5762 }
 0x362   : > { %v5765_v2 = vunpack.i.h.bf16 %v5763_v48  ;;  %v5764_v29 = vunpack.i.l.bf16 %v5763_v48  ;;  %v3348_v62 = vsel %vm1660_vm11, %v3316_v32, %v5789_v21  ;;  %v3349_v9 = vsel %vm1660_vm11, %v3317_v57, %v5790_v56  ;;  %v9543_v21 = vld [vmem:[#allocation14_spill] sm:$0xff]  ;;  %p6225_p13 = pneg %p6224_p12 }
 0x363   : > { %v5798_v27 = vpop.permute.xlu0 %5797 }
 0x364   : > { %v3475_v28 = vsel %vm3368_vm12, %v3443_v31, %v5764_v29  ;;  %v3476_v34 = vsel %vm3368_vm12, %v3444_v16, %v5765_v2  ;;  %v5800_v49 = vunpack.i.h.bf16 %v5798_v27  ;;  %v5799_v5 = vunpack.i.l.bf16 %v5798_v27  ;;  %p6232_p3 = pnand %p6231_p2, %p6225_p13 }
 0x365   : > { %v5773_v51 = vpop.permute.xlu1 %5772  ;;  %v3513_v12 = vpack.c.bf16 %v3476_v34, %v3475_v28 }
 0x366   : > { %v5775_v10 = vunpack.i.h.bf16 %v5773_v51  ;;  %v5774_v33 = vunpack.i.l.bf16 %v5773_v51  ;;  %v3381_v43 = vsel %vm3368_vm12, %v3348_v62, %v5799_v5  ;;  %v3382_v60 = vsel %vm3368_vm12, %v3349_v9, %v5800_v49 }
 0x367   : > { %v5808_v37 = vpop.permute.xlu0 %5807  ;;  %3816 = vmatprep.mubr.bf16.mxu1 %v3513_v12  ;;  %v3515_v38 = vpack.c.bf16 %v3382_v60, %v3381_v43 }
 0x368   : > { %3817 = vmatmul.mubr.bf16.gmra.mrb[20].mxu1 %v3512_v13  ;;  %v3414_v46 = vsel %vm1528_vm7, %v9540_v6, %v5775_v10  ;;  %v3413_v24 = vsel %vm1528_vm7, %v9541_v3, %v5774_v33  ;;  %v5810_v29 = vunpack.i.h.bf16 %v5808_v37  ;;  %v5809_v16 = vunpack.i.l.bf16 %v5808_v37 }
 0x369   : > { %v5783_v42 = vpop.permute.xlu1 %5782 }
 0x36a   : > { %v5785_v40 = vunpack.i.h.bf16 %v5783_v42  ;;  %v5784_v14 = vunpack.i.l.bf16 %v5783_v42  ;;  %v3319_v56 = vsel %vm1528_vm7, %v9542_v19, %v5810_v29  ;;  %v3318_v42 = vsel %vm1528_vm7, %v9543_v21, %v5809_v16 }
 0x36b   : > { %v5818_v0 = vpop.permute.xlu0 %5817 }
 0x36c   : > { %v3445_v59 = vsel %vm1660_vm11, %v3413_v24, %v5784_v14  ;;  %v3446_v36 = vsel %vm1660_vm11, %v3414_v46, %v5785_v40  ;;  %v5820_v31 = vunpack.i.h.bf16 %v5818_v0  ;;  %v5819_v27 = vunpack.i.l.bf16 %v5818_v0 }
 0x36d   : > { %v5793_v52 = vpop.permute.xlu1 %5792 }
 0x36e   : > { %v5795_v45 = vunpack.i.h.bf16 %v5793_v52  ;;  %v5794_v1 = vunpack.i.l.bf16 %v5793_v52  ;;  %v3350_v10 = vsel %vm1660_vm11, %v3318_v42, %v5819_v27  ;;  %v3351_v37 = vsel %vm1660_vm11, %v3319_v56, %v5820_v31 }
 0x36f   : > { %v5828_v20 = vpop.permute.xlu0 %5827 }
 0x370   : > { %v3477_v39 = vsel %vm3368_vm12, %v3445_v59, %v5794_v1  ;;  %v3478_v48 = vsel %vm3368_vm12, %v3446_v36, %v5795_v45  ;;  %v5830_v34 = vunpack.i.h.bf16 %v5828_v20  ;;  %v5829_v51 = vunpack.i.l.bf16 %v5828_v20 }
 0x371   : > { %v5803_v18 = vpop.permute.xlu1 %5802  ;;  %v3516_v58 = vpack.c.bf16 %v3478_v48, %v3477_v39 }
 0x372   : > { %v5805_v53 = vunpack.i.h.bf16 %v5803_v18  ;;  %v5804_v28 = vunpack.i.l.bf16 %v5803_v18  ;;  %v3383_v4 = vsel %vm3368_vm12, %v3350_v10, %v5829_v51  ;;  %v3384_v32 = vsel %vm3368_vm12, %v3351_v37, %v5830_v34  ;;  %v9544_v18 = vld [vmem:[#allocation21_spill] sm:$0xff]  ;;  %v9547_v34 = vld [vmem:[#allocation18_spill] sm:$0xff] }
 0x373   : > { %v5838_v2 = vpop.permute.xlu0 %5837  ;;  %3824 = vmatprep.mubr.bf16.mxu1 %v3516_v58  ;;  %v3518_v6 = vpack.c.bf16 %v3384_v32, %v3383_v4 }
 0x374   : > { %3825 = vmatmul.mubr.bf16.gmra.mrb[24].mxu1 %v3515_v38  ;;  %v3416_v49 = vsel %vm1528_vm7, %v8191_v50, %v5805_v53  ;;  %v3415_v5 = vsel %vm1528_vm7, %v8174_v23, %v5804_v28  ;;  %v5840_v23 = vunpack.i.h.bf16 %v5838_v2  ;;  %v5839_v3 = vunpack.i.l.bf16 %v5838_v2  ;;  %v9545_v38 = vld [vmem:[#allocation10_spill] sm:$0xff]  ;;  %v9546_v53 = vld [vmem:[#allocation19_spill] sm:$0xff] }
 0x375   : > { %v5813_v26 = vpop.permute.xlu1 %5812 }
 0x376   : > { %v5815_v12 = vunpack.i.h.bf16 %v5813_v26  ;;  %v5814_v13 = vunpack.i.l.bf16 %v5813_v26  ;;  %v3321_v58 = vsel %vm1528_vm7, %v9544_v18, %v5840_v23  ;;  %v3320_v29 = vsel %vm1528_vm7, %v9545_v38, %v5839_v3 }
 0x377   : > { %v5848_v55 = vpop.permute.xlu0 %5847 }
 0x378   : > { %v3448_v0 = vsel %vm1660_vm11, %v3416_v49, %v5815_v12  ;;  %v3447_v8 = vsel %vm1660_vm11, %v3415_v5, %v5814_v13  ;;  %v5850_v24 = vunpack.i.h.bf16 %v5848_v55  ;;  %v5849_v45 = vunpack.i.l.bf16 %v5848_v55 }
 0x379   : > { %v5823_v33 = vpop.permute.xlu1 %5822 }
 0x37a   : > { %v5825_v40 = vunpack.i.h.bf16 %v5823_v33  ;;  %v5824_v14 = vunpack.i.l.bf16 %v5823_v33  ;;  %v3352_v2 = vsel %vm1660_vm11, %v3320_v29, %v5849_v45  ;;  %v3353_v31 = vsel %vm1660_vm11, %v3321_v58, %v5850_v24  ;;  %v9548_v45 = vld [vmem:[#allocation17_spill] sm:$0xff] }
 0x37b   : > { %v5858_v57 = vpop.permute.xlu0 %5857 }
 0x37c   : > { %v3479_v62 = vsel %vm3368_vm12, %v3447_v8, %v5824_v14  ;;  %v3480_v9 = vsel %vm3368_vm12, %v3448_v0, %v5825_v40  ;;  %v5860_v20 = vunpack.i.h.bf16 %v5858_v57  ;;  %v5859_v43 = vunpack.i.l.bf16 %v5858_v57 }
 0x37d   : > { %v5833_v52 = vpop.permute.xlu1 %5832  ;;  %v3519_v50 = vpack.c.bf16 %v3480_v9, %v3479_v62 }
 0x37e   : > { %v5835_v59 = vunpack.i.h.bf16 %v5833_v52  ;;  %v5834_v36 = vunpack.i.l.bf16 %v5833_v52  ;;  %v3385_v10 = vsel %vm3368_vm12, %v3352_v2, %v5859_v43  ;;  %v3386_v37 = vsel %vm3368_vm12, %v3353_v31, %v5860_v20 }
 0x37f   : > { %v5868_v46 = vpop.permute.xlu0 %5867  ;;  %3832 = vmatprep.mubr.bf16.mxu1 %v3519_v50  ;;  %v3521_v14 = vpack.c.bf16 %v3386_v37, %v3385_v10 }
 0x380   : > { %3833 = vmatmul.mubr.bf16.gmra.mrb[28].mxu1 %v3518_v6  ;;  %v3418_v28 = vsel %vm1528_vm7, %v9546_v53, %v5835_v59  ;;  %v3417_v51 = vsel %vm1528_vm7, %v9547_v34, %v5834_v36  ;;  %v5870_v8 = vunpack.i.h.bf16 %v5868_v46  ;;  %v5869_v57 = vunpack.i.l.bf16 %v5868_v46  ;;  %v9549_v59 = vld [vmem:[#allocation23_spill] sm:$0xff] }
 0x381   : > { %v5843_v1 = vpop.permute.xlu1 %5842 }
 0x382   : > { %v5845_v60 = vunpack.i.h.bf16 %v5843_v1  ;;  %v5844_v39 = vunpack.i.l.bf16 %v5843_v1  ;;  %v3323_v1 = vsel %vm1528_vm7, %v9548_v45, %v5870_v8  ;;  %v3322_v36 = vsel %vm1528_vm7, %v9549_v59, %v5869_v57 }
 0x383   : > { %v5878_v48 = vpop.permute.xlu0 %5877 }
 0x384   : > { %v8744_v16 = vpop.f32.mrb[32].mxu0  ;;  %v3449_v19 = vsel %vm1660_vm11, %v3417_v51, %v5844_v39  ;;  %v3450_v56 = vsel %vm1660_vm11, %v3418_v28, %v5845_v60  ;;  %v5880_v4 = vunpack.i.h.bf16 %v5878_v48  ;;  %v5879_v32 = vunpack.i.l.bf16 %v5878_v48 }
 0x385   : > { %v8748_v27 = vpop.f32.mrb[33].mxu0  ;;  %v5853_v26 = vpop.permute.xlu1 %5852 }
 0x386   : > { %v8754_v12 = vpop.f32.mrb[34].mxu0  ;;  %v5855_v13 = vunpack.i.h.bf16 %v5853_v26  ;;  %v5854_v55 = vunpack.i.l.bf16 %v5853_v26  ;;  %v3354_v20 = vsel %vm1660_vm11, %v3322_v36, %v5879_v32  ;;  %v3355_v46 = vsel %vm1660_vm11, %v3323_v1, %v5880_v4 }
 0x387   : > { %v8758_v21 = vpop.f32.mrb[35].mxu0  ;;  %v5888_v42 = vpop.permute.xlu0 %5887 }
 0x388   : > { %v3481_v33 = vsel %vm3368_vm12, %v3449_v19, %v5854_v55  ;;  %v3482_v49 = vsel %vm3368_vm12, %v3450_v56, %v5855_v13  ;;  %v5890_v50 = vunpack.i.h.bf16 %v5888_v42  ;;  %v5889_v6 = vunpack.i.l.bf16 %v5888_v42 }
 0x389   : > { %v5863_v5 = vpop.permute.xlu1 %5862  ;;  %v3522_v40 = vpack.c.bf16 %v3482_v49, %v3481_v33 }
 0x38a   : > { %v5865_v9 = vunpack.i.h.bf16 %v5863_v5  ;;  %v5864_v52 = vunpack.i.l.bf16 %v5863_v5  ;;  %v3387_v2 = vsel %vm3368_vm12, %v3354_v20, %v5889_v6  ;;  %v3388_v31 = vsel %vm3368_vm12, %v3355_v46, %v5890_v50 }
 0x38b   : > { %v5898_v0 = vpop.permute.xlu0 %5897  ;;  %3840 = vmatprep.mubr.bf16.mxu1 %v3522_v40  ;;  %v3524_v34 = vpack.c.bf16 %v3388_v31, %v3387_v2 }
 0x38c   : > { %3841 = vmatmul.mubr.bf16.gmra.mrb[32].mxu1 %v3521_v14  ;;  %v3420_v60 = vsel %vm1528_vm7, %v8271_v17, %v5865_v9  ;;  %v3419_v39 = vsel %vm1528_vm7, %v8265_v35, %v5864_v52  ;;  %v5900_v35 = vunpack.i.h.bf16 %v5898_v0  ;;  %v5899_v13 = vunpack.i.l.bf16 %v5898_v0  ;;  %v9550_v0 = vld [vmem:[#allocation15_spill] sm:$0xff] }
 0x38d   : > { %v5873_v62 = vpop.permute.xlu1 %5872 }
 0x38e   : > { %v5875_v23 = vunpack.i.h.bf16 %v5873_v62  ;;  %v5874_v3 = vunpack.i.l.bf16 %v5873_v62  ;;  %v3325_v32 = vsel %vm1528_vm7, %v9550_v0, %v5900_v35  ;;  %v9551_v62 = vld [vmem:[#allocation22_spill] sm:$0xff] }
 0x38f   : > { %v5908_v24 = vpop.permute.xlu0 %5907  ;;  %v3324_v9 = vsel %vm1528_vm7, %v9551_v62, %v5899_v13 }
 0x390   : > { %v3452_v58 = vsel %vm1660_vm11, %v3420_v60, %v5875_v23  ;;  %v3451_v38 = vsel %vm1660_vm11, %v3419_v39, %v5874_v3  ;;  %v5910_v19 = vunpack.i.h.bf16 %v5908_v24  ;;  %v5909_v56 = vunpack.i.l.bf16 %v5908_v24 }
 0x391   : > { %v5883_v43 = vpop.permute.xlu1 %5882 }
 0x392   : > { %v5885_v48 = vunpack.i.h.bf16 %v5883_v43  ;;  %v5884_v18 = vunpack.i.l.bf16 %v5883_v43  ;;  %v3356_v52 = vsel %vm1660_vm11, %v3324_v9, %v5909_v56  ;;  %v3357_v50 = vsel %vm1660_vm11, %v3325_v32, %v5910_v19  ;;  %v9552_v19 = vld [vmem:[#allocation25_spill] sm:$0xff] }
 0x393   : > { %v5918_v29 = vpop.permute.xlu0 %5917 }
 0x394   : > { %v3483_v26 = vsel %vm3368_vm12, %v3451_v38, %v5884_v18  ;;  %v3484_v53 = vsel %vm3368_vm12, %v3452_v58, %v5885_v48  ;;  %v5920_v5 = vunpack.i.h.bf16 %v5918_v29  ;;  %v5919_v40 = vunpack.i.l.bf16 %v5918_v29 }
 0x395   : > { %v5893_v28 = vpop.permute.xlu1 %5892  ;;  %v3525_v17 = vpack.c.bf16 %v3484_v53, %v3483_v26 }
 0x396   : > { %v5895_v37 = vunpack.i.h.bf16 %v5893_v28  ;;  %v5894_v33 = vunpack.i.l.bf16 %v5893_v28  ;;  %v3389_v20 = vsel %vm3368_vm12, %v3356_v52, %v5919_v40  ;;  %v3390_v46 = vsel %vm3368_vm12, %v3357_v50, %v5920_v5  ;;  %v9553_v5 = vld [vmem:[#allocation35_spill] sm:$0xff] }
 0x397   : > { %v5928_v51 = vpop.permute.xlu0 %5927  ;;  %3848 = vmatprep.mubr.bf16.mxu1 %v3525_v17  ;;  %v3527_v48 = vpack.c.bf16 %v3390_v46, %v3389_v20 }
 0x398   : > { %v8780_v55 = vpop.f32.mrb[36].mxu0  ;;  %3849 = vmatmul.mubr.bf16.gmra.mrb[36].mxu1 %v3524_v34  ;;  %v3422_v23 = vsel %vm1528_vm7, %v8297_v54, %v5895_v37  ;;  %v3421_v3 = vsel %vm1528_vm7, %v8294_v41, %v5894_v33  ;;  %v5930_v41 = vunpack.i.h.bf16 %v5928_v51  ;;  %v5929_v58 = vunpack.i.l.bf16 %v5928_v51 }
 0x399   : > { %v8782_v42 = vpop.f32.mrb[37].mxu0  ;;  %v5903_v10 = vpop.permute.xlu1 %5902 }
 0x39a   : > { %v8784_v49 = vpop.f32.mrb[38].mxu0  ;;  %v5905_v8 = vunpack.i.h.bf16 %v5903_v10  ;;  %v5904_v57 = vunpack.i.l.bf16 %v5903_v10  ;;  %v3327_v13 = vsel %vm1528_vm7, %v8250_v22, %v5930_v41  ;;  %v3326_v56 = vsel %vm1528_vm7, %v9552_v19, %v5929_v58 }
 0x39b   : > { %v8786_v14 = vpop.f32.mrb[39].mxu0  ;;  %v5938_v4 = vpop.permute.xlu0 %5937 }
 0x39c   : > { %v3453_v1 = vsel %vm1660_vm11, %v3421_v3, %v5904_v57  ;;  %v3454_v59 = vsel %vm1660_vm11, %v3422_v23, %v5905_v8  ;;  %v5940_v38 = vunpack.i.h.bf16 %v5938_v4  ;;  %v5939_v29 = vunpack.i.l.bf16 %v5938_v4 }
 0x39d   : > { %v5913_v6 = vpop.permute.xlu1 %5912 }
 0x39e   : > { %v5915_v24 = vunpack.i.h.bf16 %v5913_v6  ;;  %v5914_v45 = vunpack.i.l.bf16 %v5913_v6  ;;  %v3358_v10 = vsel %vm1660_vm11, %v3326_v56, %v5939_v29  ;;  %v3359_v51 = vsel %vm1660_vm11, %v3327_v13, %v5940_v38  ;;  %v9554_v29 = vld [vmem:[#allocation20_spill] sm:$0xff] }
 0x39f   : > { %v5948_v36 = vpop.permute.xlu0 %5947 }
 0x3a0   : > { %v3485_v43 = vsel %vm3368_vm12, %v3453_v1, %v5914_v45  ;;  %v3486_v60 = vsel %vm3368_vm12, %v3454_v59, %v5915_v24  ;;  %v5950_v53 = vunpack.i.h.bf16 %v5948_v36  ;;  %v5949_v28 = vunpack.i.l.bf16 %v5948_v36 }
 0x3a1   : > { %v5923_v39 = vpop.permute.xlu1 %5922  ;;  %v3528_v54 = vpack.c.bf16 %v3486_v60, %v3485_v43 }
 0x3a2   : > { %v5925_v31 = vunpack.i.h.bf16 %v5923_v39  ;;  %v5924_v26 = vunpack.i.l.bf16 %v5923_v39  ;;  %v3391_v32 = vsel %vm3368_vm12, %v3358_v10, %v5949_v28  ;;  %v3392_v62 = vsel %vm3368_vm12, %v3359_v51, %v5950_v53 }
 0x3a3   : > { %v5958_v18 = vpop.permute.xlu0 %5957  ;;  %3856 = vmatprep.mubr.bf16.mxu1 %v3528_v54  ;;  %v3530_v24 = vpack.c.bf16 %v3392_v62, %v3391_v32 }
 0x3a4   : > { %3857 = vmatmul.mubr.bf16.gmra.mrb[40].mxu1 %v3527_v48  ;;  %v3424_v33 = vsel %vm1528_vm7, %v8355_v47, %v5925_v31  ;;  %v3423_v40 = vsel %vm1528_vm7, %v9553_v5, %v5924_v26  ;;  %v5960_v59 = vunpack.i.h.bf16 %v5958_v18  ;;  %v5959_v36 = vunpack.i.l.bf16 %v5958_v18  ;;  %v9555_v31 = vld [vmem:[#allocation24_spill] sm:$0xff] }
 0x3a5   : > { %v5933_v2 = vpop.permute.xlu1 %5932 }
 0x3a6   : > { %v5935_v17 = vunpack.i.h.bf16 %v5933_v2  ;;  %v5934_v34 = vunpack.i.l.bf16 %v5933_v2  ;;  %v3329_v2 = vsel %vm1528_vm7, %v9554_v29, %v5960_v59  ;;  %v3328_v26 = vsel %vm1528_vm7, %v9555_v31, %v5959_v36 }
 0x3a7   : > { %v5968_v35 = vpop.permute.xlu0 %5967 }
 0x3a8   : > { %v3456_v4 = vsel %vm1660_vm11, %v3424_v33, %v5935_v17  ;;  %v3455_v22 = vsel %vm1660_vm11, %v3423_v40, %v5934_v34  ;;  %v5970_v20 = vunpack.i.h.bf16 %v5968_v35  ;;  %v5969_v46 = vunpack.i.l.bf16 %v5968_v35  ;;  %v9556_v17 = vld [vmem:[#allocation37_spill] sm:$0xff]  ;;  %v9557_v35 = vld [vmem:[#allocation36_spill] sm:$0xff] }
 0x3a9   : > { %v5943_v37 = vpop.permute.xlu1 %5942 }
 0x3aa   : > { %v5945_v8 = vunpack.i.h.bf16 %v5943_v37  ;;  %v5944_v57 = vunpack.i.l.bf16 %v5943_v37  ;;  %v3360_v53 = vsel %vm1660_vm11, %v3328_v26, %v5969_v46  ;;  %v3361_v18 = vsel %vm1660_vm11, %v3329_v2, %v5970_v20 }
 0x3ab   : > { %v5978_v0 = vpop.permute.xlu0 %5977 }
 0x3ac   : > { %v8818_v9 = vpop.f32.mrb[40].mxu0  ;;  %v3487_v52 = vsel %vm3368_vm12, %v3455_v22, %v5944_v57  ;;  %v3488_v47 = vsel %vm3368_vm12, %v3456_v4, %v5945_v8  ;;  %v5980_v54 = vunpack.i.h.bf16 %v5978_v0  ;;  %v5979_v48 = vunpack.i.l.bf16 %v5978_v0 }
 0x3ad   : > { %v8822_v50 = vpop.f32.mrb[41].mxu0  ;;  %v5953_v6 = vpop.permute.xlu1 %5952  ;;  %v3531_v23 = vpack.c.bf16 %v3488_v47, %v3487_v52 }
 0x3ae   : > { %v8824_v3 = vpop.f32.mrb[42].mxu0  ;;  %v5955_v60 = vunpack.i.h.bf16 %v5953_v6  ;;  %v5954_v39 = vunpack.i.l.bf16 %v5953_v6  ;;  %v3393_v33 = vsel %vm3368_vm12, %v3360_v53, %v5979_v48  ;;  %v3394_v5 = vsel %vm3368_vm12, %v3361_v18, %v5980_v54  ;;  %v9559_v54 = vld [vmem:[#allocation31_spill] sm:$0xff] }
 0x3af   : > { %v8826_v45 = vpop.f32.mrb[43].mxu0  ;;  %v5988_v1 = vpop.permute.xlu0 %5987  ;;  %3864 = vmatprep.mubr.bf16.mxu1 %v3531_v23  ;;  %v3533_v22 = vpack.c.bf16 %v3394_v5, %v3393_v33 }
 0x3b0   : > { %3865 = vmatmul.mubr.bf16.gmra.mrb[44].mxu1 %v3530_v24  ;;  %v3426_v34 = vsel %vm1528_vm7, %v9556_v17, %v5955_v60  ;;  %v3425_v13 = vsel %vm1528_vm7, %v9557_v35, %v5954_v39  ;;  %v5990_v32 = vunpack.i.h.bf16 %v5988_v1  ;;  %v5989_v62 = vunpack.i.l.bf16 %v5988_v1  ;;  %v9558_v60 = vld [vmem:[#allocation33_spill] sm:$0xff] }
 0x3b1   : > { %v5963_v43 = vpop.permute.xlu1 %5962 }
 0x3b2   : > { %v5965_v41 = vunpack.i.h.bf16 %v5963_v43  ;;  %v5964_v58 = vunpack.i.l.bf16 %v5963_v43  ;;  %v3331_v39 = vsel %vm1528_vm7, %v9558_v60, %v5990_v32  ;;  %v3330_v48 = vsel %vm1528_vm7, %v9559_v54, %v5989_v62 }
 0x3b3   : > { %v5998_v38 = vpop.permute.xlu0 %5997 }
 0x3b4   : > { %v3457_v10 = vsel %vm1660_vm11, %v3425_v13, %v5964_v58  ;;  %v3458_v51 = vsel %vm1660_vm11, %v3426_v34, %v5965_v41  ;;  %v6000_v52 = vunpack.i.h.bf16 %v5998_v38  ;;  %v5999_v47 = vunpack.i.l.bf16 %v5998_v38 }
 0x3b5   : > { %v5973_v28 = vpop.permute.xlu1 %5972 }
 0x3b6   : > { %v5975_v19 = vunpack.i.h.bf16 %v5973_v28  ;;  %v5974_v56 = vunpack.i.l.bf16 %v5973_v28  ;;  %v3362_v1 = vsel %vm1660_vm11, %v3330_v48, %v5999_v47  ;;  %v3363_v58 = vsel %vm1660_vm11, %v3331_v39, %v6000_v52 }
 0x3b7   : > { %v6008_v37 = vpop.permute.xlu0 %6007 }
 0x3b8   : > { %v3489_v40 = vsel %vm3368_vm12, %v3457_v10, %v5974_v56  ;;  %v3490_v8 = vsel %vm3368_vm12, %v3458_v51, %v5975_v19  ;;  %v6010_v59 = vunpack.i.h.bf16 %v6008_v37  ;;  %v6009_v36 = vunpack.i.l.bf16 %v6008_v37 }
 0x3b9   : > { %v5983_v57 = vpop.permute.xlu1 %5982  ;;  %v3534_v4 = vpack.c.bf16 %v3490_v8, %v3489_v40 }
 0x3ba   : > { %v5985_v23 = vunpack.i.h.bf16 %v5983_v57  ;;  %v5984_v24 = vunpack.i.l.bf16 %v5983_v57  ;;  %v3395_v13 = vsel %vm3368_vm12, %v3362_v1, %v6009_v36  ;;  %v3396_v19 = vsel %vm3368_vm12, %v3363_v58, %v6010_v59 }
 0x3bb   : > { %v6018_v0 = vpop.permute.xlu0 %6017  ;;  %3872 = vmatprep.mubr.bf16.mxu1 %v3534_v4  ;;  %v3536_v51 = vpack.c.bf16 %v3396_v19, %v3395_v13 }
 0x3bc   : > { %3873 = vmatmul.mubr.bf16.gmra.mrb[48].mxu1 %v3533_v22  ;;  %v3428_v2 = vsel %vm1528_vm7, %v8486_v44, %v5985_v23  ;;  %v3427_v31 = vsel %vm1528_vm7, %v8483_v11, %v5984_v24  ;;  %v6020_v37 = vunpack.i.h.bf16 %v6018_v0  ;;  %v6019_v33 = vunpack.i.l.bf16 %v6018_v0  ;;  %v9561_v24 = vld [vmem:[#allocation32_spill] sm:$0xff] }
 0x3bd   : > { %v5993_v6 = vpop.permute.xlu1 %5992 }
 0x3be   : > { %v5995_v20 = vunpack.i.h.bf16 %v5993_v6  ;;  %v5994_v46 = vunpack.i.l.bf16 %v5993_v6  ;;  %v9560_v6 = vld [vmem:[#allocation34_spill] sm:$0xff]  ;;  %v3332_v59 = vsel %vm1528_vm7, %v9561_v24, %v6019_v33 }
 0x3bf   : > { %v6028_v43 = vpop.permute.xlu0 %6027  ;;  %v3333_v23 = vsel %vm1528_vm7, %v9560_v6, %v6020_v37 }
 0x3c0   : > { %v8848_v41 = vpop.f32.mrb[44].mxu0  ;;  %v3460_v28 = vsel %vm1660_vm11, %v3428_v2, %v5995_v20  ;;  %v3459_v17 = vsel %vm1660_vm11, %v3427_v31, %v5994_v46  ;;  %v6030_v40 = vunpack.i.h.bf16 %v6028_v43  ;;  %v6029_v8 = vunpack.i.l.bf16 %v6028_v43 }
 0x3c1   : > { %v8852_v38 = vpop.f32.mrb[45].mxu0  ;;  %v6003_v29 = vpop.permute.xlu1 %6002 }
 0x3c2   : > { %v8858_v26 = vpop.f32.mrb[46].mxu0  ;;  %v6005_v53 = vunpack.i.h.bf16 %v6003_v29  ;;  %v6004_v18 = vunpack.i.l.bf16 %v6003_v29  ;;  %v3364_v36 = vsel %vm1660_vm11, %v3332_v59, %v6029_v8  ;;  %v3365_v0 = vsel %vm1660_vm11, %v3333_v23, %v6030_v40 }
 0x3c3   : > { %v8862_v34 = vpop.f32.mrb[47].mxu0  ;;  %v6038_v35 = vpop.permute.xlu0 %6037 }
 0x3c4   : > { %v3491_v44 = vsel %vm3368_vm12, %v3459_v17, %v6004_v18  ;;  %v3492_v56 = vsel %vm3368_vm12, %v3460_v28, %v6005_v53  ;;  %v6040_v32 = vunpack.i.h.bf16 %v6038_v35  ;;  %v6039_v62 = vunpack.i.l.bf16 %v6038_v35 }
 0x3c5   : > { %v6013_v11 = vpop.permute.xlu1 %6012  ;;  %v3537_v10 = vpack.c.bf16 %v3492_v56, %v3491_v44 }
 0x3c6   : > { %v6015_v4 = vunpack.i.h.bf16 %v6013_v11  ;;  %v6014_v22 = vunpack.i.l.bf16 %v6013_v11  ;;  %v3397_v58 = vsel %vm3368_vm12, %v3364_v36, %v6039_v62  ;;  %v3398_v29 = vsel %vm3368_vm12, %v3365_v0, %v6040_v32 }
 0x3c7   : > { %3880 = vmatprep.mubr.bf16.mxu1 %v3537_v10  ;;  %v6048_v5 = vpop.permute.xlu0 %6047  ;;  %v3539_v18 = vpack.c.bf16 %v3398_v29, %v3397_v58  ;;  %v8927_v29 = vld [vmem:[%s9319_s4] ss:$0 sm:$0xff] }
 0x3c8   : > { %3881 = vmatmul.mubr.bf16.gmra.mrb[52].mxu1 %v3536_v51  ;;  %v3430_v46 = vsel %vm1528_vm7, %v8563_v30, %v6015_v4  ;;  %v3429_v43 = vsel %vm1528_vm7, %v8560_v25, %v6014_v22  ;;  %v6050_v25 = vunpack.i.h.bf16 %v6048_v5  ;;  %v6049_v28 = vunpack.i.l.bf16 %v6048_v5 }
 0x3c9   : > { %v6023_v57 = vpop.permute.xlu1 %6022 }
 0x3ca   : > { %v6025_v52 = vunpack.i.h.bf16 %v6023_v57  ;;  %v6024_v47 = vunpack.i.l.bf16 %v6023_v57  ;;  %v3335_v5 = vsel %vm1528_vm7, %v8431_v61, %v6050_v25  ;;  %v3334_v57 = vsel %vm1528_vm7, %v8417_v63, %v6049_v28 }
 0x3cb   : > { %v6058_v60 = vpop.permute.xlu0 %6057 }
 0x3cc   : > { %v3462_v48 = vsel %vm1660_vm11, %v3430_v46, %v6025_v52  ;;  %v3461_v1 = vsel %vm1660_vm11, %v3429_v43, %v6024_v47  ;;  %v6060_v35 = vunpack.i.h.bf16 %v6058_v60  ;;  %v6059_v13 = vunpack.i.l.bf16 %v6058_v60 }
 0x3cd   : > { %v6033_v20 = vpop.permute.xlu1 %6032 }
 0x3ce   : > { %v6035_v39 = vunpack.i.h.bf16 %v6033_v20  ;;  %v6034_v54 = vunpack.i.l.bf16 %v6033_v20  ;;  %v3366_v22 = vsel %vm1660_vm11, %v3334_v57, %v6059_v13  ;;  %v3367_v32 = vsel %vm1660_vm11, %v3335_v5, %v6060_v35 }
 0x3cf   : > { %v6068_v17 = vpop.permute.xlu0 %6067 }
 0x3d0   : > { %v3493_v2 = vsel %vm3368_vm12, %v3461_v1, %v6034_v54  ;;  %v3494_v31 = vsel %vm3368_vm12, %v3462_v48, %v6035_v39  ;;  %v6070_v51 = vunpack.i.h.bf16 %v6068_v17  ;;  %v6069_v37 = vunpack.i.l.bf16 %v6068_v17 }
 0x3d1   : > { %v6043_v53 = vpop.permute.xlu1 %6042  ;;  %v3540_v30 = vpack.c.bf16 %v3494_v31, %v3493_v2 }
 0x3d2   : > { %v6045_v56 = vunpack.i.h.bf16 %v6043_v53  ;;  %v6044_v11 = vunpack.i.l.bf16 %v6043_v53  ;;  %v3399_v63 = vsel %vm3368_vm12, %v3366_v22, %v6069_v37  ;;  %v3400_v59 = vsel %vm3368_vm12, %v3367_v32, %v6070_v51 }
 0x3d3   : > { %3888 = vmatprep.mubr.bf16.mxu1 %v3540_v30  ;;  %v3542_v46 = vpack.c.bf16 %v3400_v59, %v3399_v63 }
 0x3d4   : > { %3889 = vmatmul.mubr.bf16.gmra.mrb[56].mxu1 %v3539_v18  ;;  %v3432_v52 = vsel %vm1528_vm7, %v8622_v7, %v6045_v56  ;;  %v3431_v47 = vsel %vm1528_vm7, %v8619_v15, %v6044_v11 }
 0x3d5   : > { %v8884_v19 = vpop.f32.mrb[48].mxu0  ;;  %v6053_v44 = vpop.permute.xlu1 %6052 }
 0x3d6   : > { %v8886_v10 = vpop.f32.mrb[49].mxu0  ;;  %v6055_v33 = vunpack.i.h.bf16 %v6053_v44  ;;  %v6054_v40 = vunpack.i.l.bf16 %v6053_v44 }
 0x3d7   : > { %v8888_v8 = vpop.f32.mrb[50].mxu0 }
 0x3d8   : > { %v8894_v4 = vpop.f32.mrb[51].mxu0  ;;  %v3463_v61 = vsel %vm1660_vm11, %v3431_v47, %v6054_v40  ;;  %v3464_v24 = vsel %vm1660_vm11, %v3432_v52, %v6055_v33 }
 0x3d9   : > { %v6063_v62 = vpop.permute.xlu1 %6062 }
 0x3da   : > { %v6065_v6 = vunpack.i.h.bf16 %v6063_v62  ;;  %v6064_v23 = vunpack.i.l.bf16 %v6063_v62 }
 0x3dc   : > { %v3495_v36 = vsel %vm3368_vm12, %v3463_v61, %v6064_v23  ;;  %v3496_v0 = vsel %vm3368_vm12, %v3464_v24, %v6065_v6 }
 0x3dd   : > { %v3543_v20 = vpack.c.bf16 %v3496_v0, %v3495_v36 }
 0x3df   : > { %3896 = vmatprep.mubr.bf16.mxu1 %v3543_v20 }
 0x3e0   : > { %3897 = vmatmul.mubr.bf16.gmra.mrb[60].mxu1 %v3542_v46 }
 0x3eb   : > { %v8908_v7 = vpop.f32.mrb[52].mxu0 }
 0x3ec   : > { %v8910_v15 = vpop.f32.mrb[53].mxu0 }
 0x3ed   : > { %v8912_v43 = vpop.f32.mrb[54].mxu0 }
 0x3ee   : > { %v8914_v60 = vpop.f32.mrb[55].mxu0 }
 0x403   : > { %v8916_v39 = vpop.f32.mrb[56].mxu0 }
 0x404   : > { %v8918_v54 = vpop.f32.mrb[57].mxu0 }
 0x405   : > { %v8920_v48 = vpop.f32.mrb[58].mxu0 }
 0x406   : > { %v4713_v1 = vpop.f32.mrb[0].mxu1  ;;  %v8922_v58 = vpop.f32.mrb[59].mxu0 }
 0x407   : > { %v4714_v2 = vpop.f32.mrb[1].mxu1 }
 0x408   : > { %v4715_v31 = vadd.f32 %v4714_v2, %v4713_v1  ;;  %v4716_v53 = vpop.f32.mrb[2].mxu1 }
 0x409   : > { %v4717_v30 = vpop.f32.mrb[3].mxu1 }
 0x40a   : > { %v3779_v18 = vadd.f32 %v4715_v31, %v8927_v29  ;;  %v4718_v25 = vadd.f32 %v4717_v30, %v4716_v53 }
 0x40c   : > { %v3940_v28 = vadd.f32 %v8748_v27, %v3779_v18  ;;  %v3782_v17 = vadd.f32 %v4718_v25, %v8927_v29 }
 0x40e   : > { %v4098_v35 = vmul.f32 0.2, %v3940_v28  ;;  %v3943_v13 = vadd.f32 %v8758_v21, %v3782_v17  ;;  %vm4066_vm0 = vcmp.ge.f32.partialorder %v3940_v28, 0.0 }
 0x410   : > { %v4099_v44 = vmul.f32 0.2, %v3943_v13  ;;  %v8933_v56 = vsel %vm4066_vm0, %v3940_v28, %v4098_v35  ;;  %vm4067_vm1 = vcmp.ge.f32.partialorder %v3943_v13, 0.0 }
 0x411   : > { %v4162_v11 = vmul.f32 %v8933_v56, %v8933_v56 }
 0x412   : > { %v8937_v51 = vsel %vm4067_vm1, %v3943_v13, %v4099_v44 }
 0x413   : > { %v4194_v37 = vsel %vm1528_vm7, %v4162_v11, 0.0  ;;  %v4163_v27 = vmul.f32 %v8937_v51, %v8937_v51 }
 0x414   : > { %4195 = vadd.xlane.f32.xlu1 %v4194_v37 }
 0x415   : > { %v4197_v33 = vsel %vm1528_vm7, %v4163_v27, 0.0 }
 0x416   : > { %4198 = vadd.xlane.f32.xlu0 %v4197_v33 }
 0x417   : > { %v4719_v21 = vpop.f32.mrb[4].mxu1 }
 0x418   : > { %v4720_v40 = vpop.f32.mrb[5].mxu1 }
 0x419   : > { %v4721_v5 = vadd.f32 %v4720_v40, %v4719_v21  ;;  %v4722_v57 = vpop.f32.mrb[6].mxu1 }
 0x41a   : > { %v4723_v22 = vpop.f32.mrb[7].mxu1 }
 0x41b   : > { %v3787_v32 = vadd.f32 %v4721_v5, %v8927_v29  ;;  %v4724_v62 = vadd.f32 %v4723_v22, %v4722_v57 }
 0x41d   : > { %v3948_v52 = vadd.f32 %v8744_v16, %v3787_v32  ;;  %v3790_v47 = vadd.f32 %v4724_v62, %v8927_v29 }
 0x41f   : > { %v4100_v6 = vmul.f32 0.2, %v3948_v52  ;;  %v3951_v23 = vadd.f32 %v8754_v12, %v3790_v47  ;;  %v4725_v61 = vpop.f32.mrb[8].mxu1  ;;  %vm4068_vm2 = vcmp.ge.f32.partialorder %v3948_v52, 0.0 }
 0x420   : > { %v4726_v24 = vpop.f32.mrb[9].mxu1 }
 0x421   : > { %v4101_v63 = vmul.f32 0.2, %v3951_v23  ;;  %v4727_v59 = vadd.f32 %v4726_v24, %v4725_v61  ;;  %v4728_v36 = vpop.f32.mrb[10].mxu1  ;;  %v8947_v0 = vsel %vm4068_vm2, %v3948_v52, %v4100_v6  ;;  %vm4069_vm11 = vcmp.ge.f32.partialorder %v3951_v23, 0.0 }
 0x422   : > { %v4729_v20 = vpop.f32.mrb[11].mxu1  ;;  %v4164_v46 = vmul.f32 %v8947_v0, %v8947_v0 }
 0x423   : > { %v3795_v16 = vadd.f32 %v4727_v59, %v8927_v29  ;;  %v4730_v1 = vadd.f32 %v4729_v20, %v4728_v36  ;;  %v8952_v2 = vsel %vm4069_vm11, %v3951_v23, %v4101_v63 }
 0x424   : > { %v4200_v12 = vsel %vm1528_vm7, %v4164_v46, 0.0  ;;  %v4165_v31 = vmul.f32 %v8952_v2, %v8952_v2 }
 0x425   : > { %v3956_v53 = vadd.f32 %v8782_v42, %v3795_v16  ;;  %v3798_v30 = vadd.f32 %v4730_v1, %v8927_v29  ;;  %4201 = vadd.xlane.f32.xlu0 %v4200_v12 }
 0x426   : > { %v4203_v18 = vsel %vm1528_vm7, %v4165_v31, 0.0 }
 0x427   : > { %v4102_v25 = vmul.f32 0.2, %v3956_v53  ;;  %v3959_v28 = vadd.f32 %v8786_v14, %v3798_v30  ;;  %v4731_v17 = vpop.f32.mrb[12].mxu1  ;;  %4204 = vadd.xlane.f32.xlu1 %v4203_v18  ;;  %vm4070_vm13 = vcmp.ge.f32.partialorder %v3956_v53, 0.0 }
 0x428   : > { %v4732_v35 = vpop.f32.mrb[13].mxu1 }
 0x429   : > { %v4103_v13 = vmul.f32 0.2, %v3959_v28  ;;  %v4733_v44 = vadd.f32 %v4732_v35, %v4731_v17  ;;  %v4734_v11 = vpop.f32.mrb[14].mxu1  ;;  %v8961_v37 = vsel %vm4070_vm13, %v3956_v53, %v4102_v25  ;;  %vm4071_vm14 = vcmp.ge.f32.partialorder %v3959_v28, 0.0  ;;  %v8988_v53 = vpop.f32.mrb[60].mxu0 }
 0x42a   : > { %v4735_v27 = vpop.f32.mrb[15].mxu1  ;;  %v4166_v42 = vmul.f32 %v8961_v37, %v8961_v37  ;;  %v8991_v25 = vpop.f32.mrb[61].mxu0 }
 0x42b   : > { %v3803_v33 = vadd.f32 %v4733_v44, %v8927_v29  ;;  %v4736_v21 = vadd.f32 %v4735_v27, %v4734_v11  ;;  %v8966_v40 = vsel %vm4071_vm14, %v3959_v28, %v4103_v13  ;;  %v8993_v28 = vpop.f32.mrb[62].mxu0 }
 0x42c   : > { %v4206_v14 = vsel %vm1528_vm7, %v4166_v42, 0.0  ;;  %v4167_v5 = vmul.f32 %v8966_v40, %v8966_v40 }
 0x42d   : > { %v3964_v57 = vadd.f32 %v8780_v55, %v3803_v33  ;;  %v3806_v22 = vadd.f32 %v4736_v21, %v8927_v29  ;;  %4207 = vadd.xlane.f32.xlu0 %v4206_v14 }
 0x42e   : > { %v4209_v32 = vsel %vm1528_vm7, %v4167_v5, 0.0 }
 0x42f   : > { %v4104_v62 = vmul.f32 0.2, %v3964_v57  ;;  %v3967_v52 = vadd.f32 %v8784_v49, %v3806_v22  ;;  %v4737_v47 = vpop.f32.mrb[16].mxu1  ;;  %4210 = vadd.xlane.f32.xlu1 %v4209_v32  ;;  %vm4072_vm15 = vcmp.ge.f32.partialorder %v3964_v57, 0.0 }
 0x430   : > { %v4738_v6 = vpop.f32.mrb[17].mxu1 }
 0x431   : > { %v4105_v23 = vmul.f32 0.2, %v3967_v52  ;;  %v4739_v61 = vadd.f32 %v4738_v6, %v4737_v47  ;;  %v4740_v24 = vpop.f32.mrb[18].mxu1  ;;  %v8975_v63 = vsel %vm4072_vm15, %v3964_v57, %v4104_v62  ;;  %vm4073_vm3 = vcmp.ge.f32.partialorder %v3967_v52, 0.0 }
 0x432   : > { %v4741_v59 = vpop.f32.mrb[19].mxu1  ;;  %v4168_v55 = vmul.f32 %v8975_v63, %v8975_v63 }
 0x433   : > { %v3811_v36 = vadd.f32 %v4739_v61, %v8927_v29  ;;  %v4742_v20 = vadd.f32 %v4741_v59, %v4740_v24  ;;  %v8980_v46 = vsel %vm4073_vm3, %v3967_v52, %v4105_v23 }
 0x434   : > { %v4212_v49 = vsel %vm1528_vm7, %v4168_v55, 0.0  ;;  %v4169_v16 = vmul.f32 %v8980_v46, %v8980_v46 }
 0x435   : > { %v3972_v1 = vadd.f32 %v8822_v50, %v3811_v36  ;;  %v3814_v12 = vadd.f32 %v4742_v20, %v8927_v29  ;;  %4213 = vadd.xlane.f32.xlu0 %v4212_v49  ;;  %v8997_v50 = vpop.f32.mrb[63].mxu0 }
 0x436   : > { %v4215_v31 = vsel %vm1528_vm7, %v4169_v16, 0.0 }
 0x437   : > { %v4106_v30 = vmul.f32 0.2, %v3972_v1  ;;  %v3975_v18 = vadd.f32 %v8826_v45, %v3814_v12  ;;  %4216 = vadd.xlane.f32.xlu1 %v4215_v31  ;;  %vm4074_vm4 = vcmp.ge.f32.partialorder %v3972_v1, 0.0 }
 0x439   : > { %v4107_v17 = vmul.f32 0.2, %v3975_v18  ;;  %v8995_v35 = vsel %vm4074_vm4, %v3972_v1, %v4106_v30  ;;  %vm4075_vm5 = vcmp.ge.f32.partialorder %v3975_v18, 0.0 }
 0x43a   : > { %v4170_v13 = vmul.f32 %v8995_v35, %v8995_v35 }
 0x43b   : > { %v4743_v44 = vpop.f32.mrb[20].mxu1  ;;  %v9001_v11 = vsel %vm4075_vm5, %v3975_v18, %v4107_v17 }
 0x43c   : > { %v4744_v27 = vpop.f32.mrb[21].mxu1  ;;  %v4218_v45 = vsel %vm1528_vm7, %v4170_v13, 0.0  ;;  %v4171_v42 = vmul.f32 %v9001_v11, %v9001_v11 }
 0x43d   : > { %v4745_v33 = vadd.f32 %v4744_v27, %v4743_v44  ;;  %v4746_v21 = vpop.f32.mrb[22].mxu1  ;;  %4219 = vadd.xlane.f32.xlu0 %v4218_v45 }
 0x43e   : > { %v4747_v14 = vpop.f32.mrb[23].mxu1  ;;  %v4221_v5 = vsel %vm1528_vm7, %v4171_v42, 0.0 }
 0x43f   : > { %v3819_v57 = vadd.f32 %v4745_v33, %v8927_v29  ;;  %v4748_v22 = vadd.f32 %v4747_v14, %v4746_v21  ;;  %4222 = vadd.xlane.f32.xlu1 %v4221_v5 }
 0x441   : > { %v3980_v32 = vadd.f32 %v8818_v9, %v3819_v57  ;;  %v3822_v62 = vadd.f32 %v4748_v22, %v8927_v29 }
 0x443   : > { %v4108_v52 = vmul.f32 0.2, %v3980_v32  ;;  %v3983_v47 = vadd.f32 %v8824_v3, %v3822_v62  ;;  %vm4076_vm6 = vcmp.ge.f32.partialorder %v3980_v32, 0.0 }
 0x445   : > { %v4109_v6 = vmul.f32 0.2, %v3983_v47  ;;  %v9011_v23 = vsel %vm4076_vm6, %v3980_v32, %v4108_v52  ;;  %vm4077_vm8 = vcmp.ge.f32.partialorder %v3983_v47, 0.0 }
 0x446   : > { %v4172_v61 = vmul.f32 %v9011_v23, %v9011_v23 }
 0x447   : > { %v4749_v24 = vpop.f32.mrb[24].mxu1  ;;  %v9015_v59 = vsel %vm4077_vm8, %v3983_v47, %v4109_v6 }
 0x448   : > { %v4750_v55 = vpop.f32.mrb[25].mxu1  ;;  %v4224_v36 = vsel %vm1528_vm7, %v4172_v61, 0.0  ;;  %v4173_v9 = vmul.f32 %v9015_v59, %v9015_v59 }
 0x449   : > { %v4751_v20 = vadd.f32 %v4750_v55, %v4749_v24  ;;  %v4752_v49 = vpop.f32.mrb[26].mxu1  ;;  %4225 = vadd.xlane.f32.xlu0 %v4224_v36 }
 0x44a   : > { %v4753_v3 = vpop.f32.mrb[27].mxu1  ;;  %v4227_v16 = vsel %vm1528_vm7, %v4173_v9, 0.0 }
 0x44b   : > { %v3827_v1 = vadd.f32 %v4751_v20, %v8927_v29  ;;  %v4754_v12 = vadd.f32 %v4753_v3, %v4752_v49  ;;  %4228 = vadd.xlane.f32.xlu1 %v4227_v16 }
 0x44d   : > { %v3988_v31 = vadd.f32 %v8852_v38, %v3827_v1  ;;  %v3830_v30 = vadd.f32 %v4754_v12, %v8927_v29 }
 0x44f   : > { %v4110_v18 = vmul.f32 0.2, %v3988_v31  ;;  %v3991_v17 = vadd.f32 %v8862_v34, %v3830_v30  ;;  %vm4078_vm9 = vcmp.ge.f32.partialorder %v3988_v31, 0.0 }
 0x451   : > { %v4111_v13 = vmul.f32 0.2, %v3991_v17  ;;  %v9025_v44 = vsel %vm4078_vm9, %v3988_v31, %v4110_v18  ;;  %vm4079_vm10 = vcmp.ge.f32.partialorder %v3991_v17, 0.0 }
 0x452   : > { %v4174_v27 = vmul.f32 %v9025_v44, %v9025_v44 }
 0x453   : > { %v4755_v45 = vpop.f32.mrb[28].mxu1  ;;  %v9029_v42 = vsel %vm4079_vm10, %v3991_v17, %v4111_v13 }
 0x454   : > { %v4756_v33 = vpop.f32.mrb[29].mxu1  ;;  %v4230_v21 = vsel %vm1528_vm7, %v4174_v27, 0.0  ;;  %v4175_v38 = vmul.f32 %v9029_v42, %v9029_v42 }
 0x455   : > { %v4757_v14 = vadd.f32 %v4756_v33, %v4755_v45  ;;  %v4758_v5 = vpop.f32.mrb[30].mxu1  ;;  %4231 = vadd.xlane.f32.xlu0 %v4230_v21 }
 0x456   : > { %v4759_v34 = vpop.f32.mrb[31].mxu1  ;;  %v4233_v57 = vsel %vm1528_vm7, %v4175_v38, 0.0 }
 0x457   : > { %v3835_v22 = vadd.f32 %v4757_v14, %v8927_v29  ;;  %v4760_v32 = vadd.f32 %v4759_v34, %v4758_v5  ;;  %4234 = vadd.xlane.f32.xlu1 %v4233_v57 }
 0x459   : > { %v3996_v62 = vadd.f32 %v8848_v41, %v3835_v22  ;;  %v3838_v52 = vadd.f32 %v4760_v32, %v8927_v29 }
 0x45b   : > { %v4112_v47 = vmul.f32 0.2, %v3996_v62  ;;  %v3999_v6 = vadd.f32 %v8858_v26, %v3838_v52  ;;  %vm4080_vm12 = vcmp.ge.f32.partialorder %v3996_v62, 0.0 }
 0x45d   : > { %v4113_v61 = vmul.f32 0.2, %v3999_v6  ;;  %v9039_v24 = vsel %vm4080_vm12, %v3996_v62, %v4112_v47  ;;  %vm4081_vm0 = vcmp.ge.f32.partialorder %v3999_v6, 0.0 }
 0x45e   : > { %v4176_v55 = vmul.f32 %v9039_v24, %v9039_v24 }
 0x45f   : > { %v4761_v36 = vpop.f32.mrb[32].mxu1  ;;  %v9043_v9 = vsel %vm4081_vm0, %v3999_v6, %v4113_v61 }
 0x460   : > { %v4762_v20 = vpop.f32.mrb[33].mxu1  ;;  %v4236_v49 = vsel %vm1528_vm7, %v4176_v55, 0.0  ;;  %v4177_v41 = vmul.f32 %v9043_v9, %v9043_v9 }
 0x461   : > { %v4763_v3 = vadd.f32 %v4762_v20, %v4761_v36  ;;  %v4764_v16 = vpop.f32.mrb[34].mxu1  ;;  %4237 = vadd.xlane.f32.xlu0 %v4236_v49 }
 0x462   : > { %v4765_v26 = vpop.f32.mrb[35].mxu1  ;;  %v4239_v1 = vsel %vm1528_vm7, %v4177_v41, 0.0 }
 0x463   : > { %v3843_v12 = vadd.f32 %v4763_v3, %v8927_v29  ;;  %v4766_v31 = vadd.f32 %v4765_v26, %v4764_v16  ;;  %4240 = vadd.xlane.f32.xlu1 %v4239_v1 }
 0x465   : > { %v4004_v30 = vadd.f32 %v8886_v10, %v3843_v12  ;;  %v3846_v18 = vadd.f32 %v4766_v31, %v8927_v29 }
 0x467   : > { %v4114_v17 = vmul.f32 0.2, %v4004_v30  ;;  %v4007_v13 = vadd.f32 %v8894_v4, %v3846_v18  ;;  %vm4082_vm1 = vcmp.ge.f32.partialorder %v4004_v30, 0.0 }
 0x469   : > { %v4115_v27 = vmul.f32 0.2, %v4007_v13  ;;  %v9053_v45 = vsel %vm4082_vm1, %v4004_v30, %v4114_v17  ;;  %vm4083_vm2 = vcmp.ge.f32.partialorder %v4007_v13, 0.0 }
 0x46a   : > { %v4178_v33 = vmul.f32 %v9053_v45, %v9053_v45 }
 0x46b   : > { %v4767_v21 = vpop.f32.mrb[36].mxu1  ;;  %v9057_v38 = vsel %vm4083_vm2, %v4007_v13, %v4115_v27 }
 0x46c   : > { %v4768_v14 = vpop.f32.mrb[37].mxu1  ;;  %v4242_v5 = vsel %vm1528_vm7, %v4178_v33, 0.0  ;;  %v4179_v10 = vmul.f32 %v9057_v38, %v9057_v38 }
 0x46d   : > { %v4769_v34 = vadd.f32 %v4768_v14, %v4767_v21  ;;  %v4770_v57 = vpop.f32.mrb[38].mxu1  ;;  %4243 = vadd.xlane.f32.xlu0 %v4242_v5 }
 0x46e   : > { %v4771_v4 = vpop.f32.mrb[39].mxu1  ;;  %v4245_v22 = vsel %vm1528_vm7, %v4179_v10, 0.0 }
 0x46f   : > { %v3851_v32 = vadd.f32 %v4769_v34, %v8927_v29  ;;  %v4772_v62 = vadd.f32 %v4771_v4, %v4770_v57  ;;  %4246 = vadd.xlane.f32.xlu1 %v4245_v22 }
 0x471   : > { %v4012_v52 = vadd.f32 %v8884_v19, %v3851_v32  ;;  %v3854_v47 = vadd.f32 %v4772_v62, %v8927_v29 }
 0x473   : > { %v4116_v6 = vmul.f32 0.2, %v4012_v52  ;;  %v4015_v61 = vadd.f32 %v8888_v8, %v3854_v47  ;;  %vm4084_vm11 = vcmp.ge.f32.partialorder %v4012_v52, 0.0 }
 0x475   : > { %v4117_v55 = vmul.f32 0.2, %v4015_v61  ;;  %v9067_v36 = vsel %vm4084_vm11, %v4012_v52, %v4116_v6  ;;  %vm4085_vm13 = vcmp.ge.f32.partialorder %v4015_v61, 0.0 }
 0x476   : > { %v4180_v20 = vmul.f32 %v9067_v36, %v9067_v36 }
 0x477   : > { %v4773_v49 = vpop.f32.mrb[40].mxu1  ;;  %v9071_v41 = vsel %vm4085_vm13, %v4015_v61, %v4117_v55 }
 0x478   : > { %v4774_v3 = vpop.f32.mrb[41].mxu1  ;;  %v4248_v16 = vsel %vm1528_vm7, %v4180_v20, 0.0  ;;  %v4181_v19 = vmul.f32 %v9071_v41, %v9071_v41 }
 0x479   : > { %v4775_v26 = vadd.f32 %v4774_v3, %v4773_v49  ;;  %v4776_v1 = vpop.f32.mrb[42].mxu1  ;;  %4249 = vadd.xlane.f32.xlu0 %v4248_v16 }
 0x47a   : > { %v4777_v8 = vpop.f32.mrb[43].mxu1  ;;  %v4251_v12 = vsel %vm1528_vm7, %v4181_v19, 0.0 }
 0x47b   : > { %v3859_v31 = vadd.f32 %v4775_v26, %v8927_v29  ;;  %v4778_v30 = vadd.f32 %v4777_v8, %v4776_v1  ;;  %4252 = vadd.xlane.f32.xlu1 %v4251_v12 }
 0x47d   : > { %v4020_v18 = vadd.f32 %v8910_v15, %v3859_v31  ;;  %v3862_v17 = vadd.f32 %v4778_v30, %v8927_v29 }
 0x47f   : > { %v4118_v13 = vmul.f32 0.2, %v4020_v18  ;;  %v4023_v27 = vadd.f32 %v8914_v60, %v3862_v17  ;;  %vm4086_vm14 = vcmp.ge.f32.partialorder %v4020_v18, 0.0 }
 0x481   : > { %v4119_v33 = vmul.f32 0.2, %v4023_v27  ;;  %v9081_v21 = vsel %vm4086_vm14, %v4020_v18, %v4118_v13  ;;  %vm4087_vm15 = vcmp.ge.f32.partialorder %v4023_v27, 0.0 }
 0x482   : > { %v4182_v14 = vmul.f32 %v9081_v21, %v9081_v21 }
 0x483   : > { %v4779_v5 = vpop.f32.mrb[44].mxu1  ;;  %v9085_v10 = vsel %vm4087_vm15, %v4023_v27, %v4119_v33 }
 0x484   : > { %v4780_v34 = vpop.f32.mrb[45].mxu1  ;;  %v4254_v57 = vsel %vm1528_vm7, %v4182_v14, 0.0  ;;  %v4183_v15 = vmul.f32 %v9085_v10, %v9085_v10 }
 0x485   : > { %v4781_v4 = vadd.f32 %v4780_v34, %v4779_v5  ;;  %v4782_v22 = vpop.f32.mrb[46].mxu1  ;;  %4255 = vadd.xlane.f32.xlu0 %v4254_v57 }
 0x486   : > { %v4783_v60 = vpop.f32.mrb[47].mxu1  ;;  %v4257_v32 = vsel %vm1528_vm7, %v4183_v15, 0.0 }
 0x487   : > { %v3867_v62 = vadd.f32 %v4781_v4, %v8927_v29  ;;  %v4784_v52 = vadd.f32 %v4783_v60, %v4782_v22  ;;  %4258 = vadd.xlane.f32.xlu1 %v4257_v32 }
 0x489   : > { %v4028_v47 = vadd.f32 %v8908_v7, %v3867_v62  ;;  %v3870_v6 = vadd.f32 %v4784_v52, %v8927_v29 }
 0x48b   : > { %v4120_v61 = vmul.f32 0.2, %v4028_v47  ;;  %v4031_v55 = vadd.f32 %v8912_v43, %v3870_v6  ;;  %vm4088_vm3 = vcmp.ge.f32.partialorder %v4028_v47, 0.0 }
 0x48d   : > { %v4121_v20 = vmul.f32 0.2, %v4031_v55  ;;  %v9095_v49 = vsel %vm4088_vm3, %v4028_v47, %v4120_v61  ;;  %vm4089_vm4 = vcmp.ge.f32.partialorder %v4031_v55, 0.0 }
 0x48e   : > { %v4184_v3 = vmul.f32 %v9095_v49, %v9095_v49 }
 0x48f   : > { %v4785_v16 = vpop.f32.mrb[48].mxu1  ;;  %v9099_v19 = vsel %vm4089_vm4, %v4031_v55, %v4121_v20 }
 0x490   : > { %v4786_v26 = vpop.f32.mrb[49].mxu1  ;;  %v4260_v1 = vsel %vm1528_vm7, %v4184_v3, 0.0  ;;  %v4185_v7 = vmul.f32 %v9099_v19, %v9099_v19 }
 0x491   : > { %v4787_v8 = vadd.f32 %v4786_v26, %v4785_v16  ;;  %v4788_v12 = vpop.f32.mrb[50].mxu1  ;;  %4261 = vadd.xlane.f32.xlu0 %v4260_v1 }
 0x492   : > { %v4789_v43 = vpop.f32.mrb[51].mxu1  ;;  %v4263_v31 = vsel %vm1528_vm7, %v4185_v7, 0.0 }
 0x493   : > { %v3875_v30 = vadd.f32 %v4787_v8, %v8927_v29  ;;  %v4790_v18 = vadd.f32 %v4789_v43, %v4788_v12  ;;  %4264 = vadd.xlane.f32.xlu1 %v4263_v31 }
 0x495   : > { %v4036_v17 = vadd.f32 %v8918_v54, %v3875_v30  ;;  %v3878_v13 = vadd.f32 %v4790_v18, %v8927_v29 }
 0x497   : > { %v4122_v27 = vmul.f32 0.2, %v4036_v17  ;;  %v4039_v33 = vadd.f32 %v8922_v58, %v3878_v13  ;;  %vm4090_vm5 = vcmp.ge.f32.partialorder %v4036_v17, 0.0 }
 0x499   : > { %v4123_v14 = vmul.f32 0.2, %v4039_v33  ;;  %v9109_v5 = vsel %vm4090_vm5, %v4036_v17, %v4122_v27  ;;  %vm4091_vm6 = vcmp.ge.f32.partialorder %v4039_v33, 0.0 }
 0x49a   : > { %v4186_v34 = vmul.f32 %v9109_v5, %v9109_v5 }
 0x49b   : > { %v4791_v57 = vpop.f32.mrb[52].mxu1  ;;  %v9113_v15 = vsel %vm4091_vm6, %v4039_v33, %v4123_v14 }
 0x49c   : > { %v4792_v4 = vpop.f32.mrb[53].mxu1  ;;  %v4266_v22 = vsel %vm1528_vm7, %v4186_v34, 0.0  ;;  %v4187_v54 = vmul.f32 %v9113_v15, %v9113_v15 }
 0x49d   : > { %v4793_v60 = vadd.f32 %v4792_v4, %v4791_v57  ;;  %v4794_v32 = vpop.f32.mrb[54].mxu1  ;;  %4267 = vadd.xlane.f32.xlu0 %v4266_v22 }
 0x49e   : > { %v4795_v58 = vpop.f32.mrb[55].mxu1  ;;  %v4269_v62 = vsel %vm1528_vm7, %v4187_v54, 0.0 }
 0x49f   : > { %v3883_v52 = vadd.f32 %v4793_v60, %v8927_v29  ;;  %v4796_v47 = vadd.f32 %v4795_v58, %v4794_v32  ;;  %4270 = vadd.xlane.f32.xlu1 %v4269_v62 }
 0x4a1   : > { %v4044_v6 = vadd.f32 %v8916_v39, %v3883_v52  ;;  %v3886_v61 = vadd.f32 %v4796_v47, %v8927_v29  ;;  %v4196_v55 = vpop.xlane.xlu1 %4195 }
 0x4a2   : > { %v4290_v16 = vmul.f32 0.03125, %v4196_v55 }
 0x4a3   : > { %v4124_v20 = vmul.f32 0.2, %v4044_v6  ;;  %v4047_v3 = vadd.f32 %v8920_v48, %v3886_v61  ;;  %vm4092_vm8 = vcmp.ge.f32.partialorder %v4044_v6, 0.0  ;;  %v4199_v26 = vpop.xlane.xlu0 %4198 }
 0x4a4   : > { %v4322_v7 = vadd.f32 1e-08, %v4290_v16  ;;  %v4291_v8 = vmul.f32 0.03125, %v4199_v26 }
 0x4a5   : > { %v4125_v1 = vmul.f32 0.2, %v4047_v3  ;;  %v9123_v12 = vsel %vm4092_vm8, %v4044_v6, %v4124_v20  ;;  %vm4093_vm9 = vcmp.ge.f32.partialorder %v4047_v3, 0.0 }
 0x4a6   : > { %v4188_v43 = vmul.f32 %v9123_v12, %v9123_v12  ;;  %6158 = vrsqrt.f32 %v4322_v7  ;;  %v4323_v39 = vadd.f32 1e-08, %v4291_v8 }
 0x4a7   : > { %v4797_v31 = vpop.f32.mrb[56].mxu1  ;;  %v9127_v30 = vsel %vm4093_vm9, %v4047_v3, %v4125_v1 }
 0x4a8   : > { %v4798_v48 = vpop.f32.mrb[57].mxu1  ;;  %v4272_v18 = vsel %vm1528_vm7, %v4188_v43, 0.0  ;;  %v4189_v17 = vmul.f32 %v9127_v30, %v9127_v30  ;;  %6160 = vrsqrt.f32 %v4323_v39 }
 0x4a9   : > { %v4799_v13 = vadd.f32 %v4798_v48, %v4797_v31  ;;  %v4800_v27 = vpop.f32.mrb[58].mxu1  ;;  %4273 = vadd.xlane.f32.xlu0 %v4272_v18 }
 0x4aa   : > { %v4801_v33 = vpop.f32.mrb[59].mxu1  ;;  %v4275_v14 = vsel %vm1528_vm7, %v4189_v17, 0.0 }
 0x4ab   : > { %v4802_v34 = vadd.f32 %v4801_v33, %v4800_v27  ;;  %4276 = vadd.xlane.f32.xlu1 %v4275_v14  ;;  %v3891_v57 = vadd.f32 %v4799_v13, %v8927_v29 }
 0x4ad   : > { %v4052_v4 = vadd.f32 %v8991_v25, %v3891_v57  ;;  %v3894_v22 = vadd.f32 %v4802_v34, %v8927_v29 }
 0x4af   : > { %vm4094_vm10 = vcmp.ge.f32.partialorder %v4052_v4, 0.0  ;;  %v4126_v54 = vmul.f32 0.2, %v4052_v4  ;;  %v4055_v60 = vadd.f32 %v8997_v50, %v3894_v22 }
 0x4b0   : > { %v6159_v32 = vpop.eup %6158 }
 0x4b1   : > { %vm4095_vm12 = vcmp.ge.f32.partialorder %v4055_v60, 0.0  ;;  %v4127_v58 = vmul.f32 0.2, %v4055_v60  ;;  %v9140_v62 = vsel %vm4094_vm10, %v4052_v4, %v4126_v54  ;;  %v4386_v52 = vmul.f32 %v6159_v32, %v8933_v56 }
 0x4b2   : > { %v4202_v47 = vpop.xlane.xlu0 %4201  ;;  %v4190_v6 = vmul.f32 %v9140_v62, %v9140_v62  ;;  %v6161_v25 = vpop.eup %6160 }
 0x4b3   : > { %v4292_v61 = vmul.f32 0.03125, %v4202_v47  ;;  %v4803_v55 = vpop.f32.mrb[60].mxu1  ;;  %v9145_v20 = vsel %vm4095_vm12, %v4055_v60, %v4127_v58  ;;  %4418 = vst.msk [vmem:[%s9147_s16] sm:$0xff] %vm1528_vm7, %v4386_v52  ;;  %v4387_v50 = vmul.f32 %v6161_v25, %v8937_v51 }
 0x4b4   : > { %v4804_v3 = vpop.f32.mrb[61].mxu1  ;;  %v4205_v16 = vpop.xlane.xlu1 %4204  ;;  %v4278_v56 = vsel %vm1528_vm7, %v4190_v6, 0.0  ;;  %v4191_v26 = vmul.f32 %v9145_v20, %v9145_v20 }
 0x4b5   : > { %v4324_v1 = vadd.f32 1e-08, %v4292_v61  ;;  %v4805_v7 = vadd.f32 %v4804_v3, %v4803_v55  ;;  %v4293_v8 = vmul.f32 0.03125, %v4205_v16  ;;  %v4806_v43 = vpop.f32.mrb[62].mxu1  ;;  %4279 = vadd.xlane.f32.xlu0 %v4278_v56  ;;  %4419 = vst.msk [vmem:[%s9147_s16 + $0x8] sm:$0xff] %vm1528_vm7, %v4387_v50 }
 0x4b6   : > { %v4807_v39 = vpop.f32.mrb[63].mxu1  ;;  %v4281_v31 = vsel %vm1528_vm7, %v4191_v26, 0.0 }
 0x4b7   : > { %6162 = vrsqrt.f32 %v4324_v1  ;;  %v3899_v51 = vadd.f32 %v4805_v7, %v8927_v29  ;;  %v4325_v48 = vadd.f32 1e-08, %v4293_v8  ;;  %v4808_v18 = vadd.f32 %v4807_v39, %v4806_v43  ;;  %4282 = vadd.xlane.f32.xlu1 %v4281_v31 }
 0x4b9   : > { %v4060_v17 = vadd.f32 %v8988_v53, %v3899_v51  ;;  %6164 = vrsqrt.f32 %v4325_v48  ;;  %v3902_v13 = vadd.f32 %v4808_v18, %v8927_v29 }
 0x4ba   : > { %v4208_v27 = vpop.xlane.xlu0 %4207 }
 0x4bb   : > { %v4128_v33 = vmul.f32 0.2, %v4060_v17  ;;  %v4063_v14 = vadd.f32 %v8993_v28, %v3902_v13  ;;  %v4294_v34 = vmul.f32 0.03125, %v4208_v27  ;;  %vm4096_vm0 = vcmp.ge.f32.partialorder %v4060_v17, 0.0 }
 0x4bc   : > { %v4211_v57 = vpop.xlane.xlu1 %4210 }
 0x4bd   : > { %v4129_v4 = vmul.f32 0.2, %v4063_v14  ;;  %v4326_v22 = vadd.f32 1e-08, %v4294_v34  ;;  %v4295_v54 = vmul.f32 0.03125, %v4211_v57  ;;  %v9162_v60 = vsel %vm4096_vm0, %v4060_v17, %v4128_v33 }
 0x4be   : > { %v4192_v32 = vmul.f32 %v9162_v60, %v9162_v60  ;;  %vm4097_vm1 = vcmp.ge.f32.partialorder %v4063_v14, 0.0 }
 0x4bf   : > { %6166 = vrsqrt.f32 %v4326_v22  ;;  %v4327_v53 = vadd.f32 1e-08, %v4295_v54  ;;  %v9166_v29 = vsel %vm4097_vm1, %v4063_v14, %v4129_v4 }
 0x4c0   : > { %v4284_v58 = vsel %vm1528_vm7, %v4192_v32, 0.0  ;;  %v4193_v28 = vmul.f32 %v9166_v29, %v9166_v29 }
 0x4c1   : > { %v6163_v52 = vpop.eup %6162  ;;  %6168 = vrsqrt.f32 %v4327_v53  ;;  %4285 = vadd.xlane.f32.xlu0 %v4284_v58 }
 0x4c2   : > { %v4388_v47 = vmul.f32 %v6163_v52, %v8947_v0  ;;  %v4214_v6 = vpop.xlane.xlu0 %4213  ;;  %v4287_v25 = vsel %vm1528_vm7, %v4193_v28, 0.0 }
 0x4c3   : > { %v6165_v61 = vpop.eup %6164  ;;  %v4296_v55 = vmul.f32 0.03125, %v4214_v6  ;;  %4288 = vadd.xlane.f32.xlu1 %v4287_v25 }
 0x4c4   : > { %4420 = vst.msk [vmem:[%s9147_s16 + $0x10] sm:$0xff] %vm1528_vm7, %v4388_v47  ;;  %v4389_v50 = vmul.f32 %v6165_v61, %v8952_v2  ;;  %v4217_v3 = vpop.xlane.xlu1 %4216 }
 0x4c5   : > { %v4328_v16 = vadd.f32 1e-08, %v4296_v55  ;;  %v4297_v56 = vmul.f32 0.03125, %v4217_v3 }
 0x4c6   : > { %4421 = vst.msk [vmem:[%s9147_s16 + $0x18] sm:$0xff] %vm1528_vm7, %v4389_v50 }
 0x4c7   : > { %6170 = vrsqrt.f32 %v4328_v16  ;;  %v4329_v26 = vadd.f32 1e-08, %v4297_v56 }
 0x4c9   : > { %v6167_v0 = vpop.eup %6166  ;;  %6172 = vrsqrt.f32 %v4329_v26 }
 0x4ca   : > { %v4390_v1 = vmul.f32 %v6167_v0, %v8961_v37  ;;  %v4220_v7 = vpop.xlane.xlu0 %4219 }
 0x4cb   : > { %v6169_v8 = vpop.eup %6168  ;;  %v4298_v43 = vmul.f32 0.03125, %v4220_v7 }
 0x4cc   : > { %4422 = vst.msk [vmem:[%s9147_s16 + $0x20] sm:$0xff] %vm1528_vm7, %v4390_v1  ;;  %v4391_v2 = vmul.f32 %v6169_v8, %v8966_v40  ;;  %v4223_v39 = vpop.xlane.xlu1 %4222 }
 0x4cd   : > { %v4330_v31 = vadd.f32 1e-08, %v4298_v43  ;;  %v4299_v51 = vmul.f32 0.03125, %v4223_v39 }
 0x4ce   : > { %4423 = vst.msk [vmem:[%s9147_s16 + $0x28] sm:$0xff] %vm1528_vm7, %v4391_v2 }
 0x4cf   : > { %6174 = vrsqrt.f32 %v4330_v31  ;;  %v4331_v48 = vadd.f32 1e-08, %v4299_v51 }
 0x4d1   : > { %v6171_v18 = vpop.eup %6170  ;;  %6176 = vrsqrt.f32 %v4331_v48 }
 0x4d2   : > { %v4392_v37 = vmul.f32 %v6171_v18, %v8975_v63 }
 0x4d3   : > { %v6173_v17 = vpop.eup %6172 }
 0x4d4   : > { %4424 = vst.msk [vmem:[%s9147_s16 + $0x30] sm:$0xff] %vm1528_vm7, %v4392_v37  ;;  %v4393_v13 = vmul.f32 %v6173_v17, %v8980_v46 }
 0x4d6   : > { %4425 = vst.msk [vmem:[%s9147_s16 + $0x38] sm:$0xff] %vm1528_vm7, %v4393_v13  ;;  %v4226_v40 = vpop.xlane.xlu0 %4225 }
 0x4d7   : > { %v4300_v27 = vmul.f32 0.03125, %v4226_v40 }
 0x4d8   : > { %v4229_v33 = vpop.xlane.xlu1 %4228 }
 0x4d9   : > { %v6175_v14 = vpop.eup %6174  ;;  %v4332_v34 = vadd.f32 1e-08, %v4300_v27  ;;  %v4301_v57 = vmul.f32 0.03125, %v4229_v33 }
 0x4da   : > { %v4394_v4 = vmul.f32 %v6175_v14, %v8995_v35 }
 0x4db   : > { %v6177_v22 = vpop.eup %6176  ;;  %6178 = vrsqrt.f32 %v4332_v34  ;;  %v4333_v63 = vadd.f32 1e-08, %v4301_v57 }
 0x4dc   : > { %4426 = vst.msk [vmem:[%s9147_s16 + $0x40] sm:$0xff] %vm1528_vm7, %v4394_v4  ;;  %v4395_v54 = vmul.f32 %v6177_v22, %v9001_v11 }
 0x4dd   : > { %6180 = vrsqrt.f32 %v4333_v63 }
 0x4de   : > { %4427 = vst.msk [vmem:[%s9147_s16 + $0x48] sm:$0xff] %vm1528_vm7, %v4395_v54 }
 0x4e2   : > { %v4232_v46 = vpop.xlane.xlu0 %4231 }
 0x4e3   : > { %v4302_v32 = vmul.f32 0.03125, %v4232_v46 }
 0x4e4   : > { %v4235_v53 = vpop.xlane.xlu1 %4234 }
 0x4e5   : > { %v6179_v58 = vpop.eup %6178  ;;  %v4334_v28 = vadd.f32 1e-08, %v4302_v32  ;;  %v4303_v52 = vmul.f32 0.03125, %v4235_v53 }
 0x4e6   : > { %v4396_v35 = vmul.f32 %v6179_v58, %v9011_v23 }
 0x4e7   : > { %v6181_v47 = vpop.eup %6180  ;;  %6182 = vrsqrt.f32 %v4334_v28  ;;  %v4335_v6 = vadd.f32 1e-08, %v4303_v52 }
 0x4e8   : > { %4428 = vst.msk [vmem:[%s9147_s16 + $0x50] sm:$0xff] %vm1528_vm7, %v4396_v35  ;;  %v4397_v11 = vmul.f32 %v6181_v47, %v9015_v59 }
 0x4e9   : > { %6184 = vrsqrt.f32 %v4335_v6 }
 0x4ea   : > { %4429 = vst.msk [vmem:[%s9147_s16 + $0x58] sm:$0xff] %vm1528_vm7, %v4397_v11 }
 0x4ee   : > { %v4238_v25 = vpop.xlane.xlu0 %4237 }
 0x4ef   : > { %v4304_v61 = vmul.f32 0.03125, %v4238_v25 }
 0x4f0   : > { %v4241_v55 = vpop.xlane.xlu1 %4240 }
 0x4f1   : > { %v6183_v50 = vpop.eup %6182  ;;  %v4336_v3 = vadd.f32 1e-08, %v4304_v61  ;;  %v4305_v16 = vmul.f32 0.03125, %v4241_v55 }
 0x4f2   : > { %v4398_v23 = vmul.f32 %v6183_v50, %v9025_v44 }
 0x4f3   : > { %v6185_v56 = vpop.eup %6184  ;;  %6186 = vrsqrt.f32 %v4336_v3  ;;  %v4337_v26 = vadd.f32 1e-08, %v4305_v16 }
 0x4f4   : > { %4430 = vst.msk [vmem:[%s9147_s16 + $0x60] sm:$0xff] %vm1528_vm7, %v4398_v23  ;;  %v4399_v59 = vmul.f32 %v6185_v56, %v9029_v42 }
 0x4f5   : > { %6188 = vrsqrt.f32 %v4337_v26 }
 0x4f6   : > { %4431 = vst.msk [vmem:[%s9147_s16 + $0x68] sm:$0xff] %vm1528_vm7, %v4399_v59 }
 0x4fa   : > { %v4244_v0 = vpop.xlane.xlu0 %4243 }
 0x4fb   : > { %v4306_v1 = vmul.f32 0.03125, %v4244_v0 }
 0x4fc   : > { %v4247_v7 = vpop.xlane.xlu1 %4246 }
 0x4fd   : > { %v6187_v8 = vpop.eup %6186  ;;  %v4338_v43 = vadd.f32 1e-08, %v4306_v1  ;;  %v4307_v2 = vmul.f32 0.03125, %v4247_v7 }
 0x4fe   : > { %v4400_v44 = vmul.f32 %v6187_v8, %v9039_v24 }
 0x4ff   : > { %v6189_v39 = vpop.eup %6188  ;;  %6190 = vrsqrt.f32 %v4338_v43  ;;  %v4339_v31 = vadd.f32 1e-08, %v4307_v2 }
 0x500   : > { %4432 = vst.msk [vmem:[%s9147_s16 + $0x70] sm:$0xff] %vm1528_vm7, %v4400_v44  ;;  %v4401_v42 = vmul.f32 %v6189_v39, %v9043_v9 }
 0x501   : > { %6192 = vrsqrt.f32 %v4339_v31 }
 0x502   : > { %4433 = vst.msk [vmem:[%s9147_s16 + $0x78] sm:$0xff] %vm1528_vm7, %v4401_v42 }
 0x506   : > { %v4250_v51 = vpop.xlane.xlu0 %4249 }
 0x507   : > { %v4308_v48 = vmul.f32 0.03125, %v4250_v51 }
 0x508   : > { %v4253_v18 = vpop.xlane.xlu1 %4252 }
 0x509   : > { %v6191_v37 = vpop.eup %6190  ;;  %v4340_v17 = vadd.f32 1e-08, %v4308_v48  ;;  %v4309_v13 = vmul.f32 0.03125, %v4253_v18 }
 0x50a   : > { %v4402_v24 = vmul.f32 %v6191_v37, %v9053_v45 }
 0x50b   : > { %v6193_v40 = vpop.eup %6192  ;;  %6194 = vrsqrt.f32 %v4340_v17  ;;  %v4341_v27 = vadd.f32 1e-08, %v4309_v13 }
 0x50c   : > { %4434 = vst.msk [vmem:[%s9147_s16 + $0x80] sm:$0xff] %vm1528_vm7, %v4402_v24  ;;  %v4403_v9 = vmul.f32 %v6193_v40, %v9057_v38 }
 0x50d   : > { %6196 = vrsqrt.f32 %v4341_v27 }
 0x50e   : > { %4435 = vst.msk [vmem:[%s9147_s16 + $0x88] sm:$0xff] %vm1528_vm7, %v4403_v9 }
 0x512   : > { %v4256_v33 = vpop.xlane.xlu0 %4255 }
 0x513   : > { %v4310_v14 = vmul.f32 0.03125, %v4256_v33 }
 0x514   : > { %v4259_v34 = vpop.xlane.xlu1 %4258 }
 0x515   : > { %v6195_v57 = vpop.eup %6194  ;;  %v4342_v4 = vadd.f32 1e-08, %v4310_v14  ;;  %v4311_v22 = vmul.f32 0.03125, %v4259_v34 }
 0x516   : > { %v4404_v45 = vmul.f32 %v6195_v57, %v9067_v36 }
 0x517   : > { %v6197_v63 = vpop.eup %6196  ;;  %6198 = vrsqrt.f32 %v4342_v4  ;;  %v4343_v54 = vadd.f32 1e-08, %v4311_v22 }
 0x518   : > { %4436 = vst.msk [vmem:[%s9147_s16 + $0x90] sm:$0xff] %vm1528_vm7, %v4404_v45  ;;  %v4405_v38 = vmul.f32 %v6197_v63, %v9071_v41 }
 0x519   : > { %6200 = vrsqrt.f32 %v4343_v54 }
 0x51a   : > { %4437 = vst.msk [vmem:[%s9147_s16 + $0x98] sm:$0xff] %vm1528_vm7, %v4405_v38 }
 0x51e   : > { %v4262_v46 = vpop.xlane.xlu0 %4261 }
 0x51f   : > { %v4312_v32 = vmul.f32 0.03125, %v4262_v46 }
 0x520   : > { %v4265_v53 = vpop.xlane.xlu1 %4264 }
 0x521   : > { %v6199_v58 = vpop.eup %6198  ;;  %v4344_v28 = vadd.f32 1e-08, %v4312_v32  ;;  %v4313_v52 = vmul.f32 0.03125, %v4265_v53 }
 0x522   : > { %v4406_v36 = vmul.f32 %v6199_v58, %v9081_v21 }
 0x523   : > { %v6201_v35 = vpop.eup %6200  ;;  %6202 = vrsqrt.f32 %v4344_v28  ;;  %v4345_v47 = vadd.f32 1e-08, %v4313_v52 }
 0x524   : > { %4438 = vst.msk [vmem:[%s9147_s16 + $0xa0] sm:$0xff] %vm1528_vm7, %v4406_v36  ;;  %v4407_v41 = vmul.f32 %v6201_v35, %v9085_v10 }
 0x525   : > { %6204 = vrsqrt.f32 %v4345_v47 }
 0x526   : > { %4439 = vst.msk [vmem:[%s9147_s16 + $0xa8] sm:$0xff] %vm1528_vm7, %v4407_v41 }
 0x52a   : > { %v4268_v6 = vpop.xlane.xlu0 %4267 }
 0x52b   : > { %v4314_v11 = vmul.f32 0.03125, %v4268_v6 }
 0x52c   : > { %v4271_v25 = vpop.xlane.xlu1 %4270 }
 0x52d   : > { %v6203_v61 = vpop.eup %6202  ;;  %v4346_v55 = vadd.f32 1e-08, %v4314_v11  ;;  %v4315_v50 = vmul.f32 0.03125, %v4271_v25 }
 0x52e   : > { %v4408_v21 = vmul.f32 %v6203_v61, %v9095_v49 }
 0x52f   : > { %v6205_v3 = vpop.eup %6204  ;;  %6206 = vrsqrt.f32 %v4346_v55  ;;  %v4347_v16 = vadd.f32 1e-08, %v4315_v50 }
 0x530   : > { %4440 = vst.msk [vmem:[%s9147_s16 + $0xb0] sm:$0xff] %vm1528_vm7, %v4408_v21  ;;  %v4409_v10 = vmul.f32 %v6205_v3, %v9099_v19 }
 0x531   : > { %6208 = vrsqrt.f32 %v4347_v16 }
 0x532   : > { %4441 = vst.msk [vmem:[%s9147_s16 + $0xb8] sm:$0xff] %vm1528_vm7, %v4409_v10 }
 0x536   : > { %v4274_v23 = vpop.xlane.xlu0 %4273 }
 0x537   : > { %v4316_v56 = vmul.f32 0.03125, %v4274_v23 }
 0x538   : > { %v4277_v26 = vpop.xlane.xlu1 %4276 }
 0x539   : > { %v6207_v59 = vpop.eup %6206  ;;  %v4348_v0 = vadd.f32 1e-08, %v4316_v56  ;;  %v4317_v1 = vmul.f32 0.03125, %v4277_v26 }
 0x53a   : > { %v4410_v49 = vmul.f32 %v6207_v59, %v9109_v5 }
 0x53b   : > { %v6209_v7 = vpop.eup %6208  ;;  %6210 = vrsqrt.f32 %v4348_v0  ;;  %v4349_v8 = vadd.f32 1e-08, %v4317_v1 }
 0x53c   : > { %4442 = vst.msk [vmem:[%s9147_s16 + $0xc0] sm:$0xff] %vm1528_vm7, %v4410_v49  ;;  %v4411_v19 = vmul.f32 %v6209_v7, %v9113_v15 }
 0x53d   : > { %6212 = vrsqrt.f32 %v4349_v8 }
 0x53e   : > { %4443 = vst.msk [vmem:[%s9147_s16 + $0xc8] sm:$0xff] %vm1528_vm7, %v4411_v19 }
 0x542   : > { %v4280_v43 = vpop.xlane.xlu0 %4279 }
 0x543   : > { %v4318_v2 = vmul.f32 0.03125, %v4280_v43 }
 0x544   : > { %v4283_v44 = vpop.xlane.xlu1 %4282 }
 0x545   : > { %v6211_v39 = vpop.eup %6210  ;;  %v4350_v31 = vadd.f32 1e-08, %v4318_v2  ;;  %v4319_v42 = vmul.f32 0.03125, %v4283_v44 }
 0x546   : > { %v4412_v5 = vmul.f32 %v6211_v39, %v9123_v12 }
 0x547   : > { %v6213_v51 = vpop.eup %6212  ;;  %6214 = vrsqrt.f32 %v4350_v31  ;;  %v4351_v48 = vadd.f32 1e-08, %v4319_v42 }
 0x548   : > { %4444 = vst.msk [vmem:[%s9147_s16 + $0xd0] sm:$0xff] %vm1528_vm7, %v4412_v5  ;;  %v4413_v15 = vmul.f32 %v6213_v51, %v9127_v30 }
 0x549   : > { %6216 = vrsqrt.f32 %v4351_v48 }
 0x54a   : > { %4445 = vst.msk [vmem:[%s9147_s16 + $0xd8] sm:$0xff] %vm1528_vm7, %v4413_v15 }
 0x54e   : > { %v4286_v18 = vpop.xlane.xlu0 %4285 }
 0x54f   : > { %v4320_v37 = vmul.f32 0.03125, %v4286_v18 }
 0x550   : > { %v4289_v17 = vpop.xlane.xlu1 %4288 }
 0x551   : > { %v6215_v13 = vpop.eup %6214  ;;  %v4352_v24 = vadd.f32 1e-08, %v4320_v37  ;;  %v4321_v12 = vmul.f32 0.03125, %v4289_v17 }
 0x552   : > { %v4414_v40 = vmul.f32 %v6215_v13, %v9140_v62 }
 0x553   : > { %v6217_v27 = vpop.eup %6216  ;;  %6218 = vrsqrt.f32 %v4352_v24  ;;  %v4353_v30 = vadd.f32 1e-08, %v4321_v12 }
 0x554   : > { %4446 = vst.msk [vmem:[%s9147_s16 + $0xe0] sm:$0xff] %vm1528_vm7, %v4414_v40  ;;  %v4415_v9 = vmul.f32 %v6217_v27, %v9145_v20 }
 0x555   : > { %6220 = vrsqrt.f32 %v4353_v30 }
 0x556   : > { %4447 = vst.msk [vmem:[%s9147_s16 + $0xe8] sm:$0xff] %vm1528_vm7, %v4415_v9 }
 0x55d   : > { %v6219_v33 = vpop.eup %6218 }
 0x55e   : > { %v4416_v14 = vmul.f32 %v6219_v33, %v9162_v60 }
 0x55f   : > { %v6221_v34 = vpop.eup %6220 }
 0x560   : > { %4448 = vst.msk [vmem:[%s9147_s16 + $0xf0] sm:$0xff] %vm1528_vm7, %v4416_v14  ;;  %v4417_v62 = vmul.f32 %v6221_v34, %v9166_v29 }
 0x562   : > { %4449 = vst.msk [vmem:[%s9147_s16 + $0xf8] sm:$0xff] %vm1528_vm7, %v4417_v62 }
 0x563   : > { %6235 = shalt.err (!%p6232_p3)
}
 0x564   : > { %s6236_s12 = scalar_lea.hbm %s9262_s6, 4096  ;;  %s6240_s8 = scalar_lea.hbm %s9320_s5, 8192 }
 0x565   : > { %p6237_p4 = scmp.ne.s32.totalorder %s9262_s6, %s6236_s12  ;;  %p6241_p9 = scmp.lt.u32.totalorder %s9262_s6, %s9320_s5 }
 0x566   : > { %p6242_p10 = scmp.lt.u32.totalorder %s6240_s8, %s6236_s12  ;;  %p6244_p12 = scmp.lt.u32.totalorder %s6236_s12, %s9262_s6 }
 0x567   : > { %p6238_p7 = pnand %p6237_p4, %p6366_p5 }
 0x568   : > { %p6243_p11 = por %p6242_p10, %p6241_p9 }
 0x569   : > { %p6239_p8 = pneg %p6238_p7 }
 0x56a   : > { %p6245_p13 = por %p6244_p12, %p6243_p11 }
 0x56c   : > { %p6246_p0 = pnand %p6245_p13, %p6239_p8 }
 0x56e   : > { %6249 = shalt.err (!%p6246_p0)
}
 0x56f   : > { %s6297_s17 = smov 128  }
 0x570   : > { %4906 = dma.vmem_to_hbm [thread:$0]  (%p6366_p5), %s9267_s23, 4096, %s9262_s6, %s9273_s22, %s6297_s17, %s6297_s17, %s6287_s10  }
 0x571 PF: > { %p4912_p1 = scmp.ge.s32.totalorder %s6284_s21, 2  ;;  %s4479_s26 = sand.u32 1, %s6272_s18  }
 0x572   : > { %s4480_s30 = scalar_lea.sflag [#allocation3], %s4479_s26 }
 0x573   : > { %p4909_p2 = pnand %p4912_p1, %p6370_p6 }
 0x575   : > { %6267 = dma.done.wait (!%p4909_p2), %s4480_s30, 4096  }
 0x576   : > { %6269 = vsyncadd (!%p4909_p2), %s4480_s30, 4294963200  ;;  %p15_p3 = scmp.ge.s32.totalorder %s6353_s24, 4   ;;  %s9562_s18 = smov %s6276_s19 }
 0x577   : > { %s9563_s19 = smov %s6280_s20  ;;  %s9564_s20 = smov %s6364_s27 }
 0x578   : > { %s9565_s21 = smov %s6353_s24  ;;  %17 = sbr.rel (!%p15_p3) target bundleno = 3 (0x3), region = 75 }
 0x57f   :  { %4485 = vsyncpa [#allocation3], 1 }
 0x580   :  { %4487 = vsyncpa [#allocation3 + $0x1], 1 }

</bundles_post_ra>
